<compile_context>
chip_gen: v5e
topology: v5e:2x2
jax: 0.10.0
libtpu: 0.0.40
codegen_flags: <defaults>
</compile_context>

<pallas_src>
import functools

import jax
import jax.numpy as jnp
from jax import lax
from jax.experimental import pallas as pl
from jax.experimental.pallas import tpu as pltpu

N_ACTIONS = 7  # the torch module takes n_actions as a constructor arg


# ----------------------------------------------------------------------------
# helpers
# ----------------------------------------------------------------------------
def _round_up(x, m):
    return ((x + m - 1) // m) * m


def _pick_tm(m, cap=1024):
    """Row tile for the conv1 GEMM: as big as VMEM comfortably allows but always
    >= 2 grid steps (so v7x's two TensorCores both get work at small batch)."""
    if m <= 16:
        return m
    return max(8, min(cap, _round_up(pl.cdiv(m, 2), 8)))


# ----------------------------------------------------------------------------
# Pallas kernels
# ----------------------------------------------------------------------------
def _linear_relu_kernel(x_ref, w_ref, b_ref, o_ref):
    """o = relu(x @ w + b).  x:(tm,K) bf16, w:(K,N) bf16, b:(1,N) f32."""
    acc = jnp.dot(x_ref[...], w_ref[...], preferred_element_type=jnp.float32)
    o_ref[...] = jnp.maximum(acc + b_ref[...], 0.0).astype(o_ref.dtype)


def _conv23_kernel(p2_ref, c2w_ref, c2b_ref, c3w_ref, c3b_ref, o_ref, *, tb, h2, w2):
    """Fused conv2 GEMM (from pre-extracted patches) + conv3 (3x3, stride 1) with
    in-kernel im2col via static slices.  Output rows are in NHWC (h, w, c) flatten
    order so the head weight (pre-permuted) needs no activation transpose."""
    f32, bf16 = jnp.float32, jnp.bfloat16
    hw2 = h2 * w2
    H3, W3 = h2 - 2, w2 - 2
    k2 = c2w_ref.shape[0]
    cin3 = c2w_ref.shape[1]     # conv2 out channels == conv3 in channels
    cout3 = c3w_ref.shape[1]

    # conv2 as one GEMM: (tb*hw2, k2) @ (k2, cin3)
    p2 = p2_ref[...].reshape(tb * hw2, k2)
    a2 = jnp.dot(p2, c2w_ref[...], preferred_element_type=f32) + c2b_ref[...]
    a2 = jnp.maximum(a2, 0.0).astype(bf16)                    # (tb*hw2, cin3)

    # conv3 via 9 shifted-slice GEMMs (stride 1 -> contiguous slices only).
    acc = jnp.zeros((tb * H3 * W3, cout3), f32)
    for kh in range(3):
        for kw in range(3):
            pieces = []
            for b in range(tb):
                for i in range(H3):
                    s = b * hw2 + (kh + i) * w2 + kw          # static start
                    pieces.append(lax.slice(a2, (s, 0), (s + W3, cin3)))
            patch = pieces[0] if len(pieces) == 1 else jnp.concatenate(pieces, axis=0)
            r0 = (kh * 3 + kw) * cin3
            w3 = c3w_ref[r0:r0 + cin3, :]                      # (cin3, cout3) bf16
            acc = acc + jnp.dot(patch, w3, preferred_element_type=f32)

    a3 = jnp.maximum(acc + c3b_ref[...], 0.0)                  # (tb*H3*W3, cout3)
    o_ref[...] = a3.astype(bf16).reshape(tb, H3 * W3, cout3)


def _head_kernel(x_ref, y_ref,
                 d1w_ref, d1b_ref, d2w_ref, d2b_ref, d3w_ref, d3b_ref,
                 w1i_ref, w1d_ref, b1_ref, w2_ref, b2_ref, va_ref):
    """Driving MLP + packed dueling heads.  z = concat(x_flat, yd) is never built:
    the packed stage-1 weight is split row-wise (image / driving parts) and the two
    partial products are summed.  Writes the packed [V | A] result; the global-mean
    dueling combine happens outside so batch tiling stays correct."""
    f32 = jnp.float32
    y = y_ref[...]
    yd = jnp.maximum(jnp.dot(y, d1w_ref[...], preferred_element_type=f32) + d1b_ref[...], 0.0)
    yd = jnp.maximum(jnp.dot(yd, d2w_ref[...], preferred_element_type=f32) + d2b_ref[...], 0.0)
    yd = jnp.maximum(jnp.dot(yd, d3w_ref[...], preferred_element_type=f32) + d3b_ref[...], 0.0)

    h = (jnp.dot(x_ref[...], w1i_ref[...], preferred_element_type=f32)
         + jnp.dot(yd.astype(jnp.bfloat16), w1d_ref[...], preferred_element_type=f32)
         + b1_ref[...])
    h = jnp.maximum(h, 0.0)                                    # (tb, 128) = [V-hid | A-hid]

    va_ref[...] = jnp.dot(h, w2_ref[...], preferred_element_type=f32) + b2_ref[...]


# ----------------------------------------------------------------------------
# pallas_call wrappers
# ----------------------------------------------------------------------------
def pallas_matmul_bias_relu(x, w, b, out_dtype=jnp.bfloat16):
    """M-tiled GEMM + bias + ReLU (used for conv1 over XLA-extracted patches)."""
    M, K = x.shape
    N = w.shape[1]
    tm = _pick_tm(M)
    return pl.pallas_call(
        _linear_relu_kernel,
        out_shape=jax.ShapeDtypeStruct((M, N), out_dtype),
        grid=(pl.cdiv(M, tm),),
        in_specs=[pl.BlockSpec((tm, K), lambda i: (i, 0)),
                  pl.BlockSpec((K, N), lambda i: (0, 0)),
                  pl.BlockSpec((1, N), lambda i: (0, 0))],
        out_specs=pl.BlockSpec((tm, N), lambda i: (i, 0)),
        compiler_params=pltpu.CompilerParams(dimension_semantics=("parallel",)),
    )(x, w, b)


def pallas_conv23(p2, prep, *, h2, w2):
    """Fused conv2-GEMM + conv3.  p2: (B, h2*w2, k2) bf16 patches of conv2."""
    B, hw2, k2 = p2.shape
    H3, W3 = h2 - 2, w2 - 2
    cout3 = prep['c3_w'].shape[1]
    tb = max(1, min(4, B // 2))                 # >= 2 grid steps whenever B >= 2
    grid = (pl.cdiv(B, tb),)
    kern = functools.partial(_conv23_kernel, tb=tb, h2=h2, w2=w2)
    return pl.pallas_call(
        kern,
        out_shape=jax.ShapeDtypeStruct((B, H3 * W3, cout3), jnp.bfloat16),
        grid=grid,
        in_specs=[pl.BlockSpec((tb, hw2, k2), lambda i: (i, 0, 0)),
                  pl.BlockSpec(prep['c2_w'].shape, lambda i: (0, 0)),
                  pl.BlockSpec(prep['c2_b'].shape, lambda i: (0, 0)),
                  pl.BlockSpec(prep['c3_w'].shape, lambda i: (0, 0)),
                  pl.BlockSpec(prep['c3_b'].shape, lambda i: (0, 0))],
        out_specs=pl.BlockSpec((tb, H3 * W3, cout3), lambda i: (i, 0, 0)),
        compiler_params=pltpu.CompilerParams(dimension_semantics=("parallel",)),
    )(p2, prep['c2_w'], prep['c2_b'], prep['c3_w'], prep['c3_b'])


def pallas_dueling_head(x_flat, y, prep):
    """Batch-tiled fused driving-MLP + dueling head.  Returns packed [V | A]."""
    B, K = x_flat.shape
    n_out = prep['b2'].shape[1]
    if B <= 8:
        tb, Bp = B, B
    else:
        tb = 8
        Bp = _round_up(B, tb)
        if Bp != B:
            x_flat = jnp.pad(x_flat, ((0, Bp - B), (0, 0)))
            y = jnp.pad(y, ((0, Bp - B), (0, 0)))

    weight_keys = ('d1_w', 'd1_b', 'd2_w', 'd2_b', 'd3_w', 'd3_b',
                   'w1_img', 'w1_drv', 'b1', 'w2', 'b2')
    va = pl.pallas_call(
        _head_kernel,
        out_shape=jax.ShapeDtypeStruct((Bp, n_out), jnp.float32),
        grid=(Bp // tb,),
        in_specs=[pl.BlockSpec((tb, K), lambda i: (i, 0)),
                  pl.BlockSpec((tb, y.shape[1]), lambda i: (i, 0))]
                 + [pl.BlockSpec(prep[k].shape, lambda i: (0, 0)) for k in weight_keys],
        out_specs=pl.BlockSpec((tb, n_out), lambda i: (i, 0)),
        compiler_params=pltpu.CompilerParams(dimension_semantics=("parallel",)),
    )(x_flat, y, *[prep[k] for k in weight_keys])
    return va[:B]


# ----------------------------------------------------------------------------
# One-time parameter preparation (pre-transpose / pre-permute / pack / bf16-cast)
# ----------------------------------------------------------------------------
def prepare_params(p, n_actions=N_ACTIONS, conv3_hw=(6, 16)):
    bf16, f32 = jnp.bfloat16, jnp.float32

    def conv_w_patches(w):
        # torch (Cout, Cin, KH, KW) -> (Cin*KH*KW, Cout); rows (cin, kh, kw) matches
        # conv_general_dilated_patches' channel-major patch-feature ordering.
        cout = w.shape[0]
        return jnp.transpose(w, (1, 2, 3, 0)).reshape(-1, cout).astype(bf16)

    prep = {
        'c1_w': conv_w_patches(p['c1_w']), 'c1_b': p['c1_b'].reshape(1, -1).astype(f32),
        'c2_w': conv_w_patches(p['c2_w']), 'c2_b': p['c2_b'].reshape(1, -1).astype(f32),
        # conv3 weight grouped per (kh, kw): rows = (kh*3+kw)*cin + cin_idx, cols = cout.
        'c3_w': jnp.transpose(p['c3_w'], (2, 3, 1, 0))
                   .reshape(-1, p['c3_w'].shape[0]).astype(bf16),
        'c3_b': p['c3_b'].reshape(1, -1).astype(f32),
        'd1_w': p['d1_w'].T.astype(f32), 'd1_b': p['d1_b'].reshape(1, -1).astype(f32),
        'd2_w': p['d2_w'].T.astype(f32), 'd2_b': p['d2_b'].reshape(1, -1).astype(f32),
        'd3_w': p['d3_w'].T.astype(f32), 'd3_b': p['d3_b'].reshape(1, -1).astype(f32),
    }

    # Packed dueling stage 1: (6208, 128) = [V-hidden | A-hidden] columns.
    w1 = jnp.concatenate([p['v1_w'], p['a1_w']], axis=0).T           # (6208, 128)
    hw = conv3_hw[0] * conv3_hw[1]                                   # 96 spatial positions
    n_hid = w1.shape[1]
    c3 = (w1.shape[0] - 64) // hw                                    # 64 conv3 channels
    n_img = c3 * hw                                                  # 6144
    # Permute image rows from torch's NCHW flatten (c,h,w) to the NHWC flatten (h,w,c)
    # produced by the conv path -> no activation transpose in the forward.
    w1_img = w1[:n_img].reshape(c3, hw, n_hid).transpose(1, 0, 2).reshape(n_img, n_hid)
    prep['w1_img'] = w1_img.astype(bf16)
    prep['w1_drv'] = w1[n_img:].astype(bf16)                         # (64, 128)
    prep['b1'] = jnp.concatenate([p['v1_b'], p['a1_b']]).reshape(1, -1).astype(f32)

    # Packed dueling stage 2: block-diagonal (128, 1+n_actions) -> one dot gives [V | A].
    w2 = jnp.zeros((n_hid, 1 + n_actions), f32)
    w2 = w2.at[:64, 0:1].set(p['v2_w'].T.astype(f32))
    w2 = w2.at[64:, 1:].set(p['a2_w'].T.astype(f32))
    prep['w2'] = w2
    prep['b2'] = jnp.concatenate([p['v2_b'], p['a2_b']]).reshape(1, -1).astype(f32)
    return prep


# ----------------------------------------------------------------------------
# Forward pass (mirrors DuelingDQnetwork.forward)
# ----------------------------------------------------------------------------
def dueling_dqn_forward(prep, x_nchw, y):
    if y.ndim == 1:                      # torch: a single 5-vector -> batch of 1
        y = y[None, :]
    B = x_nchw.shape[0]
    xb = x_nchw.astype(jnp.bfloat16)

    # conv1: XLA im2col (one fused op) + Pallas GEMM (M-tiled, >=2 parallel steps)
    p1 = lax.conv_general_dilated_patches(
        xb, (8, 8), (4, 4), 'VALID', dimension_numbers=('NCHW', 'HWIO', 'NHWC'))
    _, h1, w1, k1 = p1.shape
    a1 = pallas_matmul_bias_relu(p1.reshape(B * h1 * w1, k1), prep['c1_w'], prep['c1_b'])
    a1 = a1.reshape(B, h1, w1, prep['c1_w'].shape[1])          # NHWC, bf16

    # conv2 patches (XLA) -> fused conv2-GEMM + conv3 Pallas kernel (no conv3 im2col,
    # no a2/a3 HBM round-trips inside the fused part)
    p2 = lax.conv_general_dilated_patches(
        a1, (4, 4), (2, 2), 'VALID', dimension_numbers=('NHWC', 'HWIO', 'NHWC'))
    _, h2, w2, k2 = p2.shape
    a3 = pallas_conv23(p2.reshape(B, h2 * w2, k2), prep, h2=h2, w2=w2)   # (B, 96, 64)

    # NHWC flatten is a pure metadata reshape; head weights were row-permuted to match.
    x_flat = a3.reshape(B, -1)                                  # (B, 6144) bf16

    # fused driving MLP + dueling heads (batch-tiled); global A.mean() applied outside
    # so tiling over B cannot change semantics.
    va = pallas_dueling_head(x_flat, y.astype(jnp.float32), prep)
    v = va[:, :1]
    a = va[:, 1:]
    return v + a - jnp.mean(a)          # matches torch: V + A - A.mean()


# ----------------------------------------------------------------------------
# Deterministic parameter init (PyTorch-shaped weights)
# ----------------------------------------------------------------------------
def init_params(key):
    def dense(k, out_f, in_f):
        kw, kb = jax.random.split(k)
        std = 1.0 / jnp.sqrt(jnp.float32(in_f))
        return (jax.random.normal(kw, (out_f, in_f), jnp.float32) * std,
                jax.random.normal(kb, (out_f,), jnp.float32) * 0.01)

    def conv(k, cout, cin, ks):
        kw, kb = jax.random.split(k)
        std = 1.0 / jnp.sqrt(jnp.float32(cin * ks * ks))
        return (jax.random.normal(kw, (cout, cin, ks, ks), jnp.float32) * std,
                jax.random.normal(kb, (cout,), jnp.float32) * 0.01)

    ks = jax.random.split(key, 10)
    p = {}
    p['c1_w'], p['c1_b'] = conv(ks[0], 32, 3, 8)
    p['c2_w'], p['c2_b'] = conv(ks[1], 64, 32, 4)
    p['c3_w'], p['c3_b'] = conv(ks[2], 64, 64, 3)
    p['d1_w'], p['d1_b'] = dense(ks[3], 256, 5)
    p['d2_w'], p['d2_b'] = dense(ks[4], 128, 256)
    p['d3_w'], p['d3_b'] = dense(ks[5], 64, 128)
    p['v1_w'], p['v1_b'] = dense(ks[6], 64, 6208)
    p['v2_w'], p['v2_b'] = dense(ks[7], 1, 64)
    p['a1_w'], p['a1_b'] = dense(ks[8], 64, 6208)
    p['a2_w'], p['a2_b'] = dense(ks[9], N_ACTIONS, 64)
    return p


# ----------------------------------------------------------------------------
# Pure-JAX f32 reference (semantics of the torch forward) for a sanity check
# ----------------------------------------------------------------------------
def reference_forward(params, x_nchw, y):
    def conv(x, w, b, s):
        out = lax.conv_general_dilated(
            x, w, (s, s), 'VALID', dimension_numbers=('NCHW', 'OIHW', 'NCHW'))
        return jax.nn.relu(out + b.reshape(1, -1, 1, 1))

    x = conv(x_nchw, params['c1_w'], params['c1_b'], 4)
    x = conv(x, params['c2_w'], params['c2_b'], 2)
    x = conv(x, params['c3_w'], params['c3_b'], 1)
    x = x.reshape(x.shape[0], -1)
    yd = jax.nn.relu(y @ params['d1_w'].T + params['d1_b'])
    yd = jax.nn.relu(yd @ params['d2_w'].T + params['d2_b'])
    yd = jax.nn.relu(yd @ params['d3_w'].T + params['d3_b'])
    z = jnp.concatenate([x, yd], axis=1)
    hv = jax.nn.relu(z @ params['v1_w'].T + params['v1_b'])
    v = hv @ params['v2_w'].T + params['v2_b']
    ha = jax.nn.relu(z @ params['a1_w'].T + params['a1_b'])
    a = ha @ params['a2_w'].T + params['a2_b']
    return v + a - jnp.mean(a)


if __name__ == "__main__":
    key = jax.random.PRNGKey(0)
    kp, kx, ky = jax.random.split(key, 3)

    params = init_params(kp)
    prep = prepare_params(params)          # one-time weight transpose/permute/pack

    # batch=2, NCHW image (3, 80, 160) -> conv trunk yields exactly 6144 features
    x = jax.random.uniform(kx, (2, 3, 80, 160), jnp.float32)
    y = jax.random.uniform(ky, (2, 5), jnp.float32)

    fwd = jax.jit(dueling_dqn_forward)
    q = jax.block_until_ready(fwd(prep, x, y))

    assert q.shape == (2, N_ACTIONS) and q.dtype == jnp.float32
    assert bool(jnp.all(jnp.isfinite(q)))

    q_ref = jax.block_until_ready(reference_forward(params, x, y))
    assert jnp.allclose(q, q_ref, rtol=5e-2, atol=5e-2), (q, q_ref)

    print("KERNEL_OK")
</pallas_src>

<mosaic_0001>
module attributes {stable_mosaic.version = 11 : i64} {
  func.func @_linear_relu_kernel(%arg0: i32, %arg1: memref<744x192xbf16, #tpu.memory_space<vmem>>, %arg2: memref<192x32xbf16, #tpu.memory_space<vmem>>, %arg3: memref<1x32xf32, #tpu.memory_space<vmem>>, %arg4: memref<744x32xbf16, #tpu.memory_space<vmem>>) attributes {dimension_semantics = [#tpu.dimension_semantics<parallel>], iteration_bounds = array<i64: 2>, scalar_prefetch = 0 : i64, scratch_operands = 0 : i64, tpu.core_type = #tpu.core_type<tc>, window_params = [{transform_indices = @transform_0, window_bounds = array<i64: 744, 192>}, {pipeline_mode = #tpu.pipeline_mode<synchronous>, transform_indices = @transform_1, window_bounds = array<i64: 192, 32>}, {pipeline_mode = #tpu.pipeline_mode<synchronous>, transform_indices = @transform_2, window_bounds = array<i64: 1, 32>}, {transform_indices = @transform_3, window_bounds = array<i64: 744, 32>}]} {
    %c0 = arith.constant 0 : index
    %c0_0 = arith.constant 0 : index
    %0 = vector.load %arg1[%c0, %c0_0] : memref<744x192xbf16, #tpu.memory_space<vmem>>, vector<744x192xbf16>
    %c0_1 = arith.constant 0 : index
    %c0_2 = arith.constant 0 : index
    %1 = vector.load %arg2[%c0_1, %c0_2] : memref<192x32xbf16, #tpu.memory_space<vmem>>, vector<192x32xbf16>
    %cst = arith.constant dense<0.000000e+00> : vector<744x32xf32>
    %2 = tpu.matmul %0, %1, %cst {dimension_numbers = #tpu.dot_dimension_numbers<[1], [0], [0], [1], [0, 0, 1, 1], [], []>} : vector<744x192xbf16>, vector<192x32xbf16>, vector<744x32xf32> -> vector<744x32xf32>
    %c0_3 = arith.constant 0 : index
    %c0_4 = arith.constant 0 : index
    %3 = vector.load %arg3[%c0_3, %c0_4] : memref<1x32xf32, #tpu.memory_space<vmem>>, vector<1x32xf32>
    %4 = vector.broadcast %3 : vector<1x32xf32> to vector<744x32xf32>
    %5 = arith.addf %2, %4 : vector<744x32xf32>
    %cst_5 = arith.constant 0.000000e+00 : f32
    %6 = vector.broadcast %cst_5 : f32 to vector<744x32xf32>
    %7 = arith.maximumf %5, %6 : vector<744x32xf32>
    %8 = arith.truncf %7 : vector<744x32xf32> to vector<744x32xbf16>
    %c0_6 = arith.constant 0 : index
    %c0_7 = arith.constant 0 : index
    %9 = vector.load %arg4[%c0_6, %c0_7] : memref<744x32xbf16, #tpu.memory_space<vmem>>, vector<744x32xbf16>
    tpu.vector_store %arg4[%c0_6, %c0_7], %8 {strides = array<i32>} : memref<744x32xbf16, #tpu.memory_space<vmem>>, vector<744x32xbf16>,
    return
  }
  func.func @transform_0(%arg0: i32) -> (i32, i32) {
    %c0_i32 = arith.constant 0 : i32
    %c0_i32_0 = arith.constant 0 : i32
    return %arg0, %c0_i32 : i32, i32
  }
  func.func @transform_1(%arg0: i32) -> (i32, i32) {
    %c0_i32 = arith.constant 0 : i32
    %c0_i32_0 = arith.constant 0 : i32
    %c0_i32_1 = arith.constant 0 : i32
    return %c0_i32, %c0_i32_0 : i32, i32
  }
  func.func @transform_2(%arg0: i32) -> (i32, i32) {
    %c0_i32 = arith.constant 0 : i32
    %c0_i32_0 = arith.constant 0 : i32
    %c0_i32_1 = arith.constant 0 : i32
    return %c0_i32, %c0_i32_0 : i32, i32
  }
  func.func @transform_3(%arg0: i32) -> (i32, i32) {
    %c0_i32 = arith.constant 0 : i32
    %c0_i32_0 = arith.constant 0 : i32
    return %arg0, %c0_i32 : i32, i32
  }
}

module attributes {stable_mosaic.version = 11 : i64} {
  func.func @_conv23_kernel(%arg0: i32, %arg1: memref<1x144x512xbf16, #tpu.memory_space<vmem>>, %arg2: memref<512x64xbf16, #tpu.memory_space<vmem>>, %arg3: memref<1x64xf32, #tpu.memory_space<vmem>>, %arg4: memref<576x64xbf16, #tpu.memory_space<vmem>>, %arg5: memref<1x64xf32, #tpu.memory_space<vmem>>, %arg6: memref<1x96x64xbf16, #tpu.memory_space<vmem>>) attributes {dimension_semantics = [#tpu.dimension_semantics<parallel>], iteration_bounds = array<i64: 2>, scalar_prefetch = 0 : i64, scratch_operands = 0 : i64, tpu.core_type = #tpu.core_type<tc>, window_params = [{transform_indices = @transform_0, window_bounds = array<i64: 1, 144, 512>}, {pipeline_mode = #tpu.pipeline_mode<synchronous>, transform_indices = @transform_1, window_bounds = array<i64: 512, 64>}, {pipeline_mode = #tpu.pipeline_mode<synchronous>, transform_indices = @transform_2, window_bounds = array<i64: 1, 64>}, {pipeline_mode = #tpu.pipeline_mode<synchronous>, transform_indices = @transform_3, window_bounds = array<i64: 576, 64>}, {pipeline_mode = #tpu.pipeline_mode<synchronous>, transform_indices = @transform_4, window_bounds = array<i64: 1, 64>}, {transform_indices = @transform_5, window_bounds = array<i64: 1, 96, 64>}]} {
    %c0 = arith.constant 0 : index
    %c0_0 = arith.constant 0 : index
    %c0_1 = arith.constant 0 : index
    %0 = vector.load %arg1[%c0, %c0_0, %c0_1] : memref<1x144x512xbf16, #tpu.memory_space<vmem>>, vector<1x144x512xbf16>
    %1 = vector.shape_cast %0 : vector<1x144x512xbf16> to vector<144x512xbf16>
    %c0_2 = arith.constant 0 : index
    %c0_3 = arith.constant 0 : index
    %2 = vector.load %arg2[%c0_2, %c0_3] : memref<512x64xbf16, #tpu.memory_space<vmem>>, vector<512x64xbf16>
    %cst = arith.constant dense<0.000000e+00> : vector<144x64xf32>
    %3 = tpu.matmul %1, %2, %cst {dimension_numbers = #tpu.dot_dimension_numbers<[1], [0], [0], [1], [0, 0, 1, 1], [], []>} : vector<144x512xbf16>, vector<512x64xbf16>, vector<144x64xf32> -> vector<144x64xf32>
    %c0_4 = arith.constant 0 : index
    %c0_5 = arith.constant 0 : index
    %4 = vector.load %arg3[%c0_4, %c0_5] : memref<1x64xf32, #tpu.memory_space<vmem>>, vector<1x64xf32>
    %5 = vector.broadcast %4 : vector<1x64xf32> to vector<144x64xf32>
    %6 = arith.addf %3, %5 : vector<144x64xf32>
    %cst_6 = arith.constant 0.000000e+00 : f32
    %7 = vector.broadcast %cst_6 : f32 to vector<144x64xf32>
    %8 = arith.maximumf %6, %7 : vector<144x64xf32>
    %9 = arith.truncf %8 : vector<144x64xf32> to vector<144x64xbf16>
    %cst_7 = arith.constant 0.000000e+00 : f32
    %10 = vector.broadcast %cst_7 : f32 to vector<96x64xf32>
    %11 = vector.extract_strided_slice %9 {offsets = [0, 0], sizes = [16, 64], strides = [1, 1]} : vector<144x64xbf16> to vector<16x64xbf16>
    %12 = vector.extract_strided_slice %9 {offsets = [18, 0], sizes = [16, 64], strides = [1, 1]} : vector<144x64xbf16> to vector<16x64xbf16>
    %13 = vector.extract_strided_slice %9 {offsets = [36, 0], sizes = [16, 64], strides = [1, 1]} : vector<144x64xbf16> to vector<16x64xbf16>
    %14 = vector.extract_strided_slice %9 {offsets = [54, 0], sizes = [16, 64], strides = [1, 1]} : vector<144x64xbf16> to vector<16x64xbf16>
    %15 = vector.extract_strided_slice %9 {offsets = [72, 0], sizes = [16, 64], strides = [1, 1]} : vector<144x64xbf16> to vector<16x64xbf16>
    %16 = vector.extract_strided_slice %9 {offsets = [90, 0], sizes = [16, 64], strides = [1, 1]} : vector<144x64xbf16> to vector<16x64xbf16>
    %17 = tpu.concatenate %11, %12, %13, %14, %15, %16 in 0 : vector<16x64xbf16>, vector<16x64xbf16>, vector<16x64xbf16>, vector<16x64xbf16>, vector<16x64xbf16>, vector<16x64xbf16> -> vector<96x64xbf16>
    %c0_8 = arith.constant 0 : index
    %c0_9 = arith.constant 0 : index
    %18 = vector.load %arg4[%c0_8, %c0_9] : memref<576x64xbf16, #tpu.memory_space<vmem>>, vector<64x64xbf16>
    %cst_10 = arith.constant dense<0.000000e+00> : vector<96x64xf32>
    %19 = tpu.matmul %17, %18, %cst_10 {dimension_numbers = #tpu.dot_dimension_numbers<[1], [0], [0], [1], [0, 0, 1, 1], [], []>} : vector<96x64xbf16>, vector<64x64xbf16>, vector<96x64xf32> -> vector<96x64xf32>
    %20 = arith.addf %10, %19 : vector<96x64xf32>
    %21 = vector.extract_strided_slice %9 {offsets = [1, 0], sizes = [16, 64], strides = [1, 1]} : vector<144x64xbf16> to vector<16x64xbf16>
    %22 = vector.extract_strided_slice %9 {offsets = [19, 0], sizes = [16, 64], strides = [1, 1]} : vector<144x64xbf16> to vector<16x64xbf16>
    %23 = vector.extract_strided_slice %9 {offsets = [37, 0], sizes = [16, 64], strides = [1, 1]} : vector<144x64xbf16> to vector<16x64xbf16>
    %24 = vector.extract_strided_slice %9 {offsets = [55, 0], sizes = [16, 64], strides = [1, 1]} : vector<144x64xbf16> to vector<16x64xbf16>
    %25 = vector.extract_strided_slice %9 {offsets = [73, 0], sizes = [16, 64], strides = [1, 1]} : vector<144x64xbf16> to vector<16x64xbf16>
    %26 = vector.extract_strided_slice %9 {offsets = [91, 0], sizes = [16, 64], strides = [1, 1]} : vector<144x64xbf16> to vector<16x64xbf16>
    %27 = tpu.concatenate %21, %22, %23, %24, %25, %26 in 0 : vector<16x64xbf16>, vector<16x64xbf16>, vector<16x64xbf16>, vector<16x64xbf16>, vector<16x64xbf16>, vector<16x64xbf16> -> vector<96x64xbf16>
    %c64 = arith.constant 64 : index
    %c0_11 = arith.constant 0 : index
    %28 = vector.load %arg4[%c64, %c0_11] : memref<576x64xbf16, #tpu.memory_space<vmem>>, vector<64x64xbf16>
    %cst_12 = arith.constant dense<0.000000e+00> : vector<96x64xf32>
    %29 = tpu.matmul %27, %28, %cst_12 {dimension_numbers = #tpu.dot_dimension_numbers<[1], [0], [0], [1], [0, 0, 1, 1], [], []>} : vector<96x64xbf16>, vector<64x64xbf16>, vector<96x64xf32> -> vector<96x64xf32>
    %30 = arith.addf %20, %29 : vector<96x64xf32>
    %31 = vector.extract_strided_slice %9 {offsets = [2, 0], sizes = [16, 64], strides = [1, 1]} : vector<144x64xbf16> to vector<16x64xbf16>
    %32 = vector.extract_strided_slice %9 {offsets = [20, 0], sizes = [16, 64], strides = [1, 1]} : vector<144x64xbf16> to vector<16x64xbf16>
    %33 = vector.extract_strided_slice %9 {offsets = [38, 0], sizes = [16, 64], strides = [1, 1]} : vector<144x64xbf16> to vector<16x64xbf16>
    %34 = vector.extract_strided_slice %9 {offsets = [56, 0], sizes = [16, 64], strides = [1, 1]} : vector<144x64xbf16> to vector<16x64xbf16>
    %35 = vector.extract_strided_slice %9 {offsets = [74, 0], sizes = [16, 64], strides = [1, 1]} : vector<144x64xbf16> to vector<16x64xbf16>
    %36 = vector.extract_strided_slice %9 {offsets = [92, 0], sizes = [16, 64], strides = [1, 1]} : vector<144x64xbf16> to vector<16x64xbf16>
    %37 = tpu.concatenate %31, %32, %33, %34, %35, %36 in 0 : vector<16x64xbf16>, vector<16x64xbf16>, vector<16x64xbf16>, vector<16x64xbf16>, vector<16x64xbf16>, vector<16x64xbf16> -> vector<96x64xbf16>
    %c128 = arith.constant 128 : index
    %c0_13 = arith.constant 0 : index
    %38 = vector.load %arg4[%c128, %c0_13] : memref<576x64xbf16, #tpu.memory_space<vmem>>, vector<64x64xbf16>
    %cst_14 = arith.constant dense<0.000000e+00> : vector<96x64xf32>
    %39 = tpu.matmul %37, %38, %cst_14 {dimension_numbers = #tpu.dot_dimension_numbers<[1], [0], [0], [1], [0, 0, 1, 1], [], []>} : vector<96x64xbf16>, vector<64x64xbf16>, vector<96x64xf32> -> vector<96x64xf32>
    %40 = arith.addf %30, %39 : vector<96x64xf32>
    %41 = vector.extract_strided_slice %9 {offsets = [18, 0], sizes = [16, 64], strides = [1, 1]} : vector<144x64xbf16> to vector<16x64xbf16>
    %42 = vector.extract_strided_slice %9 {offsets = [36, 0], sizes = [16, 64], strides = [1, 1]} : vector<144x64xbf16> to vector<16x64xbf16>
    %43 = vector.extract_strided_slice %9 {offsets = [54, 0], sizes = [16, 64], strides = [1, 1]} : vector<144x64xbf16> to vector<16x64xbf16>
    %44 = vector.extract_strided_slice %9 {offsets = [72, 0], sizes = [16, 64], strides = [1, 1]} : vector<144x64xbf16> to vector<16x64xbf16>
    %45 = vector.extract_strided_slice %9 {offsets = [90, 0], sizes = [16, 64], strides = [1, 1]} : vector<144x64xbf16> to vector<16x64xbf16>
    %46 = vector.extract_strided_slice %9 {offsets = [108, 0], sizes = [16, 64], strides = [1, 1]} : vector<144x64xbf16> to vector<16x64xbf16>
    %47 = tpu.concatenate %41, %42, %43, %44, %45, %46 in 0 : vector<16x64xbf16>, vector<16x64xbf16>, vector<16x64xbf16>, vector<16x64xbf16>, vector<16x64xbf16>, vector<16x64xbf16> -> vector<96x64xbf16>
    %c192 = arith.constant 192 : index
    %c0_15 = arith.constant 0 : index
    %48 = vector.load %arg4[%c192, %c0_15] : memref<576x64xbf16, #tpu.memory_space<vmem>>, vector<64x64xbf16>
    %cst_16 = arith.constant dense<0.000000e+00> : vector<96x64xf32>
    %49 = tpu.matmul %47, %48, %cst_16 {dimension_numbers = #tpu.dot_dimension_numbers<[1], [0], [0], [1], [0, 0, 1, 1], [], []>} : vector<96x64xbf16>, vector<64x64xbf16>, vector<96x64xf32> -> vector<96x64xf32>
    %50 = arith.addf %40, %49 : vector<96x64xf32>
    %51 = vector.extract_strided_slice %9 {offsets = [19, 0], sizes = [16, 64], strides = [1, 1]} : vector<144x64xbf16> to vector<16x64xbf16>
    %52 = vector.extract_strided_slice %9 {offsets = [37, 0], sizes = [16, 64], strides = [1, 1]} : vector<144x64xbf16> to vector<16x64xbf16>
    %53 = vector.extract_strided_slice %9 {offsets = [55, 0], sizes = [16, 64], strides = [1, 1]} : vector<144x64xbf16> to vector<16x64xbf16>
    %54 = vector.extract_strided_slice %9 {offsets = [73, 0], sizes = [16, 64], strides = [1, 1]} : vector<144x64xbf16> to vector<16x64xbf16>
    %55 = vector.extract_strided_slice %9 {offsets = [91, 0], sizes = [16, 64], strides = [1, 1]} : vector<144x64xbf16> to vector<16x64xbf16>
    %56 = vector.extract_strided_slice %9 {offsets = [109, 0], sizes = [16, 64], strides = [1, 1]} : vector<144x64xbf16> to vector<16x64xbf16>
    %57 = tpu.concatenate %51, %52, %53, %54, %55, %56 in 0 : vector<16x64xbf16>, vector<16x64xbf16>, vector<16x64xbf16>, vector<16x64xbf16>, vector<16x64xbf16>, vector<16x64xbf16> -> vector<96x64xbf16>
    %c256 = arith.constant 256 : index
    %c0_17 = arith.constant 0 : index
    %58 = vector.load %arg4[%c256, %c0_17] : memref<576x64xbf16, #tpu.memory_space<vmem>>, vector<64x64xbf16>
    %cst_18 = arith.constant dense<0.000000e+00> : vector<96x64xf32>
    %59 = tpu.matmul %57, %58, %cst_18 {dimension_numbers = #tpu.dot_dimension_numbers<[1], [0], [0], [1], [0, 0, 1, 1], [], []>} : vector<96x64xbf16>, vector<64x64xbf16>, vector<96x64xf32> -> vector<96x64xf32>
    %60 = arith.addf %50, %59 : vector<96x64xf32>
    %61 = vector.extract_strided_slice %9 {offsets = [20, 0], sizes = [16, 64], strides = [1, 1]} : vector<144x64xbf16> to vector<16x64xbf16>
    %62 = vector.extract_strided_slice %9 {offsets = [38, 0], sizes = [16, 64], strides = [1, 1]} : vector<144x64xbf16> to vector<16x64xbf16>
    %63 = vector.extract_strided_slice %9 {offsets = [56, 0], sizes = [16, 64], strides = [1, 1]} : vector<144x64xbf16> to vector<16x64xbf16>
    %64 = vector.extract_strided_slice %9 {offsets = [74, 0], sizes = [16, 64], strides = [1, 1]} : vector<144x64xbf16> to vector<16x64xbf16>
    %65 = vector.extract_strided_slice %9 {offsets = [92, 0], sizes = [16, 64], strides = [1, 1]} : vector<144x64xbf16> to vector<16x64xbf16>
    %66 = vector.extract_strided_slice %9 {offsets = [110, 0], sizes = [16, 64], strides = [1, 1]} : vector<144x64xbf16> to vector<16x64xbf16>
    %67 = tpu.concatenate %61, %62, %63, %64, %65, %66 in 0 : vector<16x64xbf16>, vector<16x64xbf16>, vector<16x64xbf16>, vector<16x64xbf16>, vector<16x64xbf16>, vector<16x64xbf16> -> vector<96x64xbf16>
    %c320 = arith.constant 320 : index
    %c0_19 = arith.constant 0 : index
    %68 = vector.load %arg4[%c320, %c0_19] : memref<576x64xbf16, #tpu.memory_space<vmem>>, vector<64x64xbf16>
    %cst_20 = arith.constant dense<0.000000e+00> : vector<96x64xf32>
    %69 = tpu.matmul %67, %68, %cst_20 {dimension_numbers = #tpu.dot_dimension_numbers<[1], [0], [0], [1], [0, 0, 1, 1], [], []>} : vector<96x64xbf16>, vector<64x64xbf16>, vector<96x64xf32> -> vector<96x64xf32>
    %70 = arith.addf %60, %69 : vector<96x64xf32>
    %71 = vector.extract_strided_slice %9 {offsets = [36, 0], sizes = [16, 64], strides = [1, 1]} : vector<144x64xbf16> to vector<16x64xbf16>
    %72 = vector.extract_strided_slice %9 {offsets = [54, 0], sizes = [16, 64], strides = [1, 1]} : vector<144x64xbf16> to vector<16x64xbf16>
    %73 = vector.extract_strided_slice %9 {offsets = [72, 0], sizes = [16, 64], strides = [1, 1]} : vector<144x64xbf16> to vector<16x64xbf16>
    %74 = vector.extract_strided_slice %9 {offsets = [90, 0], sizes = [16, 64], strides = [1, 1]} : vector<144x64xbf16> to vector<16x64xbf16>
    %75 = vector.extract_strided_slice %9 {offsets = [108, 0], sizes = [16, 64], strides = [1, 1]} : vector<144x64xbf16> to vector<16x64xbf16>
    %76 = vector.extract_strided_slice %9 {offsets = [126, 0], sizes = [16, 64], strides = [1, 1]} : vector<144x64xbf16> to vector<16x64xbf16>
    %77 = tpu.concatenate %71, %72, %73, %74, %75, %76 in 0 : vector<16x64xbf16>, vector<16x64xbf16>, vector<16x64xbf16>, vector<16x64xbf16>, vector<16x64xbf16>, vector<16x64xbf16> -> vector<96x64xbf16>
    %c384 = arith.constant 384 : index
    %c0_21 = arith.constant 0 : index
    %78 = vector.load %arg4[%c384, %c0_21] : memref<576x64xbf16, #tpu.memory_space<vmem>>, vector<64x64xbf16>
    %cst_22 = arith.constant dense<0.000000e+00> : vector<96x64xf32>
    %79 = tpu.matmul %77, %78, %cst_22 {dimension_numbers = #tpu.dot_dimension_numbers<[1], [0], [0], [1], [0, 0, 1, 1], [], []>} : vector<96x64xbf16>, vector<64x64xbf16>, vector<96x64xf32> -> vector<96x64xf32>
    %80 = arith.addf %70, %79 : vector<96x64xf32>
    %81 = vector.extract_strided_slice %9 {offsets = [37, 0], sizes = [16, 64], strides = [1, 1]} : vector<144x64xbf16> to vector<16x64xbf16>
    %82 = vector.extract_strided_slice %9 {offsets = [55, 0], sizes = [16, 64], strides = [1, 1]} : vector<144x64xbf16> to vector<16x64xbf16>
    %83 = vector.extract_strided_slice %9 {offsets = [73, 0], sizes = [16, 64], strides = [1, 1]} : vector<144x64xbf16> to vector<16x64xbf16>
    %84 = vector.extract_strided_slice %9 {offsets = [91, 0], sizes = [16, 64], strides = [1, 1]} : vector<144x64xbf16> to vector<16x64xbf16>
    %85 = vector.extract_strided_slice %9 {offsets = [109, 0], sizes = [16, 64], strides = [1, 1]} : vector<144x64xbf16> to vector<16x64xbf16>
    %86 = vector.extract_strided_slice %9 {offsets = [127, 0], sizes = [16, 64], strides = [1, 1]} : vector<144x64xbf16> to vector<16x64xbf16>
    %87 = tpu.concatenate %81, %82, %83, %84, %85, %86 in 0 : vector<16x64xbf16>, vector<16x64xbf16>, vector<16x64xbf16>, vector<16x64xbf16>, vector<16x64xbf16>, vector<16x64xbf16> -> vector<96x64xbf16>
    %c448 = arith.constant 448 : index
    %c0_23 = arith.constant 0 : index
    %88 = vector.load %arg4[%c448, %c0_23] : memref<576x64xbf16, #tpu.memory_space<vmem>>, vector<64x64xbf16>
    %cst_24 = arith.constant dense<0.000000e+00> : vector<96x64xf32>
    %89 = tpu.matmul %87, %88, %cst_24 {dimension_numbers = #tpu.dot_dimension_numbers<[1], [0], [0], [1], [0, 0, 1, 1], [], []>} : vector<96x64xbf16>, vector<64x64xbf16>, vector<96x64xf32> -> vector<96x64xf32>
    %90 = arith.addf %80, %89 : vector<96x64xf32>
    %91 = vector.extract_strided_slice %9 {offsets = [38, 0], sizes = [16, 64], strides = [1, 1]} : vector<144x64xbf16> to vector<16x64xbf16>
    %92 = vector.extract_strided_slice %9 {offsets = [56, 0], sizes = [16, 64], strides = [1, 1]} : vector<144x64xbf16> to vector<16x64xbf16>
    %93 = vector.extract_strided_slice %9 {offsets = [74, 0], sizes = [16, 64], strides = [1, 1]} : vector<144x64xbf16> to vector<16x64xbf16>
    %94 = vector.extract_strided_slice %9 {offsets = [92, 0], sizes = [16, 64], strides = [1, 1]} : vector<144x64xbf16> to vector<16x64xbf16>
    %95 = vector.extract_strided_slice %9 {offsets = [110, 0], sizes = [16, 64], strides = [1, 1]} : vector<144x64xbf16> to vector<16x64xbf16>
    %96 = vector.extract_strided_slice %9 {offsets = [128, 0], sizes = [16, 64], strides = [1, 1]} : vector<144x64xbf16> to vector<16x64xbf16>
    %97 = tpu.concatenate %91, %92, %93, %94, %95, %96 in 0 : vector<16x64xbf16>, vector<16x64xbf16>, vector<16x64xbf16>, vector<16x64xbf16>, vector<16x64xbf16>, vector<16x64xbf16> -> vector<96x64xbf16>
    %c512 = arith.constant 512 : index
    %c0_25 = arith.constant 0 : index
    %98 = vector.load %arg4[%c512, %c0_25] : memref<576x64xbf16, #tpu.memory_space<vmem>>, vector<64x64xbf16>
    %cst_26 = arith.constant dense<0.000000e+00> : vector<96x64xf32>
    %99 = tpu.matmul %97, %98, %cst_26 {dimension_numbers = #tpu.dot_dimension_numbers<[1], [0], [0], [1], [0, 0, 1, 1], [], []>} : vector<96x64xbf16>, vector<64x64xbf16>, vector<96x64xf32> -> vector<96x64xf32>
    %100 = arith.addf %90, %99 : vector<96x64xf32>
    %c0_27 = arith.constant 0 : index
    %c0_28 = arith.constant 0 : index
    %101 = vector.load %arg5[%c0_27, %c0_28] : memref<1x64xf32, #tpu.memory_space<vmem>>, vector<1x64xf32>
    %102 = vector.broadcast %101 : vector<1x64xf32> to vector<96x64xf32>
    %103 = arith.addf %100, %102 : vector<96x64xf32>
    %cst_29 = arith.constant 0.000000e+00 : f32
    %104 = vector.broadcast %cst_29 : f32 to vector<96x64xf32>
    %105 = arith.maximumf %103, %104 : vector<96x64xf32>
    %106 = arith.truncf %105 : vector<96x64xf32> to vector<96x64xbf16>
    %107 = vector.shape_cast %106 : vector<96x64xbf16> to vector<1x96x64xbf16>
    %c0_30 = arith.constant 0 : index
    %c0_31 = arith.constant 0 : index
    %c0_32 = arith.constant 0 : index
    %108 = vector.load %arg6[%c0_30, %c0_31, %c0_32] : memref<1x96x64xbf16, #tpu.memory_space<vmem>>, vector<1x96x64xbf16>
    tpu.vector_store %arg6[%c0_30, %c0_31, %c0_32], %107 {strides = array<i32>} : memref<1x96x64xbf16, #tpu.memory_space<vmem>>, vector<1x96x64xbf16>,
    return
  }
  func.func @transform_0(%arg0: i32) -> (i32, i32, i32) {
    %c0_i32 = arith.constant 0 : i32
    %c0_i32_0 = arith.constant 0 : i32
    %c0_i32_1 = arith.constant 0 : i32
    return %arg0, %c0_i32, %c0_i32_0 : i32, i32, i32
  }
  func.func @transform_1(%arg0: i32) -> (i32, i32) {
    %c0_i32 = arith.constant 0 : i32
    %c0_i32_0 = arith.constant 0 : i32
    %c0_i32_1 = arith.constant 0 : i32
    return %c0_i32, %c0_i32_0 : i32, i32
  }
  func.func @transform_2(%arg0: i32) -> (i32, i32) {
    %c0_i32 = arith.constant 0 : i32
    %c0_i32_0 = arith.constant 0 : i32
    %c0_i32_1 = arith.constant 0 : i32
    return %c0_i32, %c0_i32_0 : i32, i32
  }
  func.func @transform_3(%arg0: i32) -> (i32, i32) {
    %c0_i32 = arith.constant 0 : i32
    %c0_i32_0 = arith.constant 0 : i32
    %c0_i32_1 = arith.constant 0 : i32
    return %c0_i32, %c0_i32_0 : i32, i32
  }
  func.func @transform_4(%arg0: i32) -> (i32, i32) {
    %c0_i32 = arith.constant 0 : i32
    %c0_i32_0 = arith.constant 0 : i32
    %c0_i32_1 = arith.constant 0 : i32
    return %c0_i32, %c0_i32_0 : i32, i32
  }
  func.func @transform_5(%arg0: i32) -> (i32, i32, i32) {
    %c0_i32 = arith.constant 0 : i32
    %c0_i32_0 = arith.constant 0 : i32
    %c0_i32_1 = arith.constant 0 : i32
    return %arg0, %c0_i32, %c0_i32_0 : i32, i32, i32
  }
}

module attributes {stable_mosaic.version = 11 : i64} {
  func.func @_head_kernel(%arg0: i32, %arg1: memref<2x6144xbf16, #tpu.memory_space<vmem>>, %arg2: memref<2x5xf32, #tpu.memory_space<vmem>>, %arg3: memref<5x256xf32, #tpu.memory_space<vmem>>, %arg4: memref<1x256xf32, #tpu.memory_space<vmem>>, %arg5: memref<256x128xf32, #tpu.memory_space<vmem>>, %arg6: memref<1x128xf32, #tpu.memory_space<vmem>>, %arg7: memref<128x64xf32, #tpu.memory_space<vmem>>, %arg8: memref<1x64xf32, #tpu.memory_space<vmem>>, %arg9: memref<6144x128xbf16, #tpu.memory_space<vmem>>, %arg10: memref<64x128xbf16, #tpu.memory_space<vmem>>, %arg11: memref<1x128xf32, #tpu.memory_space<vmem>>, %arg12: memref<128x8xf32, #tpu.memory_space<vmem>>, %arg13: memref<1x8xf32, #tpu.memory_space<vmem>>, %arg14: memref<2x8xf32, #tpu.memory_space<vmem>>) attributes {dimension_semantics = [#tpu.dimension_semantics<parallel>], iteration_bounds = array<i64: 1>, scalar_prefetch = 0 : i64, scratch_operands = 0 : i64, tpu.core_type = #tpu.core_type<tc>, window_params = [{transform_indices = @transform_0, window_bounds = array<i64: 2, 6144>}, {transform_indices = @transform_1, window_bounds = array<i64: 2, 5>}, {pipeline_mode = #tpu.pipeline_mode<synchronous>, transform_indices = @transform_2, window_bounds = array<i64: 5, 256>}, {pipeline_mode = #tpu.pipeline_mode<synchronous>, transform_indices = @transform_3, window_bounds = array<i64: 1, 256>}, {pipeline_mode = #tpu.pipeline_mode<synchronous>, transform_indices = @transform_4, window_bounds = array<i64: 256, 128>}, {pipeline_mode = #tpu.pipeline_mode<synchronous>, transform_indices = @transform_5, window_bounds = array<i64: 1, 128>}, {pipeline_mode = #tpu.pipeline_mode<synchronous>, transform_indices = @transform_6, window_bounds = array<i64: 128, 64>}, {pipeline_mode = #tpu.pipeline_mode<synchronous>, transform_indices = @transform_7, window_bounds = array<i64: 1, 64>}, {pipeline_mode = #tpu.pipeline_mode<synchronous>, transform_indices = @transform_8, window_bounds = array<i64: 6144, 128>}, {pipeline_mode = #tpu.pipeline_mode<synchronous>, transform_indices = @transform_9, window_bounds = array<i64: 64, 128>}, {pipeline_mode = #tpu.pipeline_mode<synchronous>, transform_indices = @transform_10, window_bounds = array<i64: 1, 128>}, {pipeline_mode = #tpu.pipeline_mode<synchronous>, transform_indices = @transform_11, window_bounds = array<i64: 128, 8>}, {pipeline_mode = #tpu.pipeline_mode<synchronous>, transform_indices = @transform_12, window_bounds = array<i64: 1, 8>}, {transform_indices = @transform_13, window_bounds = array<i64: 2, 8>}]} {
    %c0 = arith.constant 0 : index
    %c0_0 = arith.constant 0 : index
    %0 = vector.load %arg2[%c0, %c0_0] : memref<2x5xf32, #tpu.memory_space<vmem>>, vector<2x5xf32>
    %c0_1 = arith.constant 0 : index
    %c0_2 = arith.constant 0 : index
    %1 = vector.load %arg3[%c0_1, %c0_2] : memref<5x256xf32, #tpu.memory_space<vmem>>, vector<5x256xf32>
    %cst = arith.constant dense<0.000000e+00> : vector<2x256xf32>
    %2 = tpu.matmul %0, %1, %cst {dimension_numbers = #tpu.dot_dimension_numbers<[1], [0], [0], [1], [0, 0, 1, 1], [], []>} : vector<2x5xf32>, vector<5x256xf32>, vector<2x256xf32> -> vector<2x256xf32>
    %c0_3 = arith.constant 0 : index
    %c0_4 = arith.constant 0 : index
    %3 = vector.load %arg4[%c0_3, %c0_4] : memref<1x256xf32, #tpu.memory_space<vmem>>, vector<1x256xf32>
    %4 = vector.broadcast %3 : vector<1x256xf32> to vector<2x256xf32>
    %5 = arith.addf %2, %4 : vector<2x256xf32>
    %cst_5 = arith.constant 0.000000e+00 : f32
    %6 = vector.broadcast %cst_5 : f32 to vector<2x256xf32>
    %7 = arith.maximumf %5, %6 : vector<2x256xf32>
    %c0_6 = arith.constant 0 : index
    %c0_7 = arith.constant 0 : index
    %8 = vector.load %arg5[%c0_6, %c0_7] : memref<256x128xf32, #tpu.memory_space<vmem>>, vector<256x128xf32>
    %cst_8 = arith.constant dense<0.000000e+00> : vector<2x128xf32>
    %9 = tpu.matmul %7, %8, %cst_8 {dimension_numbers = #tpu.dot_dimension_numbers<[1], [0], [0], [1], [0, 0, 1, 1], [], []>} : vector<2x256xf32>, vector<256x128xf32>, vector<2x128xf32> -> vector<2x128xf32>
    %c0_9 = arith.constant 0 : index
    %c0_10 = arith.constant 0 : index
    %10 = vector.load %arg6[%c0_9, %c0_10] : memref<1x128xf32, #tpu.memory_space<vmem>>, vector<1x128xf32>
    %11 = vector.broadcast %10 : vector<1x128xf32> to vector<2x128xf32>
    %12 = arith.addf %9, %11 : vector<2x128xf32>
    %cst_11 = arith.constant 0.000000e+00 : f32
    %13 = vector.broadcast %cst_11 : f32 to vector<2x128xf32>
    %14 = arith.maximumf %12, %13 : vector<2x128xf32>
    %c0_12 = arith.constant 0 : index
    %c0_13 = arith.constant 0 : index
    %15 = vector.load %arg7[%c0_12, %c0_13] : memref<128x64xf32, #tpu.memory_space<vmem>>, vector<128x64xf32>
    %cst_14 = arith.constant dense<0.000000e+00> : vector<2x64xf32>
    %16 = tpu.matmul %14, %15, %cst_14 {dimension_numbers = #tpu.dot_dimension_numbers<[1], [0], [0], [1], [0, 0, 1, 1], [], []>} : vector<2x128xf32>, vector<128x64xf32>, vector<2x64xf32> -> vector<2x64xf32>
    %c0_15 = arith.constant 0 : index
    %c0_16 = arith.constant 0 : index
    %17 = vector.load %arg8[%c0_15, %c0_16] : memref<1x64xf32, #tpu.memory_space<vmem>>, vector<1x64xf32>
    %18 = vector.broadcast %17 : vector<1x64xf32> to vector<2x64xf32>
    %19 = arith.addf %16, %18 : vector<2x64xf32>
    %cst_17 = arith.constant 0.000000e+00 : f32
    %20 = vector.broadcast %cst_17 : f32 to vector<2x64xf32>
    %21 = arith.maximumf %19, %20 : vector<2x64xf32>
    %c0_18 = arith.constant 0 : index
    %c0_19 = arith.constant 0 : index
    %22 = vector.load %arg1[%c0_18, %c0_19] : memref<2x6144xbf16, #tpu.memory_space<vmem>>, vector<2x6144xbf16>
    %c0_20 = arith.constant 0 : index
    %c0_21 = arith.constant 0 : index
    %23 = vector.load %arg9[%c0_20, %c0_21] : memref<6144x128xbf16, #tpu.memory_space<vmem>>, vector<6144x128xbf16>
    %cst_22 = arith.constant dense<0.000000e+00> : vector<2x128xf32>
    %24 = tpu.matmul %22, %23, %cst_22 {dimension_numbers = #tpu.dot_dimension_numbers<[1], [0], [0], [1], [0, 0, 1, 1], [], []>} : vector<2x6144xbf16>, vector<6144x128xbf16>, vector<2x128xf32> -> vector<2x128xf32>
    %25 = arith.truncf %21 : vector<2x64xf32> to vector<2x64xbf16>
    %c0_23 = arith.constant 0 : index
    %c0_24 = arith.constant 0 : index
    %26 = vector.load %arg10[%c0_23, %c0_24] : memref<64x128xbf16, #tpu.memory_space<vmem>>, vector<64x128xbf16>
    %cst_25 = arith.constant dense<0.000000e+00> : vector<2x128xf32>
    %27 = tpu.matmul %25, %26, %cst_25 {dimension_numbers = #tpu.dot_dimension_numbers<[1], [0], [0], [1], [0, 0, 1, 1], [], []>} : vector<2x64xbf16>, vector<64x128xbf16>, vector<2x128xf32> -> vector<2x128xf32>
    %28 = arith.addf %24, %27 : vector<2x128xf32>
    %c0_26 = arith.constant 0 : index
    %c0_27 = arith.constant 0 : index
    %29 = vector.load %arg11[%c0_26, %c0_27] : memref<1x128xf32, #tpu.memory_space<vmem>>, vector<1x128xf32>
    %30 = vector.broadcast %29 : vector<1x128xf32> to vector<2x128xf32>
    %31 = arith.addf %28, %30 : vector<2x128xf32>
    %cst_28 = arith.constant 0.000000e+00 : f32
    %32 = vector.broadcast %cst_28 : f32 to vector<2x128xf32>
    %33 = arith.maximumf %31, %32 : vector<2x128xf32>
    %c0_29 = arith.constant 0 : index
    %c0_30 = arith.constant 0 : index
    %34 = vector.load %arg12[%c0_29, %c0_30] : memref<128x8xf32, #tpu.memory_space<vmem>>, vector<128x8xf32>
    %cst_31 = arith.constant dense<0.000000e+00> : vector<2x8xf32>
    %35 = tpu.matmul %33, %34, %cst_31 {dimension_numbers = #tpu.dot_dimension_numbers<[1], [0], [0], [1], [0, 0, 1, 1], [], []>} : vector<2x128xf32>, vector<128x8xf32>, vector<2x8xf32> -> vector<2x8xf32>
    %c0_32 = arith.constant 0 : index
    %c0_33 = arith.constant 0 : index
    %36 = vector.load %arg13[%c0_32, %c0_33] : memref<1x8xf32, #tpu.memory_space<vmem>>, vector<1x8xf32>
    %37 = vector.broadcast %36 : vector<1x8xf32> to vector<2x8xf32>
    %38 = arith.addf %35, %37 : vector<2x8xf32>
    %c0_34 = arith.constant 0 : index
    %c0_35 = arith.constant 0 : index
    %39 = vector.load %arg14[%c0_34, %c0_35] : memref<2x8xf32, #tpu.memory_space<vmem>>, vector<2x8xf32>
    tpu.vector_store %arg14[%c0_34, %c0_35], %38 {strides = array<i32>} : memref<2x8xf32, #tpu.memory_space<vmem>>, vector<2x8xf32>,
    return
  }
  func.func @transform_0(%arg0: i32) -> (i32, i32) {
    %c0_i32 = arith.constant 0 : i32
    %c0_i32_0 = arith.constant 0 : i32
    return %arg0, %c0_i32 : i32, i32
  }
  func.func @transform_1(%arg0: i32) -> (i32, i32) {
    %c0_i32 = arith.constant 0 : i32
    %c0_i32_0 = arith.constant 0 : i32
    return %arg0, %c0_i32 : i32, i32
  }
  func.func @transform_2(%arg0: i32) -> (i32, i32) {
    %c0_i32 = arith.constant 0 : i32
    %c0_i32_0 = arith.constant 0 : i32
    %c0_i32_1 = arith.constant 0 : i32
    return %c0_i32, %c0_i32_0 : i32, i32
  }
  func.func @transform_3(%arg0: i32) -> (i32, i32) {
    %c0_i32 = arith.constant 0 : i32
    %c0_i32_0 = arith.constant 0 : i32
    %c0_i32_1 = arith.constant 0 : i32
    return %c0_i32, %c0_i32_0 : i32, i32
  }
  func.func @transform_4(%arg0: i32) -> (i32, i32) {
    %c0_i32 = arith.constant 0 : i32
    %c0_i32_0 = arith.constant 0 : i32
    %c0_i32_1 = arith.constant 0 : i32
    return %c0_i32, %c0_i32_0 : i32, i32
  }
  func.func @transform_5(%arg0: i32) -> (i32, i32) {
    %c0_i32 = arith.constant 0 : i32
    %c0_i32_0 = arith.constant 0 : i32
    %c0_i32_1 = arith.constant 0 : i32
    return %c0_i32, %c0_i32_0 : i32, i32
  }
  func.func @transform_6(%arg0: i32) -> (i32, i32) {
    %c0_i32 = arith.constant 0 : i32
    %c0_i32_0 = arith.constant 0 : i32
    %c0_i32_1 = arith.constant 0 : i32
    return %c0_i32, %c0_i32_0 : i32, i32
  }
  func.func @transform_7(%arg0: i32) -> (i32, i32) {
    %c0_i32 = arith.constant 0 : i32
    %c0_i32_0 = arith.constant 0 : i32
    %c0_i32_1 = arith.constant 0 : i32
    return %c0_i32, %c0_i32_0 : i32, i32
  }
  func.func @transform_8(%arg0: i32) -> (i32, i32) {
    %c0_i32 = arith.constant 0 : i32
    %c0_i32_0 = arith.constant 0 : i32
    %c0_i32_1 = arith.constant 0 : i32
    return %c0_i32, %c0_i32_0 : i32, i32
  }
  func.func @transform_9(%arg0: i32) -> (i32, i32) {
    %c0_i32 = arith.constant 0 : i32
    %c0_i32_0 = arith.constant 0 : i32
    %c0_i32_1 = arith.constant 0 : i32
    return %c0_i32, %c0_i32_0 : i32, i32
  }
  func.func @transform_10(%arg0: i32) -> (i32, i32) {
    %c0_i32 = arith.constant 0 : i32
    %c0_i32_0 = arith.constant 0 : i32
    %c0_i32_1 = arith.constant 0 : i32
    return %c0_i32, %c0_i32_0 : i32, i32
  }
  func.func @transform_11(%arg0: i32) -> (i32, i32) {
    %c0_i32 = arith.constant 0 : i32
    %c0_i32_0 = arith.constant 0 : i32
    %c0_i32_1 = arith.constant 0 : i32
    return %c0_i32, %c0_i32_0 : i32, i32
  }
  func.func @transform_12(%arg0: i32) -> (i32, i32) {
    %c0_i32 = arith.constant 0 : i32
    %c0_i32_0 = arith.constant 0 : i32
    %c0_i32_1 = arith.constant 0 : i32
    return %c0_i32, %c0_i32_0 : i32, i32
  }
  func.func @transform_13(%arg0: i32) -> (i32, i32) {
    %c0_i32 = arith.constant 0 : i32
    %c0_i32_0 = arith.constant 0 : i32
    return %arg0, %c0_i32 : i32, i32
  }
}

</mosaic_0001>

<bundles_post_ra>
// kernel: dueling_dqn_forward.3
= control target key start
LH: loop header
LB: loop body
LE: loop exit
PB: predicated region body
PF: predicated region fallthrough
CT: control target
= control target key end

     0   :  { %s2383_s12 = smov 0   ;;  %s3074_s0 = inlined_call_operand.vmem [shape: bf16[1482,192], index: 0, kind: input, shape index: {}]   ;;  %s3075_s1 = inlined_call_operand.vmem [shape: bf16[192,32], index: 1, kind: input, shape index: {}]   ;;  %s3076_s2 = inlined_call_operand.vmem [shape: f32[1,32], index: 2, kind: input, shape index: {}]   ;;  %s3077_s3 = inlined_call_operand.vmem [shape: bf16[1482,32], index: 3, kind: output, shape index: {}]  }
   0x1 LB: > { %s1755_s13 = sadd.s32 4294967295, %s2361_s12   ;;  %p1759_p0 = scmp.ge.s32.totalorder %s2361_s12, 1  ;;  %s2361_s12 = sphi %s2383_s12, %s13_s12  }
   0x2   : > { %p139_p1 = scmp.lt.s32.totalorder %s2361_s12, 3 }
   0x4   : > { %p140_p2 = pnand %p1759_p0, %p139_p1 }
   0x5   : > { %s164_s18 = smul.u32 (!%p140_p2), 93, %s1755_s13 }
   0x6   : > { %143 = sbr.rel (%p140_p2) target bundleno = 553 (0x229), region = 32 }
   0x7   : > { %p165_p3 = scmp.lt.s32.totalorder (!%p140_p2), %s164_s18, 185 }
   0xb   : > { %v2328_v0 = vld [vmem:[%s3075_s1 + $0x38] sm:$0xff]  ;;  %v2327_v2 = vld [vmem:[%s3075_s1 + $0x30] sm:$0xff]  ;;  %s3079_s18 = smov (!%p165_p3, %s164_s18), 185  ;;  %v2326_v4 = vld [vmem:[%s3075_s1 + $0x28] sm:$0xff]  ;;  %vm791_vm0 = vcmask 523264   ;;  %vm1605_vm1 = vcmask 257024  }
   0xc   : > { %v2332_v1 = vld [vmem:[%s3075_s1 + $0x58] sm:$0xff]  ;;  %933 = vmatpush.bf16.msra.mxu0 %v2328_v0  ;;  %2333 = vmatpush.bf16.msra.mxu2 %v2328_v0  ;;  %v2331_v3 = vld [vmem:[%s3075_s1 + $0x50] sm:$0xff]  ;;  %s2228_s25 = sshll.u32 %s3079_s18, 3  ;;  %v2330_v5 = vld [vmem:[%s3075_s1 + $0x48] sm:$0xff]  ;;  %s1762_s20 = sshll.u32 %s3079_s18, 2 }
   0xd   : > { %1180 = vmatpush.bf16.msra.mxu1 %v2332_v1  ;;  %2341 = vmatpush.bf16.msra.mxu3 %v2332_v1  ;;  %s2415_s30 = scalar_lea.vmem %s3074_s0, %s2228_s25  ;;  %v2325_v6 = vld [vmem:[%s3075_s1 + $0x20] sm:$0xff]  ;;  %v2324_v13 = vld [vmem:[%s3075_s1 + $0x18] sm:$0xff]  ;;  %v2323_v15 = vld [vmem:[%s3075_s1 + $0x10] sm:$0xff]  ;;  %s2545_s23 = scalar_lea.vmem %s3077_s3, %s1762_s20 }
   0xe   : > { %v2329_v7 = vld [vmem:[%s3075_s1 + $0x40] sm:$0xff]  ;;  %v1767_v9 = vld [vmem:[%s2415_s30 + $0x8] sm:$0xf0]  ;;  %v2230_v19 = vld [vmem:[%s2415_s30 + $0x4] sm:$0xf0] }
   0xf   : > { %v2229_v8 = vld [vmem:[%s2415_s30 + $0x4] sm:$0xf]  ;;  %v1959_v11 = vld [vmem:[%s2415_s30 + $0x188] sm:$0xf0]  ;;  %v1765_v18 = vld [vmem:[%s2415_s30] sm:$0xf] }
  0x10   : > { %934 = vmatpush.bf16.msra.mxu0 %v2327_v2  ;;  %2334 = vmatpush.bf16.msra.mxu2 %v2327_v2  ;;  %v2277_v10 = vld [vmem:[%s2415_s30 + $0x184] sm:$0xf]  ;;  %v1770_v12 = vor.u32 %v2229_v8, %v1767_v9  ;;  %v2322_v16 = vld [vmem:[%s3075_s1 + $0x8] sm:$0xff]  ;;  %v1949_v20 = vld [vmem:[%s2415_s30 + $0x170] sm:$0xf]  ;;  %v1766_v26 = vor.u32 %v2230_v19, %v1765_v18 }
  0x11   : > { %1181 = vmatpush.bf16.msra.mxu1 %v2331_v3  ;;  %2342 = vmatpush.bf16.msra.mxu3 %v2331_v3  ;;  %v1962_v14 = vor.u32 %v2277_v10, %v1959_v11  ;;  %v2321_v17 = vld [vmem:[%s3075_s1] sm:$0xff]  ;;  %v2276_v21 = vld [vmem:[%s2415_s30 + $0x174] sm:$0xf0]  ;;  %v2231_v22 = vld [vmem:[%s2415_s30 + $0x14] sm:$0xf] }
  0x12   : > { %v1775_v23 = vld [vmem:[%s2415_s30 + $0x18] sm:$0xf0]  ;;  %v2279_v24 = vld [vmem:[%s2415_s30 + $0x194] sm:$0xf]  ;;  %v1950_v27 = vor.u32 %v2276_v21, %v1949_v20  ;;  %v1773_v30 = vld [vmem:[%s2415_s30 + $0x10] sm:$0xf] }
  0x13   : > { %v1967_v25 = vld [vmem:[%s2415_s30 + $0x198] sm:$0xf0]  ;;  %v1778_v28 = vor.u32 %v2231_v22, %v1775_v23  ;;  %v2232_v31 = vld [vmem:[%s2415_s30 + $0x14] sm:$0xf0]  ;;  %v1957_v32 = vld [vmem:[%s2415_s30 + $0x180] sm:$0xf] }
  0x14   : > { %935 = vmatpush.bf16.msra.mxu0 %v2326_v4  ;;  %2335 = vmatpush.bf16.msra.mxu2 %v2326_v4  ;;  %v1970_v29 = vor.u32 %v2279_v24, %v1967_v25  ;;  %v2278_v33 = vld [vmem:[%s2415_s30 + $0x184] sm:$0xf0]  ;;  %v2233_v34 = vld [vmem:[%s2415_s30 + $0x24] sm:$0xf]  ;;  %v1783_v35 = vld [vmem:[%s2415_s30 + $0x28] sm:$0xf0]  ;;  %v1774_v38 = vor.u32 %v2232_v31, %v1773_v30 }
  0x15   : > { %1182 = vmatpush.bf16.msra.mxu1 %v2330_v5  ;;  %2343 = vmatpush.bf16.msra.mxu3 %v2330_v5  ;;  %v2281_v36 = vld [vmem:[%s2415_s30 + $0x1a4] sm:$0xf]  ;;  %v1975_v37 = vld [vmem:[%s2415_s30 + $0x1a8] sm:$0xf0]  ;;  %v1958_v39 = vor.u32 %v2278_v33, %v1957_v32  ;;  %v1786_v40 = vor.u32 %v2233_v34, %v1783_v35  ;;  %v1781_v42 = vld [vmem:[%s2415_s30 + $0x20] sm:$0xf] }
  0x16   : > { %v1978_v41 = vor.u32 %v2281_v36, %v1975_v37  ;;  %v2234_v43 = vld [vmem:[%s2415_s30 + $0x24] sm:$0xf0]  ;;  %v1965_v44 = vld [vmem:[%s2415_s30 + $0x190] sm:$0xf]  ;;  %v2280_v45 = vld [vmem:[%s2415_s30 + $0x194] sm:$0xf0] }
  0x17   : > { %v2235_v46 = vld [vmem:[%s2415_s30 + $0x34] sm:$0xf]  ;;  %v1791_v47 = vld [vmem:[%s2415_s30 + $0x38] sm:$0xf0]  ;;  %v1782_v50 = vor.u32 %v2234_v43, %v1781_v42  ;;  %v1966_v51 = vor.u32 %v2280_v45, %v1965_v44  ;;  %v1789_v54 = vld [vmem:[%s2415_s30 + $0x30] sm:$0xf] }
  0x18   : > { %936 = vmatpush.bf16.msra.mxu0 %v2325_v6  ;;  %2336 = vmatpush.bf16.msra.mxu2 %v2325_v6  ;;  %v2283_v48 = vld [vmem:[%s2415_s30 + $0x1b4] sm:$0xf]  ;;  %v1983_v49 = vld [vmem:[%s2415_s30 + $0x1b8] sm:$0xf0]  ;;  %v1794_v52 = vor.u32 %v2235_v46, %v1791_v47  ;;  %v2236_v55 = vld [vmem:[%s2415_s30 + $0x34] sm:$0xf0] }
  0x19   : > { %1183 = vmatpush.bf16.msra.mxu1 %v2329_v7  ;;  %2344 = vmatpush.bf16.msra.mxu3 %v2329_v7  ;;  %v1986_v53 = vor.u32 %v2283_v48, %v1983_v49  ;;  %v1973_v56 = vld [vmem:[%s2415_s30 + $0x1a0] sm:$0xf]  ;;  %v2282_v57 = vld [vmem:[%s2415_s30 + $0x1a4] sm:$0xf0]  ;;  %v2237_v58 = vld [vmem:[%s2415_s30 + $0x44] sm:$0xf]  ;;  %v1790_v62 = vor.u32 %v2236_v55, %v1789_v54 }
  0x1a   : > { %v1799_v59 = vld [vmem:[%s2415_s30 + $0x48] sm:$0xf0]  ;;  %v2285_v60 = vld [vmem:[%s2415_s30 + $0x1c4] sm:$0xf]  ;;  %v1974_v63 = vor.u32 %v2282_v57, %v1973_v56  ;;  %v1797_v2 = vld [vmem:[%s2415_s30 + $0x40] sm:$0xf] }
  0x1b   : > { %v1991_v61 = vld [vmem:[%s2415_s30 + $0x1c8] sm:$0xf0]  ;;  %v1802_v0 = vor.u32 %v2237_v58, %v1799_v59  ;;  %v2238_v3 = vld [vmem:[%s2415_s30 + $0x44] sm:$0xf0]  ;;  %v1981_v4 = vld [vmem:[%s2415_s30 + $0x1b0] sm:$0xf] }
  0x1c   : > { %2179 = vmatmul.msk.bf16.vlgmr.msra.gmra.mxu1 %vm791_vm0, %v1770_v12  ;;  %937 = vmatpush.bf16.msra.mxu0 %v2324_v13  ;;  %v1994_v1 = vor.u32 %v2285_v60, %v1991_v61  ;;  %v2284_v5 = vld [vmem:[%s2415_s30 + $0x1b4] sm:$0xf0]  ;;  %v2239_v6 = vld [vmem:[%s2415_s30 + $0x54] sm:$0xf]  ;;  %v1807_v7 = vld [vmem:[%s2415_s30 + $0x58] sm:$0xf0]  ;;  %v1798_v10 = vor.u32 %v2238_v3, %v1797_v2 }
  0x1d   : > { %2337 = vmatpush.bf16.msra.mxu2 %v2324_v13  ;;  %2203 = vmatmul.msk.bf16.vlgmr.msra.gmra.mxu3 %vm791_vm0, %v1962_v14  ;;  %v2287_v8 = vld [vmem:[%s2415_s30 + $0x1d4] sm:$0xf]  ;;  %v1999_v9 = vld [vmem:[%s2415_s30 + $0x1d8] sm:$0xf0]  ;;  %v1982_v11 = vor.u32 %v2284_v5, %v1981_v4  ;;  %v1810_v12 = vor.u32 %v2239_v6, %v1807_v7  ;;  %v1805_v14 = vld [vmem:[%s2415_s30 + $0x50] sm:$0xf] }
  0x1e   : > { %v2002_v13 = vor.u32 %v2287_v8, %v1999_v9  ;;  %v2241_v18 = vld [vmem:[%s2415_s30 + $0x64] sm:$0xf]  ;;  %v1815_v19 = vld [vmem:[%s2415_s30 + $0x68] sm:$0xf0]  ;;  %v2243_v30 = vld [vmem:[%s2415_s30 + $0x74] sm:$0xf] }
  0x1f   : > { %v2289_v20 = vld [vmem:[%s2415_s30 + $0x1e4] sm:$0xf]  ;;  %v2007_v21 = vld [vmem:[%s2415_s30 + $0x1e8] sm:$0xf0]  ;;  %v1818_v24 = vor.u32 %v2241_v18, %v1815_v19  ;;  %v1823_v31 = vld [vmem:[%s2415_s30 + $0x78] sm:$0xf0] }
  0x20   : > { %938 = vmatpush.bf16.msra.mxu0 %v2323_v15  ;;  %v2010_v25 = vor.u32 %v2289_v20, %v2007_v21  ;;  %v2291_v32 = vld [vmem:[%s2415_s30 + $0x1f4] sm:$0xf]  ;;  %v2015_v33 = vld [vmem:[%s2415_s30 + $0x1f8] sm:$0xf0]  ;;  %v1826_v36 = vor.u32 %v2243_v30, %v1823_v31  ;;  %v2245_v42 = vld [vmem:[%s2415_s30 + $0x84] sm:$0xf] }
  0x21   : > { %2338 = vmatpush.bf16.msra.mxu2 %v2323_v15  ;;  %v2240_v15 = vld [vmem:[%s2415_s30 + $0x54] sm:$0xf0]  ;;  %v2018_v37 = vor.u32 %v2291_v32, %v2015_v33  ;;  %v1831_v43 = vld [vmem:[%s2415_s30 + $0x88] sm:$0xf0]  ;;  %v2293_v44 = vld [vmem:[%s2415_s30 + $0x204] sm:$0xf] }
  0x22   : > { %v1806_v22 = vor.u32 %v2240_v15, %v1805_v14  ;;  %v2023_v45 = vld [vmem:[%s2415_s30 + $0x208] sm:$0xf0]  ;;  %v1834_v48 = vor.u32 %v2245_v42, %v1831_v43  ;;  %v1829_v54 = vld [vmem:[%s2415_s30 + $0x80] sm:$0xf]  ;;  %v2246_v55 = vld [vmem:[%s2415_s30 + $0x84] sm:$0xf0] }
  0x23   : > { %v2013_v56 = vld [vmem:[%s2415_s30 + $0x1f0] sm:$0xf]  ;;  %v2292_v57 = vld [vmem:[%s2415_s30 + $0x1f4] sm:$0xf0]  ;;  %v2247_v58 = vld [vmem:[%s2415_s30 + $0x94] sm:$0xf] }
  0x24   : > { %939 = vmatpush.bf16.msra.mxu0 %v2322_v16  ;;  %v1839_v59 = vld [vmem:[%s2415_s30 + $0x98] sm:$0xf0]  ;;  %v2295_v60 = vld [vmem:[%s2415_s30 + $0x214] sm:$0xf]  ;;  %v1837_v15 = vld [vmem:[%s2415_s30 + $0x90] sm:$0xf] }
  0x25   : > { %2339 = vmatpush.bf16.msra.mxu2 %v2322_v16  ;;  %v1989_v16 = vld [vmem:[%s2415_s30 + $0x1c0] sm:$0xf]  ;;  %v2031_v61 = vld [vmem:[%s2415_s30 + $0x218] sm:$0xf0]  ;;  %v2294_v18 = vld [vmem:[%s2415_s30 + $0x204] sm:$0xf0] }
  0x26   : > { %v2034_v5 = vor.u32 %v2295_v60, %v2031_v61  ;;  %v2249_v20 = vld [vmem:[%s2415_s30 + $0xa4] sm:$0xf]  ;;  %v1847_v21 = vld [vmem:[%s2415_s30 + $0xa8] sm:$0xf0] }
  0x28   : > { %940 = vmatpush.bf16.msra.mxu0 %v2321_v17 }
  0x29   : > { %2340 = vmatpush.bf16.msra.mxu2 %v2321_v17  ;;  %v2286_v17 = vld [vmem:[%s2415_s30 + $0x1c4] sm:$0xf0] }
  0x2a   : > { %v1990_v23 = vor.u32 %v2286_v17, %v1989_v16  ;;  %v2248_v16 = vld [vmem:[%s2415_s30 + $0x94] sm:$0xf0]  ;;  %v2021_v17 = vld [vmem:[%s2415_s30 + $0x200] sm:$0xf] }
  0x2b   : > { %941 = vmatmul.bf16.vlgmr.msra.gmra.mxu0 %v1766_v26  ;;  %v1813_v26 = vld [vmem:[%s2415_s30 + $0x60] sm:$0xf] }
  0x2c   : > { %1056 = vmatmul.bf16.vlgmr.msra.gmra.mxu2 %v1950_v27  ;;  %2180 = vmatmul.msk.bf16.gmra.mxu1 %vm791_vm0, %v1778_v28  ;;  %v2242_v27 = vld [vmem:[%s2415_s30 + $0x64] sm:$0xf0]  ;;  %v1997_v28 = vld [vmem:[%s2415_s30 + $0x1d0] sm:$0xf] }
  0x2d   : > { %2204 = vmatmul.msk.bf16.gmra.mxu3 %vm791_vm0, %v1970_v29  ;;  %v2288_v29 = vld [vmem:[%s2415_s30 + $0x1d4] sm:$0xf0]  ;;  %v1814_v34 = vor.u32 %v2242_v27, %v1813_v26  ;;  %v1838_v26 = vor.u32 %v2248_v16, %v1837_v15 }
  0x2e   : > { %v1998_v35 = vor.u32 %v2288_v29, %v1997_v28  ;;  %v2022_v28 = vor.u32 %v2294_v18, %v2021_v17  ;;  %v1850_v29 = vor.u32 %v2249_v20, %v1847_v21  ;;  %v1853_v20 = vld [vmem:[%s2415_s30 + $0xb0] sm:$0xf]  ;;  %v2252_v21 = vld [vmem:[%s2415_s30 + $0xb4] sm:$0xf0] }
  0x3b   : > { %946 = vmatmul.bf16.gmra.mxu0 %v1774_v38  ;;  %v1821_v38 = vld [vmem:[%s2415_s30 + $0x70] sm:$0xf] }
  0x3c   : > { %1061 = vmatmul.bf16.gmra.mxu2 %v1958_v39  ;;  %2181 = vmatmul.msk.bf16.gmra.mxu1 %vm791_vm0, %v1786_v40  ;;  %v2244_v39 = vld [vmem:[%s2415_s30 + $0x74] sm:$0xf0]  ;;  %v2005_v40 = vld [vmem:[%s2415_s30 + $0x1e0] sm:$0xf] }
  0x3d   : > { %2205 = vmatmul.msk.bf16.gmra.mxu3 %vm791_vm0, %v1978_v41  ;;  %v2290_v41 = vld [vmem:[%s2415_s30 + $0x1e4] sm:$0xf0]  ;;  %v1822_v46 = vor.u32 %v2244_v39, %v1821_v38 }
  0x3e   : > { %v2006_v47 = vor.u32 %v2290_v41, %v2005_v40 }
  0x4b   : > { %951 = vmatmul.bf16.gmra.mxu0 %v1782_v50  ;;  %v2026_v50 = vor.u32 %v2293_v44, %v2023_v45  ;;  %v1845_v45 = vld [vmem:[%s2415_s30 + $0xa0] sm:$0xf] }
  0x4c   : > { %1066 = vmatmul.bf16.gmra.mxu2 %v1966_v51  ;;  %2182 = vmatmul.msk.bf16.gmra.mxu1 %vm791_vm0, %v1794_v52 }
  0x4d   : > { %2206 = vmatmul.msk.bf16.gmra.mxu3 %vm791_vm0, %v1986_v53  ;;  %v2526_v53 = vld [vmem:[%s3076_s2] ss:$0 sm:$0xff] }
  0x5b   : > { %956 = vmatmul.bf16.gmra.mxu0 %v1790_v62  ;;  %v1830_v62 = vor.u32 %v2246_v55, %v1829_v54  ;;  %v1855_v54 = vld [vmem:[%s2415_s30 + $0xb8] sm:$0xf0] }
  0x5c   : > { %1071 = vmatmul.bf16.gmra.mxu2 %v1974_v63  ;;  %2183 = vmatmul.msk.bf16.gmra.mxu1 %vm791_vm0, %v1802_v0  ;;  %v2014_v0 = vor.u32 %v2292_v57, %v2013_v56  ;;  %v2299_v56 = vld [vmem:[%s2415_s30 + $0x234] sm:$0xf]  ;;  %v2047_v57 = vld [vmem:[%s2415_s30 + $0x238] sm:$0xf0] }
  0x5d   : > { %2207 = vmatmul.msk.bf16.gmra.mxu3 %vm791_vm0, %v1994_v1  ;;  %v1842_v1 = vor.u32 %v2247_v58, %v1839_v59 }
  0x6b   : > { %961 = vmatmul.bf16.gmra.mxu0 %v1798_v10 }
  0x6c   : > { %1076 = vmatmul.bf16.gmra.mxu2 %v1982_v11  ;;  %2184 = vmatmul.msk.bf16.gmra.mxu1 %vm791_vm0, %v1810_v12 }
  0x6d   : > { %2208 = vmatmul.msk.bf16.gmra.mxu3 %vm791_vm0, %v2002_v13 }
  0x7b   : > { %966 = vmatmul.bf16.gmra.mxu0 %v1806_v22  ;;  %v2297_v22 = vld [vmem:[%s2415_s30 + $0x224] sm:$0xf] }
  0x7c   : > { %1081 = vmatmul.bf16.gmra.mxu2 %v1990_v23  ;;  %2185 = vmatmul.msk.bf16.gmra.mxu1 %vm791_vm0, %v1818_v24  ;;  %v2039_v23 = vld [vmem:[%s2415_s30 + $0x228] sm:$0xf0] }
  0x7d   : > { %2209 = vmatmul.msk.bf16.gmra.mxu3 %vm791_vm0, %v2010_v25  ;;  %v2042_v33 = vor.u32 %v2297_v22, %v2039_v23  ;;  %v2037_v23 = vld [vmem:[%s2415_s30 + $0x220] sm:$0xf] }
  0x8b   : > { %971 = vmatmul.bf16.gmra.mxu0 %v1814_v34 }
  0x8c   : > { %1086 = vmatmul.bf16.gmra.mxu2 %v1998_v35  ;;  %2186 = vmatmul.msk.bf16.gmra.mxu1 %vm791_vm0, %v1826_v36 }
  0x8d   : > { %2210 = vmatmul.msk.bf16.gmra.mxu3 %vm791_vm0, %v2018_v37 }
  0x99   : > { %v1185_v49 = vpop.f32.mrf.mxu1 }
  0x9b   : > { %976 = vmatmul.bf16.gmra.mxu0 %v1822_v46  ;;  %v2250_v46 = vld [vmem:[%s2415_s30 + $0xa4] sm:$0xf0] }
  0x9c   : > { %1091 = vmatmul.bf16.gmra.mxu2 %v2006_v47  ;;  %2187 = vmatmul.msk.bf16.gmra.mxu1 %vm791_vm0, %v1834_v48  ;;  %v2029_v48 = vld [vmem:[%s2415_s30 + $0x210] sm:$0xf]  ;;  %v1846_v60 = vor.u32 %v2250_v46, %v1845_v45 }
  0x9d   : > { %2211 = vmatmul.msk.bf16.gmra.mxu3 %vm791_vm0, %v2026_v50 }
  0xa0   : > { %v2521_v51 = vpop.f32.mrf.mxu3 }
  0xa1   : > { %v1187_v52 = vpop.f32.mrf.mxu1 }
  0xa8   : > { %v942_v63 = vpop.f32.mrf.mxu0  ;;  %v2536_v2 = vpop.f32.mrf.mxu3 }
  0xa9   : > { %v943_v3 = vadd.f32 %v2526_v53, %v942_v63  ;;  %v1190_v4 = vpop.f32.mrf.mxu1 }
  0xab   : > { %v1186_v6 = vadd.f32 %v1185_v49, %v943_v3  ;;  %981 = vmatmul.bf16.gmra.mxu0 %v1830_v62  ;;  %v2296_v49 = vld [vmem:[%s2415_s30 + $0x214] sm:$0xf0] }
  0xac   : > { %1096 = vmatmul.bf16.gmra.mxu2 %v2014_v0  ;;  %2188 = vmatmul.msk.bf16.gmra.mxu1 %vm791_vm0, %v1842_v1  ;;  %v2030_v62 = vor.u32 %v2296_v49, %v2029_v48 }
  0xad   : > { %v1419_v7 = vmax.f32 %v1186_v6, 0.0  ;;  %2212 = vmatmul.msk.bf16.gmra.mxu3 %vm791_vm0, %v2034_v5 }
  0xaf   : > { %v1512_v8 = vpack.c.bf16 %v1419_v7, %v1419_v7  ;;  %v2547_v9 = vpop.f32.mrf.mxu2 }
  0xb0   : > { %v944_v10 = vpop.f32.mrf.mxu0  ;;  %v2549_v11 = vpop.f32.mrf.mxu3 }
  0xb1   : > { %1606 = vst.msk [vmem:[%s2545_s23] sm:$0xf] %vm1605_vm1, %v1512_v8  ;;  %v945_v12 = vadd.f32 %v2526_v53, %v944_v10  ;;  %v1192_v13 = vpop.f32.mrf.mxu1 }
  0xb3   : > { %v1188_v14 = vadd.f32 %v1187_v52, %v945_v12  ;;  %v2251_v52 = vld [vmem:[%s2415_s30 + $0xb4] sm:$0xf] }
  0xb4   : > { %v1858_v63 = vor.u32 %v2251_v52, %v1855_v54 }
  0xb5   : > { %v1420_v19 = vmax.f32 %v1188_v14, 0.0 }
  0xb7   : > { %v1513_v24 = vpack.c.bf16 %v1420_v19, %v1420_v19  ;;  %v2562_v25 = vpop.f32.mrf.mxu2 }
  0xb8   : > { %v947_v27 = vpop.f32.mrf.mxu0  ;;  %v2564_v30 = vpop.f32.mrf.mxu3 }
  0xb9   : > { %1607 = vst.msk [vmem:[%s2545_s23 + $0x4] sm:$0xf] %vm1605_vm1, %v1513_v24  ;;  %v948_v31 = vadd.f32 %v2526_v53, %v947_v27  ;;  %v1195_v32 = vpop.f32.mrf.mxu1  ;;  %v2298_v24 = vld [vmem:[%s2415_s30 + $0x224] sm:$0xf0]  ;;  %v2253_v27 = vld [vmem:[%s2415_s30 + $0xc4] sm:$0xf] }
  0xbb   : > { %v1191_v34 = vadd.f32 %v1190_v4, %v948_v31  ;;  %986 = vmatmul.bf16.gmra.mxu0 %v1838_v26  ;;  %v2050_v4 = vor.u32 %v2299_v56, %v2047_v57  ;;  %v2301_v31 = vld [vmem:[%s2415_s30 + $0x244] sm:$0xf] }
  0xbc   : > { %1101 = vmatmul.bf16.gmra.mxu2 %v2022_v28  ;;  %2189 = vmatmul.msk.bf16.gmra.mxu1 %vm791_vm0, %v1850_v29  ;;  %v1863_v28 = vld [vmem:[%s2415_s30 + $0xc8] sm:$0xf0] }
  0xbd   : > { %v1421_v35 = vmax.f32 %v1191_v34, 0.0  ;;  %2213 = vmatmul.msk.bf16.gmra.mxu3 %vm791_vm0, %v2042_v33 }
  0xbf   : > { %v1514_v36 = vpack.c.bf16 %v1421_v35, %v1421_v35  ;;  %v1062_v37 = vpop.f32.mrf.mxu2  ;;  %v1854_v35 = vor.u32 %v2252_v21, %v1853_v20 }
  0xc0   : > { %v1063_v38 = vadd.f32 %v2526_v53, %v1062_v37  ;;  %v949_v39 = vpop.f32.mrf.mxu0  ;;  %v2572_v40 = vpop.f32.mrf.mxu3  ;;  %v2038_v37 = vor.u32 %v2298_v24, %v2037_v23 }
  0xc1   : > { %1608 = vst.msk [vmem:[%s2545_s23 + $0x8] sm:$0xf] %vm1605_vm1, %v1514_v36  ;;  %v950_v41 = vadd.f32 %v2526_v53, %v949_v39  ;;  %v1197_v42 = vpop.f32.mrf.mxu1 }
  0xc2   : > { %v1306_v43 = vadd.f32 %v2521_v51, %v1063_v38  ;;  %v1866_v38 = vor.u32 %v2253_v27, %v1863_v28 }
  0xc3   : > { %v1193_v44 = vadd.f32 %v1192_v13, %v950_v41 }
  0xc4   : > { %v1467_v47 = vmax.f32 %v1306_v43, 0.0 }
  0xc5   : > { %v1422_v50 = vmax.f32 %v1193_v44, 0.0 }
  0xc6   : > { %v1560_v55 = vpack.c.bf16 %v1467_v47, %v1467_v47 }
  0xc7   : > { %v1515_v58 = vpack.c.bf16 %v1422_v50, %v1422_v50  ;;  %v1064_v59 = vpop.f32.mrf.mxu2 }
  0xc8   : > { %1654 = vst.msk [vmem:[%s2545_s23 + $0xc0] sm:$0xf] %vm1605_vm1, %v1560_v55  ;;  %v1065_v51 = vadd.f32 %v2526_v53, %v1064_v59  ;;  %v952_v61 = vpop.f32.mrf.mxu0  ;;  %v2589_v0 = vpop.f32.mrf.mxu3  ;;  %v1861_v59 = vld [vmem:[%s2415_s30 + $0xc0] sm:$0xf] }
  0xc9   : > { %1609 = vst.msk [vmem:[%s2545_s23 + $0xc] sm:$0xf] %vm1605_vm1, %v1515_v58  ;;  %v953_v1 = vadd.f32 %v2526_v53, %v952_v61  ;;  %v1200_v3 = vpop.f32.mrf.mxu1  ;;  %v2045_v61 = vld [vmem:[%s2415_s30 + $0x230] sm:$0xf] }
  0xca   : > { %v1308_v5 = vadd.f32 %v2536_v2, %v1065_v51 }
  0xcb   : > { %v1196_v6 = vadd.f32 %v1195_v32, %v953_v1  ;;  %991 = vmatmul.bf16.gmra.mxu0 %v1846_v60  ;;  %v2055_v32 = vld [vmem:[%s2415_s30 + $0x248] sm:$0xf0]  ;;  %v2254_v60 = vld [vmem:[%s2415_s30 + $0xc4] sm:$0xf0]  ;;  %v2255_v1 = vld [vmem:[%s2415_s30 + $0xd4] sm:$0xf] }
  0xcc   : > { %v1468_v7 = vmax.f32 %v1308_v5, 0.0  ;;  %1106 = vmatmul.bf16.gmra.mxu2 %v2030_v62  ;;  %2190 = vmatmul.msk.bf16.gmra.mxu1 %vm791_vm0, %v1858_v63  ;;  %v2058_v43 = vor.u32 %v2301_v31, %v2055_v32  ;;  %v2300_v62 = vld [vmem:[%s2415_s30 + $0x234] sm:$0xf0]  ;;  %v2303_v5 = vld [vmem:[%s2415_s30 + $0x254] sm:$0xf] }
  0xcd   : > { %v1423_v8 = vmax.f32 %v1196_v6, 0.0  ;;  %2214 = vmatmul.msk.bf16.gmra.mxu3 %vm791_vm0, %v2050_v4  ;;  %v2063_v6 = vld [vmem:[%s2415_s30 + $0x258] sm:$0xf0] }
  0xce   : > { %v1561_v10 = vpack.c.bf16 %v1468_v7, %v1468_v7 }
  0xcf   : > { %v1516_v12 = vpack.c.bf16 %v1423_v8, %v1423_v8  ;;  %v1067_v13 = vpop.f32.mrf.mxu2 }
  0xd0   : > { %1655 = vst.msk [vmem:[%s2545_s23 + $0xc4] sm:$0xf] %vm1605_vm1, %v1561_v10  ;;  %v1068_v2 = vadd.f32 %v2526_v53, %v1067_v13  ;;  %v954_v14 = vpop.f32.mrf.mxu0  ;;  %v2600_v15 = vpop.f32.mrf.mxu3  ;;  %v1862_v10 = vor.u32 %v2254_v60, %v1861_v59  ;;  %v2046_v13 = vor.u32 %v2300_v62, %v2045_v61 }
  0xd1   : > { %1610 = vst.msk [vmem:[%s2545_s23 + $0x10] sm:$0xf] %vm1605_vm1, %v1516_v12  ;;  %v955_v16 = vadd.f32 %v2526_v53, %v954_v14  ;;  %v1202_v17 = vpop.f32.mrf.mxu1 }
  0xd2   : > { %v1311_v18 = vadd.f32 %v2549_v11, %v1068_v2 }
  0xd3   : > { %v1198_v19 = vadd.f32 %v1197_v42, %v955_v16 }
  0xd4   : > { %v1469_v22 = vmax.f32 %v1311_v18, 0.0  ;;  %v2066_v18 = vor.u32 %v2303_v5, %v2063_v6 }
  0xd5   : > { %v1424_v26 = vmax.f32 %v1198_v19, 0.0 }
  0xd6   : > { %v1562_v29 = vpack.c.bf16 %v1469_v22, %v1469_v22 }
  0xd7   : > { %v1517_v33 = vpack.c.bf16 %v1424_v26, %v1424_v26  ;;  %v1069_v34 = vpop.f32.mrf.mxu2 }
  0xd8   : > { %1656 = vst.msk [vmem:[%s2545_s23 + $0xc8] sm:$0xf] %vm1605_vm1, %v1562_v29  ;;  %v1070_v11 = vadd.f32 %v2526_v53, %v1069_v34  ;;  %v957_v36 = vpop.f32.mrf.mxu0  ;;  %v2617_v39 = vpop.f32.mrf.mxu3  ;;  %v1869_v34 = vld [vmem:[%s2415_s30 + $0xd0] sm:$0xf] }
  0xd9   : > { %1611 = vst.msk [vmem:[%s2545_s23 + $0x14] sm:$0xf] %vm1605_vm1, %v1517_v33  ;;  %v958_v41 = vadd.f32 %v2526_v53, %v957_v36  ;;  %v1205_v42 = vpop.f32.mrf.mxu1  ;;  %v2053_v36 = vld [vmem:[%s2415_s30 + $0x240] sm:$0xf] }
  0xda   : > { %v1313_v44 = vadd.f32 %v2564_v30, %v1070_v11 }
  0xdb   : > { %v1201_v45 = vadd.f32 %v1200_v3, %v958_v41  ;;  %996 = vmatmul.bf16.gmra.mxu0 %v1854_v35  ;;  %v1871_v3 = vld [vmem:[%s2415_s30 + $0xd8] sm:$0xf0]  ;;  %v2256_v35 = vld [vmem:[%s2415_s30 + $0xd4] sm:$0xf0]  ;;  %v2257_v41 = vld [vmem:[%s2415_s30 + $0xe4] sm:$0xf] }
  0xdc   : > { %v1470_v46 = vmax.f32 %v1313_v44, 0.0  ;;  %1111 = vmatmul.bf16.gmra.mxu2 %v2038_v37  ;;  %2191 = vmatmul.msk.bf16.gmra.mxu1 %vm791_vm0, %v1866_v38  ;;  %v1874_v2 = vor.u32 %v2255_v1, %v1871_v3  ;;  %v2302_v37 = vld [vmem:[%s2415_s30 + $0x244] sm:$0xf0]  ;;  %v2305_v44 = vld [vmem:[%s2415_s30 + $0x264] sm:$0xf] }
  0xdd   : > { %v1425_v47 = vmax.f32 %v1201_v45, 0.0  ;;  %2215 = vmatmul.msk.bf16.gmra.mxu3 %vm791_vm0, %v2058_v43  ;;  %v2071_v45 = vld [vmem:[%s2415_s30 + $0x268] sm:$0xf0] }
  0xde   : > { %v1563_v48 = vpack.c.bf16 %v1470_v46, %v1470_v46 }
  0xdf   : > { %v1518_v49 = vpack.c.bf16 %v1425_v47, %v1425_v47  ;;  %v1072_v50 = vpop.f32.mrf.mxu2 }
  0xe0   : > { %1657 = vst.msk [vmem:[%s2545_s23 + $0xcc] sm:$0xf] %vm1605_vm1, %v1563_v48  ;;  %v1073_v30 = vadd.f32 %v2526_v53, %v1072_v50  ;;  %v959_v52 = vpop.f32.mrf.mxu0  ;;  %v2628_v54 = vpop.f32.mrf.mxu3  ;;  %v1870_v48 = vor.u32 %v2256_v35, %v1869_v34  ;;  %v2054_v50 = vor.u32 %v2302_v37, %v2053_v36 }
  0xe1   : > { %1612 = vst.msk [vmem:[%s2545_s23 + $0x18] sm:$0xf] %vm1605_vm1, %v1518_v49  ;;  %v960_v55 = vadd.f32 %v2526_v53, %v959_v52  ;;  %v1207_v56 = vpop.f32.mrf.mxu1 }
  0xe2   : > { %v1316_v57 = vadd.f32 %v2572_v40, %v1073_v30 }
  0xe3   : > { %v1203_v58 = vadd.f32 %v1202_v17, %v960_v55 }
  0xe4   : > { %v1471_v51 = vmax.f32 %v1316_v57, 0.0  ;;  %v2074_v57 = vor.u32 %v2305_v44, %v2071_v45 }
  0xe5   : > { %v1426_v63 = vmax.f32 %v1203_v58, 0.0 }
  0xe6   : > { %v1564_v4 = vpack.c.bf16 %v1471_v51, %v1471_v51 }
  0xe7   : > { %v1519_v7 = vpack.c.bf16 %v1426_v63, %v1426_v63  ;;  %v1074_v8 = vpop.f32.mrf.mxu2 }
  0xe8   : > { %1658 = vst.msk [vmem:[%s2545_s23 + $0xd0] sm:$0xf] %vm1605_vm1, %v1564_v4  ;;  %v1075_v40 = vadd.f32 %v2526_v53, %v1074_v8  ;;  %v962_v12 = vpop.f32.mrf.mxu0  ;;  %v2645_v14 = vpop.f32.mrf.mxu3  ;;  %v1877_v8 = vld [vmem:[%s2415_s30 + $0xe0] sm:$0xf] }
  0xe9   : > { %1613 = vst.msk [vmem:[%s2545_s23 + $0x1c] sm:$0xf] %vm1605_vm1, %v1519_v7  ;;  %v963_v16 = vadd.f32 %v2526_v53, %v962_v12  ;;  %v1210_v17 = vpop.f32.mrf.mxu1  ;;  %v2061_v12 = vld [vmem:[%s2415_s30 + $0x250] sm:$0xf] }
  0xea   : > { %v1318_v19 = vadd.f32 %v2589_v0, %v1075_v40 }
  0xeb   : > { %v1206_v20 = vadd.f32 %v1205_v42, %v963_v16  ;;  %1001 = vmatmul.bf16.gmra.mxu0 %v1862_v10  ;;  %v1879_v42 = vld [vmem:[%s2415_s30 + $0xe8] sm:$0xf0]  ;;  %v2258_v10 = vld [vmem:[%s2415_s30 + $0xe4] sm:$0xf0]  ;;  %v2259_v16 = vld [vmem:[%s2415_s30 + $0xf4] sm:$0xf] }
  0xec   : > { %v1472_v21 = vmax.f32 %v1318_v19, 0.0  ;;  %1116 = vmatmul.bf16.gmra.mxu2 %v2046_v13  ;;  %2192 = vmatmul.msk.bf16.gmra.mxu1 %vm791_vm0, %v1874_v2  ;;  %v1882_v30 = vor.u32 %v2257_v41, %v1879_v42  ;;  %v2304_v13 = vld [vmem:[%s2415_s30 + $0x254] sm:$0xf0]  ;;  %v2307_v19 = vld [vmem:[%s2415_s30 + $0x274] sm:$0xf] }
  0xed   : > { %v1427_v22 = vmax.f32 %v1206_v20, 0.0  ;;  %2216 = vmatmul.msk.bf16.gmra.mxu3 %vm791_vm0, %v2066_v18  ;;  %v2079_v20 = vld [vmem:[%s2415_s30 + $0x278] sm:$0xf0] }
  0xee   : > { %v1565_v23 = vpack.c.bf16 %v1472_v21, %v1472_v21 }
  0xef   : > { %v1520_v24 = vpack.c.bf16 %v1427_v22, %v1427_v22  ;;  %v1077_v26 = vpop.f32.mrf.mxu2 }
  0xf0   : > { %1659 = vst.msk [vmem:[%s2545_s23 + $0xd4] sm:$0xf] %vm1605_vm1, %v1565_v23  ;;  %v1078_v0 = vadd.f32 %v2526_v53, %v1077_v26  ;;  %v964_v27 = vpop.f32.mrf.mxu0  ;;  %v2656_v28 = vpop.f32.mrf.mxu3  ;;  %v1878_v23 = vor.u32 %v2258_v10, %v1877_v8  ;;  %v2062_v26 = vor.u32 %v2304_v13, %v2061_v12 }
  0xf1   : > { %1614 = vst.msk [vmem:[%s2545_s23 + $0x20] sm:$0xf] %vm1605_vm1, %v1520_v24  ;;  %v965_v29 = vadd.f32 %v2526_v53, %v964_v27  ;;  %v1212_v31 = vpop.f32.mrf.mxu1 }
  0xf2   : > { %v1321_v32 = vadd.f32 %v2600_v15, %v1078_v0 }
  0xf3   : > { %v1208_v33 = vadd.f32 %v1207_v56, %v965_v29 }
  0xf4   : > { %v1473_v11 = vmax.f32 %v1321_v32, 0.0  ;;  %v2082_v32 = vor.u32 %v2307_v19, %v2079_v20 }
  0xf5   : > { %v1428_v38 = vmax.f32 %v1208_v33, 0.0 }
  0xf6   : > { %v1566_v43 = vpack.c.bf16 %v1473_v11, %v1473_v11 }
  0xf7   : > { %v1521_v46 = vpack.c.bf16 %v1428_v38, %v1428_v38  ;;  %v1079_v47 = vpop.f32.mrf.mxu2 }
  0xf8   : > { %1660 = vst.msk [vmem:[%s2545_s23 + $0xd8] sm:$0xf] %vm1605_vm1, %v1566_v43  ;;  %v1080_v15 = vadd.f32 %v2526_v53, %v1079_v47  ;;  %v967_v49 = vpop.f32.mrf.mxu0  ;;  %v2673_v52 = vpop.f32.mrf.mxu3  ;;  %v1885_v47 = vld [vmem:[%s2415_s30 + $0xf0] sm:$0xf] }
  0xf9   : > { %1615 = vst.msk [vmem:[%s2545_s23 + $0x24] sm:$0xf] %vm1605_vm1, %v1521_v46  ;;  %v968_v55 = vadd.f32 %v2526_v53, %v967_v49  ;;  %v1215_v56 = vpop.f32.mrf.mxu1  ;;  %v2069_v49 = vld [vmem:[%s2415_s30 + $0x260] sm:$0xf] }
  0xfa   : > { %v1323_v58 = vadd.f32 %v2617_v39, %v1080_v15 }
  0xfb   : > { %v1211_v59 = vadd.f32 %v1210_v17, %v968_v55  ;;  %1006 = vmatmul.bf16.gmra.mxu0 %v1870_v48  ;;  %v1887_v17 = vld [vmem:[%s2415_s30 + $0xf8] sm:$0xf0]  ;;  %v2260_v48 = vld [vmem:[%s2415_s30 + $0xf4] sm:$0xf0]  ;;  %v2261_v55 = vld [vmem:[%s2415_s30 + $0x104] sm:$0xf] }
  0xfc   : > { %v1474_v60 = vmax.f32 %v1323_v58, 0.0  ;;  %1121 = vmatmul.bf16.gmra.mxu2 %v2054_v50  ;;  %2193 = vmatmul.msk.bf16.gmra.mxu1 %vm791_vm0, %v1882_v30  ;;  %v1890_v0 = vor.u32 %v2259_v16, %v1887_v17  ;;  %v2306_v50 = vld [vmem:[%s2415_s30 + $0x264] sm:$0xf0]  ;;  %v2309_v58 = vld [vmem:[%s2415_s30 + $0x284] sm:$0xf] }
  0xfd   : > { %v1429_v51 = vmax.f32 %v1211_v59, 0.0  ;;  %2217 = vmatmul.msk.bf16.gmra.mxu3 %vm791_vm0, %v2074_v57  ;;  %v2087_v59 = vld [vmem:[%s2415_s30 + $0x288] sm:$0xf0] }
  0xfe   : > { %v1567_v61 = vpack.c.bf16 %v1474_v60, %v1474_v60 }
  0xff   : > { %v1522_v62 = vpack.c.bf16 %v1429_v51, %v1429_v51  ;;  %v1082_v63 = vpop.f32.mrf.mxu2 }
 0x100   : > { %1661 = vst.msk [vmem:[%s2545_s23 + $0xdc] sm:$0xf] %vm1605_vm1, %v1567_v61  ;;  %v1083_v39 = vadd.f32 %v2526_v53, %v1082_v63  ;;  %v969_v1 = vpop.f32.mrf.mxu0  ;;  %v2684_v3 = vpop.f32.mrf.mxu3  ;;  %v1886_v61 = vor.u32 %v2260_v48, %v1885_v47  ;;  %v2070_v63 = vor.u32 %v2306_v50, %v2069_v49 }
 0x101   : > { %1616 = vst.msk [vmem:[%s2545_s23 + $0x28] sm:$0xf] %vm1605_vm1, %v1522_v62  ;;  %v970_v4 = vadd.f32 %v2526_v53, %v969_v1  ;;  %v1217_v5 = vpop.f32.mrf.mxu1 }
 0x102   : > { %v1326_v6 = vadd.f32 %v2628_v54, %v1083_v39 }
 0x103   : > { %v1213_v7 = vadd.f32 %v1212_v31, %v970_v4 }
 0x104   : > { %v1475_v40 = vmax.f32 %v1326_v6, 0.0  ;;  %v2090_v6 = vor.u32 %v2309_v58, %v2087_v59 }
 0x105   : > { %v1430_v2 = vmax.f32 %v1213_v7, 0.0 }
 0x106   : > { %v1568_v18 = vpack.c.bf16 %v1475_v40, %v1475_v40 }
 0x107   : > { %v1523_v21 = vpack.c.bf16 %v1430_v2, %v1430_v2  ;;  %v1084_v22 = vpop.f32.mrf.mxu2 }
 0x108   : > { %1662 = vst.msk [vmem:[%s2545_s23 + $0xe0] sm:$0xf] %vm1605_vm1, %v1568_v18  ;;  %v1085_v54 = vadd.f32 %v2526_v53, %v1084_v22  ;;  %v972_v24 = vpop.f32.mrf.mxu0  ;;  %v2701_v27 = vpop.f32.mrf.mxu3  ;;  %v1893_v22 = vld [vmem:[%s2415_s30 + $0x100] sm:$0xf] }
 0x109   : > { %1617 = vst.msk [vmem:[%s2545_s23 + $0x2c] sm:$0xf] %vm1605_vm1, %v1523_v21  ;;  %v973_v29 = vadd.f32 %v2526_v53, %v972_v24  ;;  %v1220_v31 = vpop.f32.mrf.mxu1  ;;  %v2077_v24 = vld [vmem:[%s2415_s30 + $0x270] sm:$0xf] }
 0x10a   : > { %v1328_v33 = vadd.f32 %v2645_v14, %v1085_v54 }
 0x10b   : > { %v1216_v34 = vadd.f32 %v1215_v56, %v973_v29  ;;  %1011 = vmatmul.bf16.gmra.mxu0 %v1878_v23  ;;  %v1895_v56 = vld [vmem:[%s2415_s30 + $0x108] sm:$0xf0]  ;;  %v2262_v23 = vld [vmem:[%s2415_s30 + $0x104] sm:$0xf0]  ;;  %v2263_v29 = vld [vmem:[%s2415_s30 + $0x114] sm:$0xf] }
 0x10c   : > { %v1476_v35 = vmax.f32 %v1328_v33, 0.0  ;;  %1126 = vmatmul.bf16.gmra.mxu2 %v2062_v26  ;;  %2194 = vmatmul.msk.bf16.gmra.mxu1 %vm791_vm0, %v1890_v0  ;;  %v1898_v39 = vor.u32 %v2261_v55, %v1895_v56  ;;  %v2308_v26 = vld [vmem:[%s2415_s30 + $0x274] sm:$0xf0]  ;;  %v2311_v33 = vld [vmem:[%s2415_s30 + $0x294] sm:$0xf] }
 0x10d   : > { %v1431_v11 = vmax.f32 %v1216_v34, 0.0  ;;  %2218 = vmatmul.msk.bf16.gmra.mxu3 %vm791_vm0, %v2082_v32  ;;  %v2095_v34 = vld [vmem:[%s2415_s30 + $0x298] sm:$0xf0] }
 0x10e   : > { %v1569_v36 = vpack.c.bf16 %v1476_v35, %v1476_v35 }
 0x10f   : > { %v1524_v37 = vpack.c.bf16 %v1431_v11, %v1431_v11  ;;  %v1087_v38 = vpop.f32.mrf.mxu2 }
 0x110   : > { %1663 = vst.msk [vmem:[%s2545_s23 + $0xe4] sm:$0xf] %vm1605_vm1, %v1569_v36  ;;  %v1088_v14 = vadd.f32 %v2526_v53, %v1087_v38  ;;  %v974_v41 = vpop.f32.mrf.mxu0  ;;  %v2712_v42 = vpop.f32.mrf.mxu3  ;;  %v1894_v36 = vor.u32 %v2262_v23, %v1893_v22  ;;  %v2078_v38 = vor.u32 %v2308_v26, %v2077_v24 }
 0x111   : > { %1618 = vst.msk [vmem:[%s2545_s23 + $0x30] sm:$0xf] %vm1605_vm1, %v1524_v37  ;;  %v975_v43 = vadd.f32 %v2526_v53, %v974_v41  ;;  %v1222_v44 = vpop.f32.mrf.mxu1 }
 0x112   : > { %v1331_v45 = vadd.f32 %v2656_v28, %v1088_v14 }
 0x113   : > { %v1218_v46 = vadd.f32 %v1217_v5, %v975_v43 }
 0x114   : > { %v1477_v15 = vmax.f32 %v1331_v45, 0.0  ;;  %v2098_v45 = vor.u32 %v2311_v33, %v2095_v34 }
 0x115   : > { %v1432_v30 = vmax.f32 %v1218_v46, 0.0 }
 0x116   : > { %v1570_v57 = vpack.c.bf16 %v1477_v15, %v1477_v15 }
 0x117   : > { %v1525_v60 = vpack.c.bf16 %v1432_v30, %v1432_v30  ;;  %v1089_v51 = vpop.f32.mrf.mxu2 }
 0x118   : > { %1664 = vst.msk [vmem:[%s2545_s23 + $0xe8] sm:$0xf] %vm1605_vm1, %v1570_v57  ;;  %v1090_v28 = vadd.f32 %v2526_v53, %v1089_v51  ;;  %v977_v62 = vpop.f32.mrf.mxu0  ;;  %v2729_v1 = vpop.f32.mrf.mxu3  ;;  %v1901_v51 = vld [vmem:[%s2415_s30 + $0x110] sm:$0xf] }
 0x119   : > { %1619 = vst.msk [vmem:[%s2545_s23 + $0x34] sm:$0xf] %vm1605_vm1, %v1525_v60  ;;  %v978_v4 = vadd.f32 %v2526_v53, %v977_v62  ;;  %v1225_v5 = vpop.f32.mrf.mxu1  ;;  %v2085_v62 = vld [vmem:[%s2415_s30 + $0x280] sm:$0xf] }
 0x11a   : > { %v1333_v7 = vadd.f32 %v2673_v52, %v1090_v28 }
 0x11b   : > { %v1221_v8 = vadd.f32 %v1220_v31, %v978_v4  ;;  %1016 = vmatmul.bf16.gmra.mxu0 %v1886_v61  ;;  %v1903_v31 = vld [vmem:[%s2415_s30 + $0x118] sm:$0xf0]  ;;  %v2264_v61 = vld [vmem:[%s2415_s30 + $0x114] sm:$0xf0]  ;;  %v2265_v4 = vld [vmem:[%s2415_s30 + $0x124] sm:$0xf] }
 0x11c   : > { %v1478_v10 = vmax.f32 %v1333_v7, 0.0  ;;  %1131 = vmatmul.bf16.gmra.mxu2 %v2070_v63  ;;  %2195 = vmatmul.msk.bf16.gmra.mxu1 %vm791_vm0, %v1898_v39  ;;  %v1906_v14 = vor.u32 %v2263_v29, %v1903_v31  ;;  %v2310_v63 = vld [vmem:[%s2415_s30 + $0x284] sm:$0xf0]  ;;  %v2313_v7 = vld [vmem:[%s2415_s30 + $0x2a4] sm:$0xf] }
 0x11d   : > { %v1433_v40 = vmax.f32 %v1221_v8, 0.0  ;;  %2219 = vmatmul.msk.bf16.gmra.mxu3 %vm791_vm0, %v2090_v6  ;;  %v2103_v8 = vld [vmem:[%s2415_s30 + $0x2a8] sm:$0xf0] }
 0x11e   : > { %v1571_v12 = vpack.c.bf16 %v1478_v10, %v1478_v10 }
 0x11f   : > { %v1526_v13 = vpack.c.bf16 %v1433_v40, %v1433_v40  ;;  %v1092_v2 = vpop.f32.mrf.mxu2 }
 0x120   : > { %1665 = vst.msk [vmem:[%s2545_s23 + $0xec] sm:$0xf] %vm1605_vm1, %v1571_v12  ;;  %v1093_v52 = vadd.f32 %v2526_v53, %v1092_v2  ;;  %v979_v16 = vpop.f32.mrf.mxu0  ;;  %v2740_v17 = vpop.f32.mrf.mxu3  ;;  %v1902_v12 = vor.u32 %v2264_v61, %v1901_v51  ;;  %v2086_v2 = vor.u32 %v2310_v63, %v2085_v62 }
 0x121   : > { %1620 = vst.msk [vmem:[%s2545_s23 + $0x38] sm:$0xf] %vm1605_vm1, %v1526_v13  ;;  %v980_v18 = vadd.f32 %v2526_v53, %v979_v16  ;;  %v1227_v19 = vpop.f32.mrf.mxu1 }
 0x122   : > { %v1336_v20 = vadd.f32 %v2684_v3, %v1093_v52 }
 0x123   : > { %v1223_v21 = vadd.f32 %v1222_v44, %v980_v18 }
 0x124   : > { %v1479_v54 = vmax.f32 %v1336_v20, 0.0  ;;  %v2106_v20 = vor.u32 %v2313_v7, %v2103_v8 }
 0x125   : > { %v1434_v0 = vmax.f32 %v1223_v21, 0.0 }
 0x126   : > { %v1572_v32 = vpack.c.bf16 %v1479_v54, %v1479_v54 }
 0x127   : > { %v1527_v35 = vpack.c.bf16 %v1434_v0, %v1434_v0  ;;  %v1094_v11 = vpop.f32.mrf.mxu2 }
 0x128   : > { %1666 = vst.msk [vmem:[%s2545_s23 + $0xf0] sm:$0xf] %vm1605_vm1, %v1572_v32  ;;  %v1095_v3 = vadd.f32 %v2526_v53, %v1094_v11  ;;  %v982_v37 = vpop.f32.mrf.mxu0  ;;  %v2757_v41 = vpop.f32.mrf.mxu3  ;;  %v1909_v11 = vld [vmem:[%s2415_s30 + $0x120] sm:$0xf] }
 0x129   : > { %1621 = vst.msk [vmem:[%s2545_s23 + $0x3c] sm:$0xf] %vm1605_vm1, %v1527_v35  ;;  %v983_v43 = vadd.f32 %v2526_v53, %v982_v37  ;;  %v1230_v44 = vpop.f32.mrf.mxu1  ;;  %v2093_v37 = vld [vmem:[%s2415_s30 + $0x290] sm:$0xf] }
 0x12a   : > { %v1338_v46 = vadd.f32 %v2701_v27, %v1095_v3 }
 0x12b   : > { %v1226_v47 = vadd.f32 %v1225_v5, %v983_v43  ;;  %1021 = vmatmul.bf16.gmra.mxu0 %v1894_v36  ;;  %v1911_v5 = vld [vmem:[%s2415_s30 + $0x128] sm:$0xf0]  ;;  %v2266_v36 = vld [vmem:[%s2415_s30 + $0x124] sm:$0xf0]  ;;  %v2267_v43 = vld [vmem:[%s2415_s30 + $0x134] sm:$0xf] }
 0x12c   : > { %v1480_v48 = vmax.f32 %v1338_v46, 0.0  ;;  %1136 = vmatmul.bf16.gmra.mxu2 %v2078_v38  ;;  %2196 = vmatmul.msk.bf16.gmra.mxu1 %vm791_vm0, %v1906_v14  ;;  %v1914_v52 = vor.u32 %v2265_v4, %v1911_v5  ;;  %v2312_v38 = vld [vmem:[%s2415_s30 + $0x294] sm:$0xf0]  ;;  %v2315_v46 = vld [vmem:[%s2415_s30 + $0x2b4] sm:$0xf] }
 0x12d   : > { %v1435_v15 = vmax.f32 %v1226_v47, 0.0  ;;  %2220 = vmatmul.msk.bf16.gmra.mxu3 %vm791_vm0, %v2098_v45  ;;  %v2111_v47 = vld [vmem:[%s2415_s30 + $0x2b8] sm:$0xf0] }
 0x12e   : > { %v1573_v49 = vpack.c.bf16 %v1480_v48, %v1480_v48 }
 0x12f   : > { %v1528_v50 = vpack.c.bf16 %v1435_v15, %v1435_v15  ;;  %v1097_v30 = vpop.f32.mrf.mxu2 }
 0x130   : > { %1667 = vst.msk [vmem:[%s2545_s23 + $0xf4] sm:$0xf] %vm1605_vm1, %v1573_v49  ;;  %v1098_v27 = vadd.f32 %v2526_v53, %v1097_v30  ;;  %v984_v55 = vpop.f32.mrf.mxu0  ;;  %v2768_v56 = vpop.f32.mrf.mxu3  ;;  %v1910_v49 = vor.u32 %v2266_v36, %v1909_v11  ;;  %v2094_v30 = vor.u32 %v2312_v38, %v2093_v37 }
 0x131   : > { %1622 = vst.msk [vmem:[%s2545_s23 + $0x40] sm:$0xf] %vm1605_vm1, %v1528_v50  ;;  %v985_v57 = vadd.f32 %v2526_v53, %v984_v55  ;;  %v1232_v58 = vpop.f32.mrf.mxu1 }
 0x132   : > { %v1341_v59 = vadd.f32 %v2712_v42, %v1098_v27 }
 0x133   : > { %v1228_v60 = vadd.f32 %v1227_v19, %v985_v57 }
 0x134   : > { %v1481_v28 = vmax.f32 %v1341_v59, 0.0  ;;  %v2114_v59 = vor.u32 %v2315_v46, %v2111_v47 }
 0x135   : > { %v1436_v39 = vmax.f32 %v1228_v60, 0.0 }
 0x136   : > { %v1574_v6 = vpack.c.bf16 %v1481_v28, %v1481_v28 }
 0x137   : > { %v1529_v10 = vpack.c.bf16 %v1436_v39, %v1436_v39  ;;  %v1099_v40 = vpop.f32.mrf.mxu2 }
 0x138   : > { %1668 = vst.msk [vmem:[%s2545_s23 + $0xf8] sm:$0xf] %vm1605_vm1, %v1574_v6  ;;  %v1100_v42 = vadd.f32 %v2526_v53, %v1099_v40  ;;  %v987_v13 = vpop.f32.mrf.mxu0  ;;  %v2785_v16 = vpop.f32.mrf.mxu3  ;;  %v1917_v40 = vld [vmem:[%s2415_s30 + $0x130] sm:$0xf] }
 0x139   : > { %1623 = vst.msk [vmem:[%s2545_s23 + $0x44] sm:$0xf] %vm1605_vm1, %v1529_v10  ;;  %v988_v18 = vadd.f32 %v2526_v53, %v987_v13  ;;  %v1235_v19 = vpop.f32.mrf.mxu1  ;;  %v2101_v13 = vld [vmem:[%s2415_s30 + $0x2a0] sm:$0xf] }
 0x13a   : > { %v1343_v21 = vadd.f32 %v2729_v1, %v1100_v42 }
 0x13b   : > { %v1231_v22 = vadd.f32 %v1230_v44, %v988_v18  ;;  %1026 = vmatmul.bf16.gmra.mxu0 %v1902_v12  ;;  %v1919_v44 = vld [vmem:[%s2415_s30 + $0x138] sm:$0xf0]  ;;  %v2268_v12 = vld [vmem:[%s2415_s30 + $0x134] sm:$0xf0]  ;;  %v2269_v18 = vld [vmem:[%s2415_s30 + $0x144] sm:$0xf] }
 0x13c   : > { %v1482_v23 = vmax.f32 %v1343_v21, 0.0  ;;  %1141 = vmatmul.bf16.gmra.mxu2 %v2086_v2  ;;  %2197 = vmatmul.msk.bf16.gmra.mxu1 %vm791_vm0, %v1914_v52  ;;  %v1922_v27 = vor.u32 %v2267_v43, %v1919_v44  ;;  %v2314_v2 = vld [vmem:[%s2415_s30 + $0x2a4] sm:$0xf0]  ;;  %v2317_v21 = vld [vmem:[%s2415_s30 + $0x2c4] sm:$0xf] }
 0x13d   : > { %v1437_v54 = vmax.f32 %v1231_v22, 0.0  ;;  %2221 = vmatmul.msk.bf16.gmra.mxu3 %vm791_vm0, %v2106_v20  ;;  %v2119_v22 = vld [vmem:[%s2415_s30 + $0x2c8] sm:$0xf0] }
 0x13e   : > { %v1575_v24 = vpack.c.bf16 %v1482_v23, %v1482_v23 }
 0x13f   : > { %v1530_v26 = vpack.c.bf16 %v1437_v54, %v1437_v54  ;;  %v1102_v0 = vpop.f32.mrf.mxu2 }
 0x140   : > { %1669 = vst.msk [vmem:[%s2545_s23 + $0xfc] sm:$0xf] %vm1605_vm1, %v1575_v24  ;;  %v1103_v1 = vadd.f32 %v2526_v53, %v1102_v0  ;;  %v989_v29 = vpop.f32.mrf.mxu0  ;;  %v2796_v31 = vpop.f32.mrf.mxu3  ;;  %v1918_v24 = vor.u32 %v2268_v12, %v1917_v40  ;;  %v2102_v0 = vor.u32 %v2314_v2, %v2101_v13 }
 0x141   : > { %1624 = vst.msk [vmem:[%s2545_s23 + $0x48] sm:$0xf] %vm1605_vm1, %v1530_v26  ;;  %v990_v32 = vadd.f32 %v2526_v53, %v989_v29  ;;  %v1237_v33 = vpop.f32.mrf.mxu1 }
 0x142   : > { %v1346_v34 = vadd.f32 %v2740_v17, %v1103_v1 }
 0x143   : > { %v1233_v35 = vadd.f32 %v1232_v58, %v990_v32 }
 0x144   : > { %v1483_v3 = vmax.f32 %v1346_v34, 0.0  ;;  %v2122_v34 = vor.u32 %v2317_v21, %v2119_v22 }
 0x145   : > { %v1438_v14 = vmax.f32 %v1233_v35, 0.0 }
 0x146   : > { %v1576_v45 = vpack.c.bf16 %v1483_v3, %v1483_v3 }
 0x147   : > { %v1531_v48 = vpack.c.bf16 %v1438_v14, %v1438_v14  ;;  %v1104_v15 = vpop.f32.mrf.mxu2 }
 0x148   : > { %1670 = vst.msk [vmem:[%s2545_s23 + $0x100] sm:$0xf] %vm1605_vm1, %v1576_v45  ;;  %v1105_v17 = vadd.f32 %v2526_v53, %v1104_v15  ;;  %v992_v50 = vpop.f32.mrf.mxu0  ;;  %v2813_v55 = vpop.f32.mrf.mxu3  ;;  %v1925_v15 = vld [vmem:[%s2415_s30 + $0x140] sm:$0xf] }
 0x149   : > { %1625 = vst.msk [vmem:[%s2545_s23 + $0x4c] sm:$0xf] %vm1605_vm1, %v1531_v48  ;;  %v993_v57 = vadd.f32 %v2526_v53, %v992_v50  ;;  %v1240_v58 = vpop.f32.mrf.mxu1  ;;  %v2109_v50 = vld [vmem:[%s2415_s30 + $0x2b0] sm:$0xf] }
 0x14a   : > { %v1348_v60 = vadd.f32 %v2757_v41, %v1105_v17 }
 0x14b   : > { %v1236_v51 = vadd.f32 %v1235_v19, %v993_v57  ;;  %1031 = vmatmul.bf16.gmra.mxu0 %v1910_v49  ;;  %v1927_v19 = vld [vmem:[%s2415_s30 + $0x148] sm:$0xf0]  ;;  %v2270_v49 = vld [vmem:[%s2415_s30 + $0x144] sm:$0xf0]  ;;  %v2271_v57 = vld [vmem:[%s2415_s30 + $0x154] sm:$0xf] }
 0x14c   : > { %v1484_v61 = vmax.f32 %v1348_v60, 0.0  ;;  %1146 = vmatmul.bf16.gmra.mxu2 %v2094_v30  ;;  %2198 = vmatmul.msk.bf16.gmra.mxu1 %vm791_vm0, %v1922_v27  ;;  %v1930_v1 = vor.u32 %v2269_v18, %v1927_v19  ;;  %v2316_v30 = vld [vmem:[%s2415_s30 + $0x2b4] sm:$0xf0]  ;;  %v2319_v60 = vld [vmem:[%s2415_s30 + $0x2d4] sm:$0xf] }
 0x14d   : > { %v1439_v28 = vmax.f32 %v1236_v51, 0.0  ;;  %2222 = vmatmul.msk.bf16.gmra.mxu3 %vm791_vm0, %v2114_v59  ;;  %v2127_v51 = vld [vmem:[%s2415_s30 + $0x2d8] sm:$0xf0] }
 0x14e   : > { %v1577_v62 = vpack.c.bf16 %v1484_v61, %v1484_v61 }
 0x14f   : > { %v1532_v63 = vpack.c.bf16 %v1439_v28, %v1439_v28  ;;  %v1107_v39 = vpop.f32.mrf.mxu2 }
 0x150   : > { %1671 = vst.msk [vmem:[%s2545_s23 + $0x104] sm:$0xf] %vm1605_vm1, %v1577_v62  ;;  %v1108_v41 = vadd.f32 %v2526_v53, %v1107_v39  ;;  %v994_v4 = vpop.f32.mrf.mxu0  ;;  %v2824_v5 = vpop.f32.mrf.mxu3  ;;  %v2110_v39 = vor.u32 %v2316_v30, %v2109_v50 }
 0x151   : > { %1626 = vst.msk [vmem:[%s2545_s23 + $0x50] sm:$0xf] %vm1605_vm1, %v1532_v63  ;;  %v995_v6 = vadd.f32 %v2526_v53, %v994_v4  ;;  %v1242_v7 = vpop.f32.mrf.mxu1 }
 0x152   : > { %v1351_v8 = vadd.f32 %v2768_v56, %v1108_v41 }
 0x153   : > { %v1238_v10 = vadd.f32 %v1237_v33, %v995_v6 }
 0x154   : > { %v1485_v42 = vmax.f32 %v1351_v8, 0.0  ;;  %v2130_v8 = vor.u32 %v2319_v60, %v2127_v51 }
 0x155   : > { %v1440_v52 = vmax.f32 %v1238_v10, 0.0 }
 0x156   : > { %v1578_v20 = vpack.c.bf16 %v1485_v42, %v1485_v42 }
 0x157   : > { %v1533_v23 = vpack.c.bf16 %v1440_v52, %v1440_v52  ;;  %v1109_v54 = vpop.f32.mrf.mxu2 }
 0x158   : > { %1672 = vst.msk [vmem:[%s2545_s23 + $0x108] sm:$0xf] %vm1605_vm1, %v1578_v20  ;;  %v1110_v56 = vadd.f32 %v2526_v53, %v1109_v54  ;;  %v997_v26 = vpop.f32.mrf.mxu0  ;;  %v2841_v29 = vpop.f32.mrf.mxu3 }
 0x159   : > { %1627 = vst.msk [vmem:[%s2545_s23 + $0x54] sm:$0xf] %vm1605_vm1, %v1533_v23  ;;  %v998_v32 = vadd.f32 %v2526_v53, %v997_v26  ;;  %v1245_v33 = vpop.f32.mrf.mxu1  ;;  %v2892_v23 = vld [vmem:[%s2415_s30 + $0x2e0] sm:$0xff] }
 0x15a   : > { %v1353_v35 = vadd.f32 %v2785_v16, %v1110_v56  ;;  %v2272_v56 = vld [vmem:[%s2415_s30 + $0x154] sm:$0xf0] }
 0x15b   : > { %v1241_v11 = vadd.f32 %v1240_v58, %v998_v32  ;;  %1036 = vmatmul.bf16.gmra.mxu0 %v1918_v24  ;;  %v1935_v58 = vld [vmem:[%s2415_s30 + $0x158] sm:$0xf0]  ;;  %v1933_v24 = vld [vmem:[%s2415_s30 + $0x150] sm:$0xf] }
 0x15c   : > { %v1486_v36 = vmax.f32 %v1353_v35, 0.0  ;;  %1151 = vmatmul.bf16.gmra.mxu2 %v2102_v0  ;;  %2199 = vmatmul.msk.bf16.gmra.mxu1 %vm791_vm0, %v1930_v1  ;;  %v1938_v41 = vor.u32 %v2271_v57, %v1935_v58  ;;  %v2117_v0 = vld [vmem:[%s2415_s30 + $0x2c0] sm:$0xf]  ;;  %v2318_v1 = vld [vmem:[%s2415_s30 + $0x2c4] sm:$0xf0]  ;;  %v577_v35 = vunpack.c.h.b16 %v2892_v23 }
 0x15d   : > { %v1441_v3 = vmax.f32 %v1241_v11, 0.0  ;;  %2223 = vmatmul.msk.bf16.gmra.mxu3 %vm791_vm0, %v2122_v34  ;;  %v1943_v34 = vld [vmem:[%s2415_s30 + $0x168] sm:$0xf0] }
 0x15e   : > { %v1579_v37 = vpack.c.bf16 %v1486_v36, %v1486_v36 }
 0x15f   : > { %v1534_v38 = vpack.c.bf16 %v1441_v3, %v1441_v3  ;;  %v1112_v14 = vpop.f32.mrf.mxu2 }
 0x160   : > { %1673 = vst.msk [vmem:[%s2545_s23 + $0x10c] sm:$0xf] %vm1605_vm1, %v1579_v37  ;;  %v1113_v16 = vadd.f32 %v2526_v53, %v1112_v14  ;;  %v999_v43 = vpop.f32.mrf.mxu0  ;;  %v2852_v44 = vpop.f32.mrf.mxu3  ;;  %v1934_v37 = vor.u32 %v2272_v56, %v1933_v24  ;;  %v2118_v14 = vor.u32 %v2318_v1, %v2117_v0 }
 0x161   : > { %1628 = vst.msk [vmem:[%s2545_s23 + $0x58] sm:$0xf] %vm1605_vm1, %v1534_v38  ;;  %v1000_v45 = vadd.f32 %v2526_v53, %v999_v43  ;;  %v1247_v46 = vpop.f32.mrf.mxu1  ;;  %v1926_v53 = vor.u32 %v2270_v49, %v1925_v15 }
 0x162   : > { %v1356_v47 = vadd.f32 %v2796_v31, %v1113_v16  ;;  %v2871_v31 = vld [vmem:[%s3076_s2] ss:$0 sm:$0xff] }
 0x163   : > { %v1243_v48 = vadd.f32 %v1242_v7, %v1000_v45 }
 0x164   : > { %v1487_v17 = vmax.f32 %v1356_v47, 0.0  ;;  %v671_v47 = vpack.c.b16 %v577_v35, %v577_v35 }
 0x165   : > { %v1442_v27 = vmax.f32 %v1243_v48, 0.0 }
 0x166   : > { %v1580_v59 = vpack.c.bf16 %v1487_v17, %v1487_v17 }
 0x167   : > { %v1535_v61 = vpack.c.bf16 %v1442_v27, %v1442_v27  ;;  %v1114_v28 = vpop.f32.mrf.mxu2 }
 0x168   : > { %1674 = vst.msk [vmem:[%s2545_s23 + $0x110] sm:$0xf] %vm1605_vm1, %v1580_v59  ;;  %v1115_v62 = vadd.f32 %v2871_v31, %v1114_v28  ;;  %v1002_v63 = vpop.f32.mrf.mxu0  ;;  %v2874_v4 = vpop.f32.mrf.mxu3  ;;  %v1941_v28 = vld [vmem:[%s2415_s30 + $0x160] sm:$0xf] }
 0x169   : > { %1629 = vst.msk [vmem:[%s2545_s23 + $0x5c] sm:$0xf] %vm1605_vm1, %v1535_v61  ;;  %v1003_v6 = vadd.f32 %v2871_v31, %v1002_v63  ;;  %v1250_v7 = vpop.f32.mrf.mxu1  ;;  %v2125_v63 = vld [vmem:[%s2415_s30 + $0x2d0] sm:$0xf] }
 0x16a   : > { %v1358_v10 = vadd.f32 %v2813_v55, %v1115_v62 }
 0x16b   : > { %v1246_v40 = vadd.f32 %v1245_v33, %v1003_v6  ;;  %1041 = vmatmul.bf16.gmra.mxu0 %v1926_v53  ;;  %v2273_v33 = vld [vmem:[%s2415_s30 + $0x164] sm:$0xf]  ;;  %v2274_v53 = vld [vmem:[%s2415_s30 + $0x164] sm:$0xf0]  ;;  %v2275_v6 = vld [vmem:[%s2415_s30 + $0x174] sm:$0xf] }
 0x16c   : > { %v1488_v12 = vmax.f32 %v1358_v10, 0.0  ;;  %1156 = vmatmul.bf16.gmra.mxu2 %v2110_v39  ;;  %2200 = vmatmul.msk.bf16.gmra.mxu1 %vm791_vm0, %v1938_v41  ;;  %v1946_v16 = vor.u32 %v2273_v33, %v1943_v34  ;;  %v2320_v39 = vld [vmem:[%s2415_s30 + $0x2d4] sm:$0xf0] }
 0x16d   : > { %v1443_v42 = vmax.f32 %v1246_v40, 0.0  ;;  %2224 = vmatmul.msk.bf16.gmra.mxu3 %vm791_vm0, %v2130_v8 }
 0x16e   : > { %v1581_v13 = vpack.c.bf16 %v1488_v12, %v1488_v12  ;;  %v1942_v12 = vor.u32 %v2274_v53, %v1941_v28 }
 0x16f   : > { %v1536_v2 = vpack.c.bf16 %v1443_v42, %v1443_v42  ;;  %v1117_v52 = vpop.f32.mrf.mxu2 }
 0x170   : > { %1675 = vst.msk [vmem:[%s2545_s23 + $0x114] sm:$0xf] %vm1605_vm1, %v1581_v13  ;;  %v1118_v55 = vadd.f32 %v2871_v31, %v1117_v52  ;;  %v1004_v18 = vpop.f32.mrf.mxu0  ;;  %v2885_v19 = vpop.f32.mrf.mxu3 }
 0x171   : > { %1630 = vst.msk [vmem:[%s2545_s23 + $0x60] sm:$0xf] %vm1605_vm1, %v1536_v2  ;;  %v1005_v20 = vadd.f32 %v2871_v31, %v1004_v18  ;;  %v1252_v21 = vpop.f32.mrf.mxu1 }
 0x172   : > { %v1361_v22 = vadd.f32 %v2824_v5, %v1118_v55 }
 0x173   : > { %v1248_v54 = vadd.f32 %v1247_v46, %v1005_v20 }
 0x174   : > { %v1489_v26 = vmax.f32 %v1361_v22, 0.0 }
 0x175   : > { %v1444_v32 = vmax.f32 %v1248_v54, 0.0 }
 0x176   : > { %v1582_v11 = vpack.c.bf16 %v1489_v26, %v1489_v26 }
 0x177   : > { %v1537_v36 = vpack.c.bf16 %v1444_v32, %v1444_v32  ;;  %v1119_v3 = vpop.f32.mrf.mxu2 }
 0x178   : > { %1676 = vst.msk [vmem:[%s2545_s23 + $0x118] sm:$0xf] %vm1605_vm1, %v1582_v11  ;;  %v1120_v5 = vadd.f32 %v2871_v31, %v1119_v3  ;;  %v1007_v38 = vpop.f32.mrf.mxu0  ;;  %v2904_v43 = vpop.f32.mrf.mxu3 }
 0x179   : > { %1631 = vst.msk [vmem:[%s2545_s23 + $0x64] sm:$0xf] %vm1605_vm1, %v1537_v36  ;;  %v1008_v45 = vadd.f32 %v2871_v31, %v1007_v38  ;;  %v1255_v46 = vpop.f32.mrf.mxu1  ;;  %v576_v36 = vunpack.c.l.b16 %v2892_v23 }
 0x17a   : > { %v1363_v48 = vadd.f32 %v2841_v29, %v1120_v5 }
 0x17b   : > { %v1251_v15 = vadd.f32 %v1250_v7, %v1008_v45  ;;  %1046 = vmatmul.bf16.gmra.mxu0 %v1934_v37  ;;  %v1951_v7 = vld [vmem:[%s2415_s30 + $0x178] sm:$0xf0]  ;;  %v670_v45 = vpack.c.b16 %v576_v36, %v576_v36 }
 0x17c   : > { %v1490_v49 = vmax.f32 %v1363_v48, 0.0  ;;  %1161 = vmatmul.bf16.gmra.mxu2 %v2118_v14  ;;  %2201 = vmatmul.msk.bf16.gmra.mxu1 %vm791_vm0, %v1946_v16  ;;  %v1954_v2 = vor.u32 %v2275_v6, %v1951_v7 }
 0x17d   : > { %v1445_v17 = vmax.f32 %v1251_v15, 0.0  ;;  %2225 = vmatmul.msk.bf16.gmra.mxu3 %vm791_vm0, %v671_v47 }
 0x17e   : > { %v1583_v50 = vpack.c.bf16 %v1490_v49, %v1490_v49 }
 0x17f   : > { %v1538_v30 = vpack.c.bf16 %v1445_v17, %v1445_v17  ;;  %v1122_v27 = vpop.f32.mrf.mxu2 }
 0x180   : > { %1677 = vst.msk [vmem:[%s2545_s23 + $0x11c] sm:$0xf] %vm1605_vm1, %v1583_v50  ;;  %v1123_v29 = vadd.f32 %v2871_v31, %v1122_v27  ;;  %v1009_v57 = vpop.f32.mrf.mxu0  ;;  %v2915_v58 = vpop.f32.mrf.mxu3 }
 0x181   : > { %1632 = vst.msk [vmem:[%s2545_s23 + $0x68] sm:$0xf] %vm1605_vm1, %v1538_v30  ;;  %v1010_v59 = vadd.f32 %v2871_v31, %v1009_v57  ;;  %v1257_v60 = vpop.f32.mrf.mxu1 }
 0x182   : > { %v1366_v51 = vadd.f32 %v2852_v44, %v1123_v29  ;;  %v2126_v44 = vor.u32 %v2320_v39, %v2125_v63 }
 0x183   : > { %v1253_v61 = vadd.f32 %v1252_v21, %v1010_v59 }
 0x184   : > { %v1491_v62 = vmax.f32 %v1366_v51, 0.0 }
 0x185   : > { %v1446_v41 = vmax.f32 %v1253_v61, 0.0 }
 0x186   : > { %v1584_v8 = vpack.c.bf16 %v1491_v62, %v1491_v62 }
 0x187   : > { %v1539_v10 = vpack.c.bf16 %v1446_v41, %v1446_v41  ;;  %v1124_v40 = vpop.f32.mrf.mxu2 }
 0x188   : > { %1678 = vst.msk [vmem:[%s2545_s23 + $0x120] sm:$0xf] %vm1605_vm1, %v1584_v8  ;;  %v1125_v42 = vadd.f32 %v2871_v31, %v1124_v40  ;;  %v1012_v13 = vpop.f32.mrf.mxu0  ;;  %v2930_v52 = vpop.f32.mrf.mxu3 }
 0x189   : > { %1633 = vst.msk [vmem:[%s2545_s23 + $0x6c] sm:$0xf] %vm1605_vm1, %v1539_v10  ;;  %v1013_v55 = vadd.f32 %v2871_v31, %v1012_v13  ;;  %v1260_v18 = vpop.f32.mrf.mxu1 }
 0x18a   : > { %v1368_v20 = vadd.f32 %v2874_v4, %v1125_v42 }
 0x18b   : > { %v1256_v21 = vadd.f32 %v1255_v46, %v1013_v55  ;;  %1051 = vmatmul.bf16.gmra.mxu0 %v1942_v12 }
 0x18c   : > { %v1492_v22 = vmax.f32 %v1368_v20, 0.0  ;;  %1166 = vmatmul.bf16.gmra.mxu2 %v2126_v44  ;;  %2202 = vmatmul.msk.bf16.gmra.mxu1 %vm791_vm0, %v1954_v2 }
 0x18d   : > { %v1447_v54 = vmax.f32 %v1256_v21, 0.0 }
 0x18e   : > { %v1585_v24 = vpack.c.bf16 %v1492_v22, %v1492_v22 }
 0x18f   : > { %v1540_v56 = vpack.c.bf16 %v1447_v54, %v1447_v54  ;;  %v1127_v26 = vpop.f32.mrf.mxu2 }
 0x190   : > { %1679 = vst.msk [vmem:[%s2545_s23 + $0x124] sm:$0xf] %vm1605_vm1, %v1585_v24  ;;  %v1128_v0 = vadd.f32 %v2871_v31, %v1127_v26  ;;  %v1014_v1 = vpop.f32.mrf.mxu0  ;;  %v2940_v32 = vpop.f32.mrf.mxu3 }
 0x191   : > { %1634 = vst.msk [vmem:[%s2545_s23 + $0x70] sm:$0xf] %vm1605_vm1, %v1540_v56  ;;  %v1015_v4 = vadd.f32 %v2871_v31, %v1014_v1  ;;  %v1262_v33 = vpop.f32.mrf.mxu1 }
 0x192   : > { %v1371_v34 = vadd.f32 %v2885_v19, %v1128_v0 }
 0x193   : > { %v1258_v35 = vadd.f32 %v1257_v60, %v1015_v4 }
 0x194   : > { %v1493_v11 = vmax.f32 %v1371_v34, 0.0 }
 0x195   : > { %v1448_v3 = vmax.f32 %v1258_v35, 0.0 }
 0x196   : > { %v1586_v37 = vpack.c.bf16 %v1493_v11, %v1493_v11 }
 0x197   : > { %v1541_v5 = vpack.c.bf16 %v1448_v3, %v1448_v3  ;;  %v1129_v38 = vpop.f32.mrf.mxu2 }
 0x198   : > { %1680 = vst.msk [vmem:[%s2545_s23 + $0x128] sm:$0xf] %vm1605_vm1, %v1586_v37  ;;  %v1130_v14 = vadd.f32 %v2871_v31, %v1129_v38  ;;  %v1017_v16 = vpop.f32.mrf.mxu0  ;;  %v1382_v46 = vpop.f32.mrf.mxu3 }
 0x199   : > { %1635 = vst.msk [vmem:[%s2545_s23 + $0x74] sm:$0xf] %vm1605_vm1, %v1541_v5  ;;  %v1018_v19 = vadd.f32 %v2871_v31, %v1017_v16  ;;  %v1265_v47 = vpop.f32.mrf.mxu1 }
 0x19a   : > { %v1373_v23 = vadd.f32 %v2904_v43, %v1130_v14 }
 0x19b   : > { %v1261_v48 = vadd.f32 %v1260_v18, %v1018_v19 }
 0x19c   : > { %v1494_v15 = vmax.f32 %v1373_v23, 0.0  ;;  %1171 = vmatmul.bf16.gmra.mxu2 %v670_v45 }
 0x19d   : > { %v1449_v49 = vmax.f32 %v1261_v48, 0.0 }
 0x19e   : > { %v1587_v17 = vpack.c.bf16 %v1494_v15, %v1494_v15 }
 0x19f   : > { %v1542_v50 = vpack.c.bf16 %v1449_v49, %v1449_v49  ;;  %v1132_v30 = vpop.f32.mrf.mxu2 }
 0x1a0   : > { %1681 = vst.msk [vmem:[%s2545_s23 + $0x12c] sm:$0xf] %vm1605_vm1, %v1587_v17  ;;  %v1133_v27 = vadd.f32 %v2871_v31, %v1132_v30  ;;  %v1019_v29 = vpop.f32.mrf.mxu0  ;;  %v1385_v57 = vpop.f32.mrf.mxu3 }
 0x1a1   : > { %1636 = vst.msk [vmem:[%s2545_s23 + $0x78] sm:$0xf] %vm1605_vm1, %v1542_v50  ;;  %v1020_v59 = vadd.f32 %v2871_v31, %v1019_v29  ;;  %v1267_v43 = vpop.f32.mrf.mxu1 }
 0x1a2   : > { %v1376_v60 = vadd.f32 %v2915_v58, %v1133_v27 }
 0x1a3   : > { %v1263_v51 = vadd.f32 %v1262_v33, %v1020_v59 }
 0x1a4   : > { %v1495_v61 = vmax.f32 %v1376_v60, 0.0 }
 0x1a5   : > { %v1450_v28 = vmax.f32 %v1263_v51, 0.0 }
 0x1a6   : > { %v1588_v53 = vpack.c.bf16 %v1495_v61, %v1495_v61 }
 0x1a7   : > { %v1543_v62 = vpack.c.bf16 %v1450_v28, %v1450_v28  ;;  %v1134_v63 = vpop.f32.mrf.mxu2 }
 0x1a8   : > { %1682 = vst.msk [vmem:[%s2545_s23 + $0x130] sm:$0xf] %vm1605_vm1, %v1588_v53  ;;  %v1135_v39 = vadd.f32 %v2871_v31, %v1134_v63  ;;  %v1022_v41 = vpop.f32.mrf.mxu0  ;;  %v1387_v6 = vpop.f32.mrf.mxu3 }
 0x1a9   : > { %1637 = vst.msk [vmem:[%s2545_s23 + $0x7c] sm:$0xf] %vm1605_vm1, %v1543_v62  ;;  %v1023_v7 = vadd.f32 %v2871_v31, %v1022_v41  ;;  %v1270_v8 = vpop.f32.mrf.mxu1 }
 0x1aa   : > { %v1378_v58 = vadd.f32 %v2930_v52, %v1135_v39 }
 0x1ab   : > { %v1266_v10 = vadd.f32 %v1265_v47, %v1023_v7 }
 0x1ac   : > { %v1496_v40 = vmax.f32 %v1378_v58, 0.0 }
 0x1ad   : > { %v1451_v12 = vmax.f32 %v1266_v10, 0.0 }
 0x1ae   : > { %v1589_v42 = vpack.c.bf16 %v1496_v40, %v1496_v40 }
 0x1af   : > { %v1544_v13 = vpack.c.bf16 %v1451_v12, %v1451_v12  ;;  %v1137_v44 = vpop.f32.mrf.mxu2 }
 0x1b0   : > { %1683 = vst.msk [vmem:[%s2545_s23 + $0x134] sm:$0xf] %vm1605_vm1, %v1589_v42  ;;  %v1138_v2 = vadd.f32 %v2871_v31, %v1137_v44  ;;  %v1024_v55 = vpop.f32.mrf.mxu0  ;;  %v1390_v18 = vpop.f32.mrf.mxu3 }
 0x1b1   : > { %1638 = vst.msk [vmem:[%s2545_s23 + $0x80] sm:$0xf] %vm1605_vm1, %v1544_v13  ;;  %v1025_v20 = vadd.f32 %v2871_v31, %v1024_v55  ;;  %v1272_v21 = vpop.f32.mrf.mxu1 }
 0x1b2   : > { %v1381_v52 = vadd.f32 %v2940_v32, %v1138_v2 }
 0x1b3   : > { %v1268_v22 = vadd.f32 %v1267_v43, %v1025_v20 }
 0x1b4   : > { %v1497_v54 = vmax.f32 %v1381_v52, 0.0 }
 0x1b5   : > { %v1452_v24 = vmax.f32 %v1268_v22, 0.0 }
 0x1b6   : > { %v1590_v56 = vpack.c.bf16 %v1497_v54, %v1497_v54 }
 0x1b7   : > { %v1545_v26 = vpack.c.bf16 %v1452_v24, %v1452_v24  ;;  %v1139_v0 = vpop.f32.mrf.mxu2 }
 0x1b8   : > { %1684 = vst.msk [vmem:[%s2545_s23 + $0x138] sm:$0xf] %vm1605_vm1, %v1590_v56  ;;  %v1140_v1 = vadd.f32 %v2871_v31, %v1139_v0  ;;  %v1027_v4 = vpop.f32.mrf.mxu0  ;;  %v1392_v33 = vpop.f32.mrf.mxu3 }
 0x1b9   : > { %1639 = vst.msk [vmem:[%s2545_s23 + $0x84] sm:$0xf] %vm1605_vm1, %v1545_v26  ;;  %v1028_v34 = vadd.f32 %v2871_v31, %v1027_v4  ;;  %v1275_v35 = vpop.f32.mrf.mxu1 }
 0x1ba   : > { %v1383_v32 = vadd.f32 %v1382_v46, %v1140_v1 }
 0x1bb   : > { %v1271_v11 = vadd.f32 %v1270_v8, %v1028_v34 }
 0x1bc   : > { %v1498_v36 = vmax.f32 %v1383_v32, 0.0 }
 0x1bd   : > { %v1453_v3 = vmax.f32 %v1271_v11, 0.0 }
 0x1be   : > { %v1591_v37 = vpack.c.bf16 %v1498_v36, %v1498_v36 }
 0x1bf   : > { %v1546_v5 = vpack.c.bf16 %v1453_v3, %v1453_v3  ;;  %v1142_v38 = vpop.f32.mrf.mxu2 }
 0x1c0   : > { %1685 = vst.msk [vmem:[%s2545_s23 + $0x13c] sm:$0xf] %vm1605_vm1, %v1591_v37  ;;  %v1143_v14 = vadd.f32 %v2871_v31, %v1142_v38  ;;  %v1029_v16 = vpop.f32.mrf.mxu0  ;;  %v1395_v45 = vpop.f32.mrf.mxu3 }
 0x1c1   : > { %1640 = vst.msk [vmem:[%s2545_s23 + $0x88] sm:$0xf] %vm1605_vm1, %v1546_v5  ;;  %v1030_v19 = vadd.f32 %v2871_v31, %v1029_v16  ;;  %v1277_v47 = vpop.f32.mrf.mxu1 }
 0x1c2   : > { %v1386_v46 = vadd.f32 %v1385_v57, %v1143_v14 }
 0x1c3   : > { %v1273_v23 = vadd.f32 %v1272_v21, %v1030_v19 }
 0x1c4   : > { %v1499_v48 = vmax.f32 %v1386_v46, 0.0 }
 0x1c5   : > { %v1454_v15 = vmax.f32 %v1273_v23, 0.0 }
 0x1c6   : > { %v1592_v49 = vpack.c.bf16 %v1499_v48, %v1499_v48 }
 0x1c7   : > { %v1547_v17 = vpack.c.bf16 %v1454_v15, %v1454_v15  ;;  %v1144_v50 = vpop.f32.mrf.mxu2 }
 0x1c8   : > { %1686 = vst.msk [vmem:[%s2545_s23 + $0x140] sm:$0xf] %vm1605_vm1, %v1592_v49  ;;  %v1145_v30 = vadd.f32 %v2871_v31, %v1144_v50  ;;  %v1032_v27 = vpop.f32.mrf.mxu0  ;;  %v1397_v29 = vpop.f32.mrf.mxu3 }
 0x1c9   : > { %1641 = vst.msk [vmem:[%s2545_s23 + $0x8c] sm:$0xf] %vm1605_vm1, %v1547_v17  ;;  %v1033_v59 = vadd.f32 %v2871_v31, %v1032_v27  ;;  %v1280_v43 = vpop.f32.mrf.mxu1 }
 0x1ca   : > { %v1388_v57 = vadd.f32 %v1387_v6, %v1145_v30 }
 0x1cb   : > { %v1276_v60 = vadd.f32 %v1275_v35, %v1033_v59 }
 0x1cc   : > { %v1500_v51 = vmax.f32 %v1388_v57, 0.0 }
 0x1cd   : > { %v1455_v61 = vmax.f32 %v1276_v60, 0.0 }
 0x1ce   : > { %v1593_v28 = vpack.c.bf16 %v1500_v51, %v1500_v51 }
 0x1cf   : > { %v1548_v53 = vpack.c.bf16 %v1455_v61, %v1455_v61  ;;  %v1147_v62 = vpop.f32.mrf.mxu2 }
 0x1d0   : > { %1687 = vst.msk [vmem:[%s2545_s23 + $0x144] sm:$0xf] %vm1605_vm1, %v1593_v28  ;;  %v1148_v63 = vadd.f32 %v2871_v31, %v1147_v62  ;;  %v1034_v39 = vpop.f32.mrf.mxu0  ;;  %v1400_v41 = vpop.f32.mrf.mxu3 }
 0x1d1   : > { %1642 = vst.msk [vmem:[%s2545_s23 + $0x90] sm:$0xf] %vm1605_vm1, %v1548_v53  ;;  %v1035_v7 = vadd.f32 %v2871_v31, %v1034_v39  ;;  %v1282_v8 = vpop.f32.mrf.mxu1 }
 0x1d2   : > { %v1391_v6 = vadd.f32 %v1390_v18, %v1148_v63 }
 0x1d3   : > { %v1278_v58 = vadd.f32 %v1277_v47, %v1035_v7 }
 0x1d4   : > { %v1501_v10 = vmax.f32 %v1391_v6, 0.0 }
 0x1d5   : > { %v1456_v40 = vmax.f32 %v1278_v58, 0.0 }
 0x1d6   : > { %v1594_v12 = vpack.c.bf16 %v1501_v10, %v1501_v10 }
 0x1d7   : > { %v1549_v42 = vpack.c.bf16 %v1456_v40, %v1456_v40  ;;  %v1149_v13 = vpop.f32.mrf.mxu2 }
 0x1d8   : > { %1688 = vst.msk [vmem:[%s2545_s23 + $0x148] sm:$0xf] %vm1605_vm1, %v1594_v12  ;;  %v1150_v44 = vadd.f32 %v2871_v31, %v1149_v13  ;;  %v1037_v2 = vpop.f32.mrf.mxu0  ;;  %v1402_v55 = vpop.f32.mrf.mxu3 }
 0x1d9   : > { %1643 = vst.msk [vmem:[%s2545_s23 + $0x94] sm:$0xf] %vm1605_vm1, %v1549_v42  ;;  %v1038_v20 = vadd.f32 %v2871_v31, %v1037_v2  ;;  %v1285_v21 = vpop.f32.mrf.mxu1 }
 0x1da   : > { %v1393_v18 = vadd.f32 %v1392_v33, %v1150_v44 }
 0x1db   : > { %v1281_v52 = vadd.f32 %v1280_v43, %v1038_v20 }
 0x1dc   : > { %v1502_v22 = vmax.f32 %v1393_v18, 0.0 }
 0x1dd   : > { %v1457_v54 = vmax.f32 %v1281_v52, 0.0 }
 0x1de   : > { %v1595_v24 = vpack.c.bf16 %v1502_v22, %v1502_v22 }
 0x1df   : > { %v1550_v56 = vpack.c.bf16 %v1457_v54, %v1457_v54  ;;  %v1152_v26 = vpop.f32.mrf.mxu2 }
 0x1e0   : > { %1689 = vst.msk [vmem:[%s2545_s23 + $0x14c] sm:$0xf] %vm1605_vm1, %v1595_v24  ;;  %v1153_v0 = vadd.f32 %v2871_v31, %v1152_v26  ;;  %v1039_v1 = vpop.f32.mrf.mxu0  ;;  %v1405_v4 = vpop.f32.mrf.mxu3  ;;  %v1058_v26 = vadd.f32 %v2871_v31, %v2547_v9 }
 0x1e1   : > { %1644 = vst.msk [vmem:[%s2545_s23 + $0x98] sm:$0xf] %vm1605_vm1, %v1550_v56  ;;  %v1040_v34 = vadd.f32 %v2871_v31, %v1039_v1  ;;  %v1287_v35 = vpop.f32.mrf.mxu1 }
 0x1e2   : > { %v1396_v33 = vadd.f32 %v1395_v45, %v1153_v0 }
 0x1e3   : > { %v1283_v32 = vadd.f32 %v1282_v8, %v1040_v34 }
 0x1e4   : > { %v1503_v11 = vmax.f32 %v1396_v33, 0.0 }
 0x1e5   : > { %v1458_v36 = vmax.f32 %v1283_v32, 0.0 }
 0x1e6   : > { %v1596_v3 = vpack.c.bf16 %v1503_v11, %v1503_v11 }
 0x1e7   : > { %v1551_v37 = vpack.c.bf16 %v1458_v36, %v1458_v36  ;;  %v1154_v5 = vpop.f32.mrf.mxu2 }
 0x1e8   : > { %1690 = vst.msk [vmem:[%s2545_s23 + $0x150] sm:$0xf] %vm1605_vm1, %v1596_v3  ;;  %v1155_v38 = vadd.f32 %v2871_v31, %v1154_v5  ;;  %v1042_v14 = vpop.f32.mrf.mxu0  ;;  %v1407_v16 = vpop.f32.mrf.mxu3 }
 0x1e9   : > { %1645 = vst.msk [vmem:[%s2545_s23 + $0x9c] sm:$0xf] %vm1605_vm1, %v1551_v37  ;;  %v1043_v19 = vadd.f32 %v2871_v31, %v1042_v14  ;;  %v1290_v47 = vpop.f32.mrf.mxu1 }
 0x1ea   : > { %v1398_v45 = vadd.f32 %v1397_v29, %v1155_v38 }
 0x1eb   : > { %v1286_v46 = vadd.f32 %v1285_v21, %v1043_v19  ;;  %v1060_v19 = vadd.f32 %v2871_v31, %v2562_v25 }
 0x1ec   : > { %v1504_v23 = vmax.f32 %v1398_v45, 0.0 }
 0x1ed   : > { %v1459_v48 = vmax.f32 %v1286_v46, 0.0 }
 0x1ee   : > { %v1597_v15 = vpack.c.bf16 %v1504_v23, %v1504_v23 }
 0x1ef   : > { %v1552_v49 = vpack.c.bf16 %v1459_v48, %v1459_v48  ;;  %v1157_v17 = vpop.f32.mrf.mxu2 }
 0x1f0   : > { %1691 = vst.msk [vmem:[%s2545_s23 + $0x154] sm:$0xf] %vm1605_vm1, %v1597_v15  ;;  %v1158_v50 = vadd.f32 %v2871_v31, %v1157_v17  ;;  %v1044_v30 = vpop.f32.mrf.mxu0  ;;  %v3020_v27 = vpop.f32.mrf.mxu3 }
 0x1f1   : > { %1646 = vst.msk [vmem:[%s2545_s23 + $0xa0] sm:$0xf] %vm1605_vm1, %v1552_v49  ;;  %v1045_v59 = vadd.f32 %v2871_v31, %v1044_v30  ;;  %v1292_v29 = vpop.f32.mrf.mxu1 }
 0x1f2   : > { %v1401_v43 = vadd.f32 %v1400_v41, %v1158_v50 }
 0x1f3   : > { %v1288_v57 = vadd.f32 %v1287_v35, %v1045_v59 }
 0x1f4   : > { %v1505_v60 = vmax.f32 %v1401_v43, 0.0 }
 0x1f5   : > { %v1460_v51 = vmax.f32 %v1288_v57, 0.0 }
 0x1f6   : > { %v1598_v61 = vpack.c.bf16 %v1505_v60, %v1505_v60 }
 0x1f7   : > { %v1553_v28 = vpack.c.bf16 %v1460_v51, %v1460_v51  ;;  %v1159_v53 = vpop.f32.mrf.mxu2 }
 0x1f8   : > { %1692 = vst.msk [vmem:[%s2545_s23 + $0x158] sm:$0xf] %vm1605_vm1, %v1598_v61  ;;  %v1160_v62 = vadd.f32 %v2871_v31, %v1159_v53  ;;  %v1047_v63 = vpop.f32.mrf.mxu0  ;;  %v3028_v39 = vpop.f32.mrf.mxu3 }
 0x1f9   : > { %1647 = vst.msk [vmem:[%s2545_s23 + $0xa4] sm:$0xf] %vm1605_vm1, %v1553_v28  ;;  %v1048_v7 = vadd.f32 %v2871_v31, %v1047_v63  ;;  %v1295_v41 = vpop.f32.mrf.mxu1 }
 0x1fa   : > { %v1403_v8 = vadd.f32 %v1402_v55, %v1160_v62 }
 0x1fb   : > { %v1291_v6 = vadd.f32 %v1290_v47, %v1048_v7 }
 0x1fc   : > { %v1506_v58 = vmax.f32 %v1403_v8, 0.0 }
 0x1fd   : > { %v1461_v10 = vmax.f32 %v1291_v6, 0.0 }
 0x1fe   : > { %v1599_v40 = vpack.c.bf16 %v1506_v58, %v1506_v58 }
 0x1ff   : > { %v1554_v12 = vpack.c.bf16 %v1461_v10, %v1461_v10  ;;  %v1162_v42 = vpop.f32.mrf.mxu2 }
 0x200   : > { %1693 = vst.msk [vmem:[%s2545_s23 + $0x15c] sm:$0xf] %vm1605_vm1, %v1599_v40  ;;  %v1163_v13 = vadd.f32 %v2871_v31, %v1162_v42  ;;  %v1049_v44 = vpop.f32.mrf.mxu0  ;;  %v1415_v2 = vpop.f32.mrf.mxu3 }
 0x201   : > { %1648 = vst.msk [vmem:[%s2545_s23 + $0xa8] sm:$0xf] %vm1605_vm1, %v1554_v12  ;;  %v1050_v20 = vadd.f32 %v2871_v31, %v1049_v44  ;;  %v1297_v21 = vpop.f32.mrf.mxu1 }
 0x202   : > { %v1406_v55 = vadd.f32 %v1405_v4, %v1163_v13 }
 0x203   : > { %v1293_v18 = vadd.f32 %v1292_v29, %v1050_v20 }
 0x204   : > { %v1507_v52 = vmax.f32 %v1406_v55, 0.0 }
 0x205   : > { %v1462_v22 = vmax.f32 %v1293_v18, 0.0 }
 0x206   : > { %v1600_v54 = vpack.c.bf16 %v1507_v52, %v1507_v52 }
 0x207   : > { %v1555_v24 = vpack.c.bf16 %v1462_v22, %v1462_v22  ;;  %v1164_v56 = vpop.f32.mrf.mxu2 }
 0x208   : > { %1694 = vst.msk [vmem:[%s2545_s23 + $0x160] sm:$0xf] %vm1605_vm1, %v1600_v54  ;;  %v1165_v0 = vadd.f32 %v2871_v31, %v1164_v56  ;;  %v1052_v1 = vpop.f32.mrf.mxu0  ;;  %v1417_v34 = vpop.f32.mrf.mxu3 }
 0x209   : > { %1649 = vst.msk [vmem:[%s2545_s23 + $0xac] sm:$0xf] %vm1605_vm1, %v1555_v24  ;;  %v1053_v4 = vadd.f32 %v2871_v31, %v1052_v1  ;;  %v1300_v35 = vpop.f32.mrf.mxu1 }
 0x20a   : > { %v1408_v33 = vadd.f32 %v1407_v16, %v1165_v0  ;;  %v1301_v32 = vadd.f32 %v1300_v35, %v1058_v26 }
 0x20b   : > { %v1296_v11 = vadd.f32 %v1295_v41, %v1053_v4 }
 0x20c   : > { %v1508_v36 = vmax.f32 %v1408_v33, 0.0  ;;  %v1465_v3 = vmax.f32 %v1301_v32, 0.0 }
 0x20d   : > { %v1463_v9 = vmax.f32 %v1296_v11, 0.0 }
 0x20e   : > { %v1601_v37 = vpack.c.bf16 %v1508_v36, %v1508_v36  ;;  %v1558_v5 = vpack.c.bf16 %v1465_v3, %v1465_v3 }
 0x20f   : > { %v1556_v38 = vpack.c.bf16 %v1463_v9, %v1463_v9  ;;  %v1167_v14 = vpop.f32.mrf.mxu2 }
 0x210   : > { %1695 = vst.msk [vmem:[%s2545_s23 + $0x164] sm:$0xf] %vm1605_vm1, %v1601_v37  ;;  %v1168_v47 = vadd.f32 %v2871_v31, %v1167_v14  ;;  %v1054_v45 = vpop.f32.mrf.mxu0 }
 0x211   : > { %1650 = vst.msk [vmem:[%s2545_s23 + $0xb0] sm:$0xf] %vm1605_vm1, %v1556_v38  ;;  %v1055_v16 = vadd.f32 %v2871_v31, %v1054_v45  ;;  %v1302_v46 = vpop.f32.mrf.mxu1 }
 0x212   : > { %1652 = vst.msk [vmem:[%s2545_s23 + $0xb8] sm:$0xf] %vm1605_vm1, %v1558_v5  ;;  %v1411_v23 = vadd.f32 %v3020_v27, %v1168_v47  ;;  %v1303_v48 = vadd.f32 %v1302_v46, %v1060_v19 }
 0x213   : > { %v1298_v15 = vadd.f32 %v1297_v21, %v1055_v16 }
 0x214   : > { %v1509_v25 = vmax.f32 %v1411_v23, 0.0  ;;  %v1466_v49 = vmax.f32 %v1303_v48, 0.0 }
 0x215   : > { %v1464_v17 = vmax.f32 %v1298_v15, 0.0 }
 0x216   : > { %v1602_v50 = vpack.c.bf16 %v1509_v25, %v1509_v25  ;;  %v1559_v30 = vpack.c.bf16 %v1466_v49, %v1466_v49 }
 0x217   : > { %v1557_v59 = vpack.c.bf16 %v1464_v17, %v1464_v17  ;;  %v1169_v29 = vpop.f32.mrf.mxu2 }
 0x218   : > { %1696 = vst.msk [vmem:[%s2545_s23 + $0x168] sm:$0xf] %vm1605_vm1, %v1602_v50  ;;  %v1170_v43 = vadd.f32 %v2871_v31, %v1169_v29 }
 0x219   : > { %1651 = vst.msk [vmem:[%s2545_s23 + $0xb4] sm:$0xf] %vm1605_vm1, %v1557_v59 }
 0x21a   : > { %1653 = vst.msk [vmem:[%s2545_s23 + $0xbc] sm:$0xf] %vm1605_vm1, %v1559_v30  ;;  %v1413_v27 = vadd.f32 %v3028_v39, %v1170_v43 }
 0x21c   : > { %v1510_v57 = vmax.f32 %v1413_v27, 0.0 }
 0x21e   : > { %v1603_v60 = vpack.c.bf16 %v1510_v57, %v1510_v57 }
 0x21f   : > { %v1172_v51 = vpop.f32.mrf.mxu2 }
 0x220   : > { %1697 = vst.msk [vmem:[%s2545_s23 + $0x16c] sm:$0xf] %vm1605_vm1, %v1603_v60  ;;  %v1173_v61 = vadd.f32 %v2871_v31, %v1172_v51 }
 0x222   : > { %v1416_v28 = vadd.f32 %v1415_v2, %v1173_v61 }
 0x224   : > { %v1511_v53 = vmax.f32 %v1416_v28, 0.0 }
 0x226   : > { %v1604_v62 = vpack.c.bf16 %v1511_v53, %v1511_v53 }
 0x227   : > { %v1174_v63 = vpop.f32.mrf.mxu2 }
 0x228   : > { %1698 = vst.msk [vmem:[%s2545_s23 + $0x170] sm:$0xf] %vm1605_vm1, %v1604_v62 }
 0x229 PF: > { %s13_s12 = sadd.s32 1, %s2361_s12  }
 0x22a   : > { %p10_p4 = scmp.ge.s32.totalorder %s13_s12, 4  }
 0x22c   :  { %12 = sbr.rel (!%p10_p4) target bundleno = 1 (0x1), region = 62 }

// kernel: dueling_dqn_forward.4
= control target key start
LH: loop header
LB: loop body
LE: loop exit
PB: predicated region body
PF: predicated region fallthrough
CT: control target
= control target key end

     0   :  { %s2728_s18 = smov 0   ;;  %s3324_s0 = inlined_call_operand.vmem [shape: bf16[2,144,512], index: 0, kind: input, shape index: {}]   ;;  %s3325_s1 = inlined_call_operand.vmem [shape: bf16[512,64], index: 1, kind: input, shape index: {}]   ;;  %s3326_s2 = inlined_call_operand.vmem [shape: f32[1,64], index: 2, kind: input, shape index: {}]   ;;  %s3327_s3 = inlined_call_operand.vmem [shape: bf16[576,64], index: 3, kind: input, shape index: {}]   ;;  %s3328_s4 = inlined_call_operand.vmem [shape: f32[1,64], index: 4, kind: input, shape index: {}]   ;;  %s3329_s5 = inlined_call_operand.vmem [shape: bf16[2,96,64], index: 5, kind: output, shape index: {}]  }
   0x1 LB: > { %s2079_s19 = sadd.s32 4294967295, %s2696_s18   ;;  %p2083_p0 = scmp.ge.s32.totalorder %s2696_s18, 1  ;;  %s2696_s18 = sphi %s2728_s18, %s15_s18  }
   0x2   : > { %p187_p1 = scmp.lt.s32.totalorder %s2696_s18, 3 }
   0x4   : > { %p188_p2 = pnand %p2083_p0, %p187_p1 }
   0x5   : > { %p215_p3 = scmp.lt.s32.totalorder (!%p188_p2), %s2079_s19, 1 }
   0x6   : > { %191 = sbr.rel (%p188_p2) target bundleno = 666 (0x29a), region = 40 }
   0xb   : > { %v2601_v0 = vld [vmem:[%s3325_s1 + $0x38] sm:$0xff]  ;;  %v2600_v1 = vld [vmem:[%s3325_s1 + $0x30] sm:$0xff]  ;;  %v2599_v4 = vld [vmem:[%s3325_s1 + $0x28] sm:$0xff]  ;;  %s3331_s19 = smov (!%p215_p3, %s2079_s19), 1  ;;  %vm1145_vm0 = vcmask 523264   ;;  %vm967_vm1 = vcmask 1046528  }
   0xc   : > { %2662 = vmatpush.bf16.msra.mxu1 %v2601_v0  ;;  %2663 = vmatpush.bf16.msra.mxu2 %v2601_v0  ;;  %v2625_v2 = vld [vmem:[%s3325_s1 + $0xf8] sm:$0xff]  ;;  %v2624_v3 = vld [vmem:[%s3325_s1 + $0xf0] sm:$0xff]  ;;  %v2623_v5 = vld [vmem:[%s3325_s1 + $0xe8] sm:$0xff]  ;;  %s2678_s17 = smul.u32 288, %s3331_s19  ;;  %vm1016_vm2 = vsmask.f32 7424 }
   0xd   : > { %702 = vmatpush.bf16.msra.mxu0 %v2601_v0  ;;  %864 = vmatpush.bf16.msra.mxu3 %v2625_v2  ;;  %v2598_v6 = vld [vmem:[%s3325_s1 + $0x20] sm:$0xff]  ;;  %v2597_v8 = vld [vmem:[%s3325_s1 + $0x18] sm:$0xff]  ;;  %v2596_v10 = vld [vmem:[%s3325_s1 + $0x10] sm:$0xff]  ;;  %vm977_vm3 = vcmask 1045504   ;;  %vm1029_vm4 = vsmask.f32 6400 }
   0xe   : > { %v2622_v7 = vld [vmem:[%s3325_s1 + $0xe0] sm:$0xff]  ;;  %v2621_v9 = vld [vmem:[%s3325_s1 + $0xd8] sm:$0xff]  ;;  %v2620_v11 = vld [vmem:[%s3325_s1 + $0xd0] sm:$0xff]  ;;  %s2781_s26 = scalar_lea.vmem %s3324_s0, %s2678_s17  ;;  %vm987_vm5 = vcmask 1044480   ;;  %vm1047_vm6 = vsmask.f32 5376 }
   0xf   : > { %v2595_v12 = vld [vmem:[%s3325_s1 + $0x8] sm:$0xff]  ;;  %v2594_v14 = vld [vmem:[%s3325_s1] sm:$0xff]  ;;  %v2580_v16 = vld [vmem:[%s2781_s26 + $0xac] sm:$0xf0]  ;;  %vm1065_vm7 = vsmask.f32 4352 }
  0x10   : > { %2664 = vmatpush.bf16.msra.mxu1 %v2600_v1  ;;  %2665 = vmatpush.bf16.msra.mxu2 %v2600_v1  ;;  %v2619_v13 = vld [vmem:[%s3325_s1 + $0xc8] sm:$0xff]  ;;  %v2168_v15 = vld [vmem:[%s2781_s26 + $0xa0] sm:$0xf]  ;;  %v2588_v18 = vld [vmem:[%s2781_s26 + $0xec] sm:$0xf0]  ;;  %s2679_s28 = smul.u32 48, %s3331_s19 }
  0x11   : > { %703 = vmatpush.bf16.msra.mxu0 %v2600_v1  ;;  %865 = vmatpush.bf16.msra.mxu3 %v2624_v3  ;;  %v2200_v17 = vld [vmem:[%s2781_s26 + $0xe0] sm:$0xf]  ;;  %v2617_v19 = vld [vmem:[%s3325_s1 + $0xb8] sm:$0xff]  ;;  %v2559_v22 = vld [vmem:[%s2781_s26 + $0xc] sm:$0xf]  ;;  %v2169_v23 = vor.u32 %v2580_v16, %v2168_v15  ;;  %vm2011_vm8 = vcmask 519168  }
  0x12   : > { %v2609_v20 = vld [vmem:[%s3325_s1 + $0x78] sm:$0xff]  ;;  %v2618_v21 = vld [vmem:[%s3325_s1 + $0xc0] sm:$0xff]  ;;  %v2201_v24 = vor.u32 %v2588_v18, %v2200_v17  ;;  %v2560_v27 = vld [vmem:[%s2781_s26 + $0xc] sm:$0xf0]  ;;  %s3276_s6 = scalar_lea.vmem %s3329_s5, %s2679_s28 }
  0x13   : > { %v2098_v25 = vld [vmem:[%s2781_s26 + $0x18] sm:$0xf0]  ;;  %v2088_v26 = vld [vmem:[%s2781_s26] sm:$0xf]  ;;  %v2616_v28 = vld [vmem:[%s3325_s1 + $0xb0] sm:$0xff] }
  0x14   : > { %2666 = vmatpush.bf16.msra.mxu1 %v2599_v4  ;;  %2667 = vmatpush.bf16.msra.mxu2 %v2599_v4  ;;  %v2608_v29 = vld [vmem:[%s3325_s1 + $0x70] sm:$0xff]  ;;  %v2101_v30 = vor.u32 %v2559_v22, %v2098_v25  ;;  %v2089_v31 = vor.u32 %v2560_v27, %v2088_v26  ;;  %v2615_v32 = vld [vmem:[%s3325_s1 + $0xa8] sm:$0xff]  ;;  %v2614_v34 = vld [vmem:[%s3325_s1 + $0xa0] sm:$0xff] }
  0x15   : > { %704 = vmatpush.bf16.msra.mxu0 %v2599_v4  ;;  %866 = vmatpush.bf16.msra.mxu3 %v2623_v5  ;;  %v2607_v33 = vld [vmem:[%s3325_s1 + $0x68] sm:$0xff]  ;;  %v2606_v35 = vld [vmem:[%s3325_s1 + $0x60] sm:$0xff]  ;;  %v2584_v37 = vld [vmem:[%s2781_s26 + $0xcc] sm:$0xf0] }
  0x16   : > { %v2184_v36 = vld [vmem:[%s2781_s26 + $0xc0] sm:$0xf]  ;;  %v2592_v39 = vld [vmem:[%s2781_s26 + $0x10c] sm:$0xf0]  ;;  %v2613_v40 = vld [vmem:[%s3325_s1 + $0x98] sm:$0xff] }
  0x17   : > { %v2216_v38 = vld [vmem:[%s2781_s26 + $0x100] sm:$0xf]  ;;  %v2605_v41 = vld [vmem:[%s3325_s1 + $0x58] sm:$0xff]  ;;  %v2563_v42 = vld [vmem:[%s2781_s26 + $0x2c] sm:$0xf]  ;;  %v2185_v43 = vor.u32 %v2584_v37, %v2184_v36 }
  0x18   : > { %2668 = vmatpush.bf16.msra.mxu1 %v2598_v6  ;;  %2669 = vmatpush.bf16.msra.mxu2 %v2598_v6  ;;  %v2217_v44 = vor.u32 %v2592_v39, %v2216_v38  ;;  %v2114_v45 = vld [vmem:[%s2781_s26 + $0x38] sm:$0xf0]  ;;  %v2104_v46 = vld [vmem:[%s2781_s26 + $0x20] sm:$0xf]  ;;  %v2564_v47 = vld [vmem:[%s2781_s26 + $0x2c] sm:$0xf0] }
  0x19   : > { %705 = vmatpush.bf16.msra.mxu0 %v2598_v6  ;;  %867 = vmatpush.bf16.msra.mxu3 %v2622_v7  ;;  %v2612_v48 = vld [vmem:[%s3325_s1 + $0x90] sm:$0xff]  ;;  %v2117_v50 = vor.u32 %v2563_v42, %v2114_v45  ;;  %v2105_v51 = vor.u32 %v2564_v47, %v2104_v46  ;;  %v2611_v52 = vld [vmem:[%s3325_s1 + $0x88] sm:$0xff]  ;;  %v2610_v54 = vld [vmem:[%s3325_s1 + $0x80] sm:$0xff] }
  0x1a   : > { %v2604_v49 = vld [vmem:[%s3325_s1 + $0x50] sm:$0xff]  ;;  %v2603_v53 = vld [vmem:[%s3325_s1 + $0x48] sm:$0xff]  ;;  %v2602_v55 = vld [vmem:[%s3325_s1 + $0x40] sm:$0xff] }
  0x1b   : > { %v2558_v56 = vld [vmem:[%s2781_s26 + $0x4] sm:$0xf]  ;;  %v2090_v57 = vld [vmem:[%s2781_s26 + $0x10] sm:$0xf0]  ;;  %v2096_v58 = vld [vmem:[%s2781_s26 + $0x8] sm:$0xf] }
  0x1c   : > { %2670 = vmatpush.bf16.msra.mxu1 %v2597_v8  ;;  %2671 = vmatpush.bf16.msra.mxu2 %v2597_v8  ;;  %v2561_v59 = vld [vmem:[%s2781_s26 + $0x14] sm:$0xf0]  ;;  %v2567_v60 = vld [vmem:[%s2781_s26 + $0x4c] sm:$0xf]  ;;  %v2093_v61 = vor.u32 %v2558_v56, %v2090_v57  ;;  %v2130_v63 = vld [vmem:[%s2781_s26 + $0x58] sm:$0xf0] }
  0x1d   : > { %706 = vmatpush.bf16.msra.mxu0 %v2597_v8  ;;  %868 = vmatpush.bf16.msra.mxu3 %v2621_v9  ;;  %v2097_v62 = vor.u32 %v2561_v59, %v2096_v58  ;;  %v2120_v0 = vld [vmem:[%s2781_s26 + $0x40] sm:$0xf]  ;;  %v2568_v1 = vld [vmem:[%s2781_s26 + $0x4c] sm:$0xf0]  ;;  %v2133_v2 = vor.u32 %v2567_v60, %v2130_v63  ;;  %v2562_v4 = vld [vmem:[%s2781_s26 + $0x24] sm:$0xf] }
  0x1e   : > { %v2121_v3 = vor.u32 %v2568_v1, %v2120_v0  ;;  %v2106_v5 = vld [vmem:[%s2781_s26 + $0x30] sm:$0xf0]  ;;  %v2112_v6 = vld [vmem:[%s2781_s26 + $0x28] sm:$0xf]  ;;  %v2565_v7 = vld [vmem:[%s2781_s26 + $0x34] sm:$0xf0] }
  0x1f   : > { %v2571_v8 = vld [vmem:[%s2781_s26 + $0x6c] sm:$0xf]  ;;  %v2109_v9 = vor.u32 %v2562_v4, %v2106_v5  ;;  %v2566_v16 = vld [vmem:[%s2781_s26 + $0x44] sm:$0xf]  ;;  %v2122_v17 = vld [vmem:[%s2781_s26 + $0x50] sm:$0xf0] }
  0x20   : > { %2672 = vmatpush.bf16.msra.mxu1 %v2596_v10  ;;  %2673 = vmatpush.bf16.msra.mxu2 %v2596_v10  ;;  %v2128_v18 = vld [vmem:[%s2781_s26 + $0x48] sm:$0xf]  ;;  %v2576_v25 = vld [vmem:[%s2781_s26 + $0x8c] sm:$0xf0]  ;;  %v2574_v37 = vld [vmem:[%s2781_s26 + $0x84] sm:$0xf] }
  0x21   : > { %707 = vmatpush.bf16.msra.mxu0 %v2596_v10  ;;  %869 = vmatpush.bf16.msra.mxu3 %v2620_v11  ;;  %v2113_v10 = vor.u32 %v2565_v7, %v2112_v6  ;;  %v2146_v11 = vld [vmem:[%s2781_s26 + $0x78] sm:$0xf0]  ;;  %v2154_v38 = vld [vmem:[%s2781_s26 + $0x90] sm:$0xf0]  ;;  %v2160_v39 = vld [vmem:[%s2781_s26 + $0x88] sm:$0xf] }
  0x22   : > { %v2633_v45 = vld [vmem:[%s3327_s3 + $0x38] sm:$0xff]  ;;  %v2578_v47 = vld [vmem:[%s2781_s26 + $0xa4] sm:$0xf]  ;;  %v2632_v56 = vld [vmem:[%s3327_s3 + $0x30] sm:$0xff] }
  0x23   : > { %v2637_v57 = vld [vmem:[%s3327_s3 + $0x58] sm:$0xff]  ;;  %v2582_v60 = vld [vmem:[%s2781_s26 + $0xc4] sm:$0xf] }
  0x24   : > { %2674 = vmatpush.bf16.msra.mxu1 %v2595_v12  ;;  %2675 = vmatpush.bf16.msra.mxu2 %v2595_v12  ;;  %v2641_v58 = vld [vmem:[%s3327_s3 + $0x78] sm:$0xff] }
  0x25   : > { %708 = vmatpush.bf16.msra.mxu0 %v2595_v12  ;;  %870 = vmatpush.bf16.msra.mxu3 %v2619_v13  ;;  %v2136_v12 = vld [vmem:[%s2781_s26 + $0x60] sm:$0xf]  ;;  %v2572_v13 = vld [vmem:[%s2781_s26 + $0x6c] sm:$0xf0]  ;;  %v2629_v59 = vld [vmem:[%s3327_s3 + $0x18] sm:$0xff] }
  0x26   : > { %v2137_v15 = vor.u32 %v2572_v13, %v2136_v12  ;;  %v2585_v63 = vld [vmem:[%s2781_s26 + $0xd4] sm:$0xf0]  ;;  %v2226_v4 = vld [vmem:[%s2781_s26 + $0x118] sm:$0xf0] }
  0x27   : > { %v2589_v12 = vld [vmem:[%s2781_s26 + $0xf4] sm:$0xf0] }
  0x28   : > { %2676 = vmatpush.bf16.msra.mxu1 %v2594_v14  ;;  %2677 = vmatpush.bf16.msra.mxu2 %v2594_v14 }
  0x29   : > { %871 = vmatpush.bf16.msra.mxu3 %v2618_v21  ;;  %709 = vmatpush.bf16.msra.mxu0 %v2594_v14  ;;  %v2149_v14 = vor.u32 %v2571_v8, %v2146_v11  ;;  %v2125_v21 = vor.u32 %v2566_v16, %v2122_v17  ;;  %v2208_v11 = vld [vmem:[%s2781_s26 + $0xe8] sm:$0xf] }
  0x2a   : > { %v2209_v17 = vor.u32 %v2589_v12, %v2208_v11 }
  0x2b   : > { %735 = vmatmul.bf16.vlgmr.msra.gmra.mxu1 %v2169_v23  ;;  %745 = vmatmul.bf16.vlgmr.msra.gmra.mxu2 %v2201_v24  ;;  %v2162_v23 = vld [vmem:[%s2781_s26 + $0x98] sm:$0xf0]  ;;  %v2152_v24 = vld [vmem:[%s2781_s26 + $0x80] sm:$0xf] }
  0x2c   : > { %810 = vmatpush.bf16.msrb.mxu2 %v2617_v19  ;;  %756 = vmatpush.bf16.msrb.mxu1 %v2609_v20  ;;  %v2569_v19 = vld [vmem:[%s2781_s26 + $0x54] sm:$0xf0]  ;;  %v2575_v20 = vld [vmem:[%s2781_s26 + $0x8c] sm:$0xf]  ;;  %v2153_v27 = vor.u32 %v2576_v25, %v2152_v24  ;;  %v2626_v24 = vld [vmem:[%s3327_s3] sm:$0xff] }
  0x2d   : > { %872 = vmatmul.bf16.vlgmr.msra.gmra.mxu3 %v2101_v30  ;;  %710 = vmatmul.bf16.vlgmr.msra.gmra.mxu0 %v2089_v31  ;;  %v2129_v22 = vor.u32 %v2569_v19, %v2128_v18  ;;  %v2165_v26 = vor.u32 %v2575_v20, %v2162_v23  ;;  %v2144_v30 = vld [vmem:[%s2781_s26 + $0x68] sm:$0xf]  ;;  %v2573_v31 = vld [vmem:[%s2781_s26 + $0x74] sm:$0xf0] }
  0x2e   : > { %1168 = vmatpush.bf16.msrb.mxu0 %v2633_v45  ;;  %1447 = vmatpush.bf16.msrb.mxu3 %v2641_v58  ;;  %v2631_v18 = vld [vmem:[%s3327_s3 + $0x28] sm:$0xff] }
  0x30   : > { %811 = vmatpush.bf16.msrb.mxu2 %v2616_v28  ;;  %757 = vmatpush.bf16.msrb.mxu1 %v2608_v29  ;;  %v2570_v28 = vld [vmem:[%s2781_s26 + $0x64] sm:$0xf]  ;;  %v2138_v29 = vld [vmem:[%s2781_s26 + $0x70] sm:$0xf0] }
  0x32   : > { %1169 = vmatpush.bf16.msrb.mxu0 %v2632_v56 }
  0x34   : > { %812 = vmatpush.bf16.msrb.mxu2 %v2615_v32  ;;  %758 = vmatpush.bf16.msrb.mxu1 %v2607_v33  ;;  %v2141_v32 = vor.u32 %v2570_v28, %v2138_v29  ;;  %v2145_v33 = vor.u32 %v2573_v31, %v2144_v30  ;;  %v2590_v28 = vld [vmem:[%s2781_s26 + $0x104] sm:$0xf]  ;;  %v2218_v29 = vld [vmem:[%s2781_s26 + $0x110] sm:$0xf0]  ;;  %v2224_v30 = vld [vmem:[%s2781_s26 + $0x108] sm:$0xf] }
  0x35   : > { %v2593_v31 = vld [vmem:[%s2781_s26 + $0x114] sm:$0xf0] }
  0x36   : > { %1170 = vmatpush.bf16.msrb.mxu0 %v2631_v18 }
  0x38   : > { %813 = vmatpush.bf16.msrb.mxu2 %v2614_v34  ;;  %759 = vmatpush.bf16.msrb.mxu1 %v2606_v35  ;;  %v2579_v34 = vld [vmem:[%s2781_s26 + $0xac] sm:$0xf]  ;;  %v2178_v35 = vld [vmem:[%s2781_s26 + $0xb8] sm:$0xf0] }
  0x39   : > { %v2181_v36 = vor.u32 %v2579_v34, %v2178_v35 }
  0x3b   : > { %740 = vmatmul.bf16.gmra.mxu1 %v2185_v43  ;;  %750 = vmatmul.bf16.gmra.mxu2 %v2217_v44  ;;  %v2583_v43 = vld [vmem:[%s2781_s26 + $0xcc] sm:$0xf]  ;;  %v2194_v44 = vld [vmem:[%s2781_s26 + $0xd8] sm:$0xf0] }
  0x3c   : > { %814 = vmatpush.bf16.msrb.mxu2 %v2613_v40  ;;  %760 = vmatpush.bf16.msrb.mxu1 %v2605_v41  ;;  %v2577_v40 = vld [vmem:[%s2781_s26 + $0x94] sm:$0xf0]  ;;  %v2157_v41 = vor.u32 %v2574_v37, %v2154_v38  ;;  %v2197_v46 = vor.u32 %v2583_v43, %v2194_v44  ;;  %v2225_v37 = vor.u32 %v2593_v31, %v2224_v30 }
  0x3d   : > { %877 = vmatmul.bf16.gmra.mxu3 %v2117_v50  ;;  %715 = vmatmul.bf16.gmra.mxu0 %v2105_v51  ;;  %v2161_v42 = vor.u32 %v2577_v40, %v2160_v39  ;;  %v2581_v50 = vld [vmem:[%s2781_s26 + $0xb4] sm:$0xf0]  ;;  %v2634_v40 = vld [vmem:[%s3327_s3 + $0x40] sm:$0xff] }
  0x40   : > { %815 = vmatpush.bf16.msrb.mxu2 %v2612_v48  ;;  %761 = vmatpush.bf16.msrb.mxu1 %v2604_v49  ;;  %v2170_v48 = vld [vmem:[%s2781_s26 + $0xb0] sm:$0xf0]  ;;  %v2176_v49 = vld [vmem:[%s2781_s26 + $0xa8] sm:$0xf] }
  0x41   : > { %v2173_v51 = vor.u32 %v2578_v47, %v2170_v48  ;;  %v2640_v48 = vld [vmem:[%s3327_s3 + $0x70] sm:$0xff] }
  0x42   : > { %1448 = vmatpush.bf16.msrb.mxu3 %v2640_v48 }
  0x44   : > { %816 = vmatpush.bf16.msrb.mxu2 %v2611_v52  ;;  %762 = vmatpush.bf16.msrb.mxu1 %v2603_v53  ;;  %v2177_v52 = vor.u32 %v2581_v50, %v2176_v49  ;;  %v2587_v53 = vld [vmem:[%s2781_s26 + $0xec] sm:$0xf] }
  0x48   : > { %817 = vmatpush.bf16.msrb.mxu2 %v2610_v54  ;;  %763 = vmatpush.bf16.msrb.mxu1 %v2602_v55  ;;  %v2210_v54 = vld [vmem:[%s2781_s26 + $0xf8] sm:$0xf0] }
  0x49   : > { %v2213_v55 = vor.u32 %v2587_v53, %v2210_v54 }
  0x4b   : > { %764 = vmatmul.bf16.vlgmr.msrb.gmra.mxu1 %v2093_v61  ;;  %818 = vmatmul.bf16.vlgmr.msrb.gmra.mxu2 %v2097_v62  ;;  %v2186_v61 = vld [vmem:[%s2781_s26 + $0xd0] sm:$0xf0]  ;;  %v2192_v62 = vld [vmem:[%s2781_s26 + $0xc8] sm:$0xf] }
  0x4c   : > { %1352 = vmatpush.bf16.msra.mxu2 %v2637_v57  ;;  %1247 = vmatpush.bf16.msra.mxu1 %v2629_v59  ;;  %v2189_v0 = vor.u32 %v2582_v60, %v2186_v61  ;;  %v2193_v1 = vor.u32 %v2585_v63, %v2192_v62  ;;  %v2638_v60 = vld [vmem:[%s3327_s3 + $0x60] sm:$0xff] }
  0x4d   : > { %882 = vmatmul.bf16.gmra.mxu3 %v2133_v2  ;;  %720 = vmatmul.bf16.gmra.mxu0 %v2121_v3  ;;  %v2591_v3 = vld [vmem:[%s2781_s26 + $0x10c] sm:$0xf] }
  0x4e   : > { %v2229_v5 = vor.u32 %v2591_v3, %v2226_v4 }
  0x5b   : > { %769 = vmatmul.bf16.gmra.mxu1 %v2109_v9  ;;  %823 = vmatmul.bf16.gmra.mxu2 %v2113_v10  ;;  %v2586_v9 = vld [vmem:[%s2781_s26 + $0xe4] sm:$0xf]  ;;  %v2202_v10 = vld [vmem:[%s2781_s26 + $0xf0] sm:$0xf0] }
  0x5c   : > { %v2205_v16 = vor.u32 %v2586_v9, %v2202_v10 }
  0x5d   : > { %887 = vmatmul.bf16.gmra.mxu3 %v2149_v14  ;;  %725 = vmatmul.bf16.gmra.mxu0 %v2137_v15  ;;  %v2628_v15 = vld [vmem:[%s3327_s3 + $0x10] sm:$0xff] }
  0x5e   : > { %1248 = vmatpush.bf16.msra.mxu1 %v2628_v15  ;;  %v2645_v15 = vld [vmem:[%s3327_s3 + $0x98] sm:$0xff] }
  0x6b   : > { %774 = vmatmul.bf16.gmra.mxu1 %v2125_v21  ;;  %828 = vmatmul.bf16.gmra.mxu2 %v2129_v22  ;;  %v2627_v21 = vld [vmem:[%s3327_s3 + $0x8] sm:$0xff] }
  0x6c   : > { %1249 = vmatpush.bf16.msra.mxu1 %v2627_v21 }
  0x6d   : > { %892 = vmatmul.bf16.gmra.mxu3 %v2165_v26  ;;  %730 = vmatmul.bf16.gmra.mxu0 %v2153_v27  ;;  %v2636_v26 = vld [vmem:[%s3327_s3 + $0x50] sm:$0xff] }
  0x6e   : > { %1353 = vmatpush.bf16.msra.mxu2 %v2636_v26 }
  0x70   : > { %1250 = vmatpush.bf16.msra.mxu1 %v2626_v24 }
  0x7b   : > { %779 = vmatmul.bf16.gmra.mxu1 %v2141_v32  ;;  %833 = vmatmul.bf16.gmra.mxu2 %v2145_v33  ;;  %v2959_v32 = vld [vmem:[%s3326_s2] ss:$0 sm:$0xff]  ;;  %v2635_v33 = vld [vmem:[%s3327_s3 + $0x48] sm:$0xff] }
  0x7c   : > { %1354 = vmatpush.bf16.msra.mxu2 %v2635_v33 }
  0x7d   : > { %897 = vmatmul.bf16.gmra.mxu3 %v2181_v36  ;;  %v2221_v36 = vor.u32 %v2590_v28, %v2218_v29 }
  0x80   : > { %1355 = vmatpush.bf16.msra.mxu2 %v2634_v40 }
  0x8b   : > { %784 = vmatmul.bf16.gmra.mxu1 %v2157_v41  ;;  %838 = vmatmul.bf16.gmra.mxu2 %v2161_v42  ;;  %v2630_v42 = vld [vmem:[%s3327_s3 + $0x20] sm:$0xff] }
  0x8c   : > { %1171 = vmatpush.bf16.msrb.mxu0 %v2630_v42 }
  0x8d   : > { %902 = vmatmul.bf16.gmra.mxu3 %v2197_v46 }
  0x90   : > { %1550 = vmatpush.bf16.msra.mxu0 %v2645_v15 }
  0x9b   : > { %789 = vmatmul.bf16.gmra.mxu1 %v2173_v51  ;;  %843 = vmatmul.bf16.gmra.mxu2 %v2177_v52  ;;  %v2639_v52 = vld [vmem:[%s3327_s3 + $0x68] sm:$0xff] }
  0x9c   : > { %1449 = vmatpush.bf16.msrb.mxu3 %v2639_v52 }
  0x9d   : > { %907 = vmatmul.bf16.gmra.mxu3 %v2213_v55 }
  0xa0   : > { %1450 = vmatpush.bf16.msrb.mxu3 %v2638_v60 }
  0xa8   : > { %v2917_v2 = vpop.f32.mrf.mxu1 }
  0xaa   : > { %v711_v13 = vpop.f32.mrf.mxu0 }
  0xab   : > { %794 = vmatmul.bf16.gmra.mxu1 %v2189_v0  ;;  %848 = vmatmul.bf16.gmra.mxu2 %v2193_v1  ;;  %v712_v35 = vadd.f32 %v2959_v32, %v711_v13 }
  0xad   : > { %912 = vmatmul.bf16.gmra.mxu3 %v2229_v5 }
  0xae   : > { %v2921_v6 = vpop.f32.mrf.mxu2 }
  0xb0   : > { %v2923_v7 = vpop.f32.mrf.mxu1  ;;  %v873_v8 = vpop.f32.mrf.mxu3 }
  0xb2   : > { %v713_v23 = vpop.f32.mrf.mxu0 }
  0xb3   : > { %v714_v47 = vadd.f32 %v2959_v32, %v713_v23 }
  0xb6   : > { %v2929_v14 = vpop.f32.mrf.mxu2 }
  0xb8   : > { %v2937_v19 = vpop.f32.mrf.mxu1  ;;  %v875_v20 = vpop.f32.mrf.mxu3 }
  0xba   : > { %v716_v39 = vpop.f32.mrf.mxu0 }
  0xbb   : > { %799 = vmatmul.bf16.gmra.mxu1 %v2205_v16  ;;  %853 = vmatmul.bf16.gmra.mxu2 %v2209_v17  ;;  %v717_v56 = vadd.f32 %v2959_v32, %v716_v39 }
  0xbe   : > { %v2942_v22 = vpop.f32.mrf.mxu2 }
  0xc0   : > { %v2947_v25 = vpop.f32.mrf.mxu1  ;;  %v878_v27 = vpop.f32.mrf.mxu3 }
  0xc2   : > { %v718_v49 = vpop.f32.mrf.mxu0 }
  0xc3   : > { %v719_v12 = vadd.f32 %v2959_v32, %v718_v49 }
  0xc6   : > { %v2964_v34 = vpop.f32.mrf.mxu2 }
  0xc8   : > { %v765_v38 = vpop.f32.mrf.mxu1  ;;  %v880_v43 = vpop.f32.mrf.mxu3 }
  0xc9   : > { %v766_v41 = vadd.f32 %v765_v38, %v712_v35 }
  0xca   : > { %v721_v0 = vpop.f32.mrf.mxu0 }
  0xcb   : > { %804 = vmatmul.bf16.gmra.mxu1 %v2221_v36  ;;  %858 = vmatmul.bf16.gmra.mxu2 %v2225_v37  ;;  %v722_v26 = vadd.f32 %v2959_v32, %v721_v0 }
  0xce   : > { %v819_v44 = vpop.f32.mrf.mxu2 }
  0xcf   : > { %v820_v45 = vadd.f32 %v819_v44, %v766_v41 }
  0xd0   : > { %v767_v46 = vpop.f32.mrf.mxu1  ;;  %v883_v54 = vpop.f32.mrf.mxu3 }
  0xd1   : > { %v874_v50 = vadd.f32 %v873_v8, %v820_v45  ;;  %v768_v51 = vadd.f32 %v767_v46, %v714_v47 }
  0xd2   : > { %v723_v23 = vpop.f32.mrf.mxu0 }
  0xd3   : > { %v918_v55 = vmax.f32 %v874_v50, 0.0 }
  0xd5   : > { %v936_v61 = vpack.c.bf16 %v918_v55, %v918_v55 }
  0xd6   : > { %v821_v53 = vpop.f32.mrf.mxu2 }
  0xd7   : > { %v822_v57 = vadd.f32 %v821_v53, %v768_v51  ;;  %v956_v4 = vunpack.c.l.b16 %v936_v61  ;;  %v724_v51 = vadd.f32 %v2959_v32, %v723_v23 }
  0xd8   : > { %v770_v58 = vpop.f32.mrf.mxu1  ;;  %v885_v10 = vpop.f32.mrf.mxu3 }
  0xd9   : > { %v876_v59 = vadd.f32 %v875_v20, %v822_v57  ;;  %v771_v63 = vadd.f32 %v770_v58, %v717_v56 }
  0xda   : > { %v726_v50 = vpop.f32.mrf.mxu0 }
  0xdb   : > { %v919_v62 = vmax.f32 %v876_v59, 0.0  ;;  %v727_v59 = vadd.f32 %v2959_v32, %v726_v50 }
  0xdd   : > { %v937_v1 = vpack.c.bf16 %v919_v62, %v919_v62 }
  0xde   : > { %v824_v3 = vpop.f32.mrf.mxu2 }
  0xdf   : > { %v957_v5 = vunpack.c.l.b16 %v937_v1  ;;  %v825_v8 = vadd.f32 %v824_v3, %v771_v63 }
  0xe0   : > { %v772_v9 = vpop.f32.mrf.mxu1  ;;  %v2990_v36 = vpop.f32.mrf.mxu3 }
  0xe1   : > { %v958_v11 = vpack.c.b16 %v957_v5, %v956_v4  ;;  %v879_v13 = vadd.f32 %v878_v27, %v825_v8  ;;  %v773_v18 = vadd.f32 %v772_v9, %v719_v12  ;;  %v2644_v5 = vld [vmem:[%s3327_s3 + $0x90] sm:$0xff] }
  0xe2   : > { %v728_v8 = vpop.f32.mrf.mxu0  ;;  %1551 = vmatpush.bf16.msra.mxu0 %v2644_v5 }
  0xe3   : > { %v920_v16 = vmax.f32 %v879_v13, 0.0  ;;  %2396 = vmatmul.msk.bf16.vlgmr.msra.gmra.mxu1 %vm1145_vm0, %v958_v11  ;;  %v1020_v20 = vshll.u32 %v958_v11, 16  ;;  %v1282_v33 = vrot.slane %v958_v11, 1  ;;  %v1018_v35 = vshrl.u32 %v958_v11, 16 }
  0xe5   : > { %v938_v17 = vpack.c.bf16 %v920_v16, %v920_v16  ;;  %v1022_v31 = vrot.slane %v1020_v20, 1 }
  0xe6   : > { %v826_v21 = vpop.f32.mrf.mxu2 }
  0xe7   : > { %v962_v24 = vunpack.c.l.b16 %v938_v17  ;;  %v827_v28 = vadd.f32 %v826_v21, %v773_v18  ;;  %v1023_v44 = vor.u32 %v1022_v31, %v1018_v35 }
  0xe8   : > { %v775_v29 = vpop.f32.mrf.mxu1  ;;  %v890_v56 = vpop.f32.mrf.mxu3 }
  0xe9   : > { %v1015_v30 = vpack.c.b16 %v962_v24, %v962_v24  ;;  %v881_v27 = vadd.f32 %v880_v43, %v827_v28  ;;  %v776_v40 = vadd.f32 %v775_v29, %v722_v26 }
  0xeb   : > { %v1025_v37 = vshll.u32 %v1015_v30, 16  ;;  %v1283_v38 = vrot.slane %v1015_v30, 1  ;;  %v921_v39 = vmax.f32 %v881_v27, 0.0 }
  0xed   : > { %v939_v41 = vpack.c.bf16 %v921_v39, %v921_v39  ;;  %v1284_v42 = vsel %vm967_vm1, %v1282_v33, %v1283_v38  ;;  %v1027_v45 = vrot.slane %v1025_v37, 1  ;;  %v729_v37 = vadd.f32 %v2959_v32, %v728_v8 }
  0xee   : > { %v829_v46 = vpop.f32.mrf.mxu2  ;;  %2418 = vmatmul.msk.bf16.vlgmr.msra.gmra.mxu2 %vm1145_vm0, %v1284_v42  ;;  %v731_v42 = vpop.f32.mrf.mxu0 }
  0xef   : > { %v830_v43 = vadd.f32 %v829_v46, %v776_v40  ;;  %v1028_v47 = vsel %vm1016_vm2, %v1023_v44, %v1027_v45  ;;  %v963_v48 = vunpack.c.l.b16 %v939_v41  ;;  %v732_v46 = vadd.f32 %v2959_v32, %v731_v42 }
  0xf0   : > { %v777_v49 = vpop.f32.mrf.mxu1  ;;  %2374 = vmatmul.msk.bf16.vlgmr.msrb.gmra.mxu0 %vm1145_vm0, %v1028_v47  ;;  %v893_v29 = vpop.f32.mrf.mxu3 }
  0xf1   : > { %v884_v52 = vadd.f32 %v883_v54, %v830_v43  ;;  %v965_v55 = vpack.c.b16 %v963_v48, %v962_v24  ;;  %v778_v58 = vadd.f32 %v777_v49, %v724_v51 }
  0xf3   : > { %v922_v53 = vmax.f32 %v884_v52, 0.0  ;;  %v1031_v0 = vshrl.u32 %v965_v55, 16  ;;  %v1034_v1 = vshll.u32 %v965_v55, 16  ;;  %v968_v9 = vrot.slane %v965_v55, 1 }
  0xf4   : > { %v1285_v11 = vrot.slane %v965_v55, 2 }
  0xf5   : > { %v940_v57 = vpack.c.bf16 %v922_v53, %v922_v53  ;;  %v1033_v17 = vrot.slane %v1031_v0, 1  ;;  %v1036_v18 = vrot.slane %v1034_v1, 2 }
  0xf6   : > { %v831_v60 = vpop.f32.mrf.mxu2 }
  0xf7   : > { %v964_v61 = vunpack.c.l.b16 %v940_v57  ;;  %v832_v62 = vadd.f32 %v831_v60, %v778_v58  ;;  %v1037_v33 = vor.u32 %v1036_v18, %v1033_v17 }
  0xf8   : > { %v780_v63 = vpop.f32.mrf.mxu1  ;;  %v895_v50 = vpop.f32.mrf.mxu3 }
  0xf9   : > { %v966_v3 = vpack.c.b16 %v964_v61, %v964_v61  ;;  %v886_v4 = vadd.f32 %v885_v10, %v832_v62  ;;  %v781_v54 = vadd.f32 %v780_v63, %v727_v59 }
  0xfb   : > { %v923_v12 = vmax.f32 %v886_v4, 0.0  ;;  %v969_v13 = vrot.slane %v966_v3, 1  ;;  %v1286_v15 = vrot.slane %v966_v3, 2  ;;  %v1039_v16 = vshrl.u32 %v966_v3, 16 }
  0xfc   : > { %v1042_v20 = vshll.u32 %v966_v3, 16 }
  0xfd   : > { %v941_v21 = vpack.c.bf16 %v923_v12, %v923_v12  ;;  %v970_v10 = vsel %vm967_vm1, %v968_v9, %v969_v13  ;;  %v3003_v23 = vsel %vm977_vm3, %v1285_v11, %v1286_v15  ;;  %v1041_v24 = vrot.slane %v1039_v16, 1 }
  0xfe   : > { %v834_v26 = vpop.f32.mrf.mxu2  ;;  %2397 = vmatmul.msk.bf16.gmra.mxu1 %vm1145_vm0, %v970_v10  ;;  %2419 = vmatmul.msk.bf16.gmra.mxu2 %vm1145_vm0, %v3003_v23  ;;  %v1044_v28 = vrot.slane %v1042_v20, 2  ;;  %v2643_v20 = vld [vmem:[%s3327_s3 + $0x88] sm:$0xff] }
  0xff   : > { %v835_v30 = vadd.f32 %v834_v26, %v781_v54  ;;  %2440 = vmatmul.msk.bf16.vlgmr.msrb.gmra.mxu3 %vm1145_vm0, %v970_v10  ;;  %v973_v27 = vunpack.c.l.b16 %v941_v21  ;;  %1552 = vmatpush.bf16.msra.mxu0 %v2643_v20  ;;  %v2652_v20 = vld [vmem:[%s3327_s3 + $0xd0] sm:$0xff] }
 0x100   : > { %v782_v31 = vpop.f32.mrf.mxu1  ;;  %v1045_v35 = vor.u32 %v1044_v28, %v1041_v24  ;;  %v898_v24 = vpop.f32.mrf.mxu3 }
 0x101   : > { %v889_v38 = vadd.f32 %v2990_v36, %v835_v30  ;;  %v975_v41 = vpack.c.b16 %v973_v27, %v964_v61  ;;  %v783_v45 = vadd.f32 %v782_v31, %v729_v37 }
 0x102   : > { %v3012_v39 = vsel %vm1029_vm4, %v1037_v33, %v1045_v35 }
 0x103   : > { %v924_v40 = vmax.f32 %v889_v38, 0.0  ;;  %2375 = vmatmul.msk.bf16.gmra.mxu0 %vm1145_vm0, %v3012_v39  ;;  %v1049_v51 = vshrl.u32 %v975_v41, 16  ;;  %v1052_v36 = vshll.u32 %v975_v41, 16  ;;  %v978_v57 = vrot.slane %v975_v41, 2 }
 0x104   : > { %v1288_v58 = vrot.slane %v975_v41, 3 }
 0x105   : > { %v942_v44 = vpack.c.bf16 %v924_v40, %v924_v40  ;;  %v1051_v63 = vrot.slane %v1049_v51, 2  ;;  %v1054_v0 = vrot.slane %v1052_v36, 3  ;;  %v737_v40 = vadd.f32 %v2959_v32, %v2917_v2 }
 0x106   : > { %v836_v43 = vpop.f32.mrf.mxu2 }
 0x107   : > { %v974_v47 = vunpack.c.l.b16 %v942_v44  ;;  %v837_v48 = vadd.f32 %v836_v43, %v783_v45  ;;  %v1055_v15 = vor.u32 %v1054_v0, %v1051_v63 }
 0x108   : > { %v785_v49 = vpop.f32.mrf.mxu1 }
 0x109   : > { %v976_v52 = vpack.c.b16 %v974_v47, %v974_v47  ;;  %v891_v53 = vadd.f32 %v890_v56, %v837_v48  ;;  %v786_v55 = vadd.f32 %v785_v49, %v732_v46  ;;  %v733_v56 = vpop.f32.mrf.mxu0  ;;  %v900_v49 = vpop.f32.mrf.mxu3 }
 0x10a   : > { %v734_v17 = vadd.f32 %v2959_v32, %v733_v56 }
 0x10b   : > { %v925_v59 = vmax.f32 %v891_v53, 0.0  ;;  %v979_v60 = vrot.slane %v976_v52, 2  ;;  %v1289_v61 = vrot.slane %v976_v52, 3  ;;  %v1057_v62 = vshrl.u32 %v976_v52, 16 }
 0x10c   : > { %v1060_v1 = vshll.u32 %v976_v52, 16 }
 0x10d   : > { %v943_v3 = vpack.c.bf16 %v925_v59, %v925_v59  ;;  %v3018_v4 = vsel %vm977_vm3, %v978_v57, %v979_v60  ;;  %v3021_v5 = vsel %vm987_vm5, %v1288_v58, %v1289_v61  ;;  %v1059_v54 = vrot.slane %v1057_v62, 2 }
 0x10e   : > { %v839_v8 = vpop.f32.mrf.mxu2  ;;  %2398 = vmatmul.msk.bf16.gmra.mxu1 %vm1145_vm0, %v3018_v4  ;;  %2420 = vmatmul.msk.bf16.gmra.mxu2 %vm1145_vm0, %v3021_v5  ;;  %v1062_v9 = vrot.slane %v1060_v1, 3  ;;  %v739_v62 = vadd.f32 %v2959_v32, %v2923_v7 }
 0x10f   : > { %v983_v11 = vunpack.c.l.b16 %v943_v3  ;;  %v840_v12 = vadd.f32 %v839_v8, %v786_v55  ;;  %2441 = vmatmul.msk.bf16.gmra.mxu3 %vm1145_vm0, %v3018_v4  ;;  %v2649_v8 = vld [vmem:[%s3327_s3 + $0xb8] sm:$0xff] }
 0x110   : > { %v787_v13 = vpop.f32.mrf.mxu1  ;;  %v1063_v16 = vor.u32 %v1062_v9, %v1059_v54  ;;  %v2653_v9 = vld [vmem:[%s3327_s3 + $0xd8] sm:$0xff]  ;;  %1639 = vmatpush.bf16.msrb.mxu1 %v2649_v8 }
 0x111   : > { %v894_v18 = vadd.f32 %v893_v29, %v840_v12  ;;  %v985_v21 = vpack.c.b16 %v983_v11, %v974_v47  ;;  %v788_v30 = vadd.f32 %v787_v13, %v734_v17  ;;  %v903_v56 = vpop.f32.mrf.mxu3  ;;  %1734 = vmatpush.bf16.msrb.mxu2 %v2653_v9  ;;  %v2642_v17 = vld [vmem:[%s3327_s3 + $0x80] sm:$0xff] }
 0x112   : > { %v3034_v10 = vsel %vm1047_vm6, %v1055_v15, %v1063_v16  ;;  %1553 = vmatpush.bf16.msra.mxu0 %v2642_v17 }
 0x113   : > { %v926_v26 = vmax.f32 %v894_v18, 0.0  ;;  %2376 = vmatmul.msk.bf16.gmra.mxu0 %vm1145_vm0, %v3034_v10  ;;  %v1067_v31 = vshrl.u32 %v985_v21, 16  ;;  %v1070_v33 = vshll.u32 %v985_v21, 16  ;;  %v988_v41 = vrot.slane %v985_v21, 3  ;;  %v2648_v18 = vld [vmem:[%s3327_s3 + $0xb0] sm:$0xff] }
 0x114   : > { %v742_v21 = vadd.f32 %v2959_v32, %v2937_v19  ;;  %1640 = vmatpush.bf16.msrb.mxu1 %v2648_v18  ;;  %v2651_v19 = vld [vmem:[%s3327_s3 + $0xc8] sm:$0xff] }
 0x115   : > { %v944_v28 = vpack.c.bf16 %v926_v26, %v926_v26  ;;  %v1069_v42 = vrot.slane %v1067_v31, 3  ;;  %v1072_v44 = vrot.slane %v1070_v33, 4  ;;  %1735 = vmatpush.bf16.msrb.mxu2 %v2652_v20  ;;  %v2647_v31 = vld [vmem:[%s3327_s3 + $0xa8] sm:$0xff] }
 0x116   : > { %v841_v27 = vpop.f32.mrf.mxu2 }
 0x117   : > { %v984_v29 = vunpack.c.l.b16 %v944_v28  ;;  %v842_v35 = vadd.f32 %v841_v27, %v788_v30  ;;  %v1073_v57 = vor.u32 %v1072_v44, %v1069_v42  ;;  %v744_v42 = vadd.f32 %v2959_v32, %v2947_v25 }
 0x118   : > { %v790_v37 = vpop.f32.mrf.mxu1  ;;  %1641 = vmatpush.bf16.msrb.mxu1 %v2647_v31 }
 0x119   : > { %v986_v38 = vpack.c.b16 %v984_v29, %v984_v29  ;;  %v896_v45 = vadd.f32 %v895_v50, %v842_v35  ;;  %v3040_v48 = vpack.c.b16 %v984_v29, %v983_v11  ;;  %v791_v51 = vadd.f32 %v790_v37, %v737_v40  ;;  %v905_v37 = vpop.f32.mrf.mxu3  ;;  %1736 = vmatpush.bf16.msrb.mxu2 %v2651_v19 }
 0x11b   : > { %v989_v46 = vrot.slane %v986_v38, 3  ;;  %v1075_v43 = vshrl.u32 %v986_v38, 16  ;;  %v1078_v47 = vshll.u32 %v986_v38, 16  ;;  %v927_v2 = vmax.f32 %v896_v45, 0.0  ;;  %v2646_v45 = vld [vmem:[%s3327_s3 + $0xa0] sm:$0xff] }
 0x11c   : > { %1642 = vmatpush.bf16.msrb.mxu1 %v2646_v45 }
 0x11d   : > { %v3043_v36 = vsel %vm987_vm5, %v988_v41, %v989_v46  ;;  %v1077_v52 = vrot.slane %v1075_v43, 3  ;;  %v1080_v53 = vrot.slane %v1078_v47, 4  ;;  %v945_v63 = vpack.c.bf16 %v927_v2, %v927_v2  ;;  %v2650_v46 = vld [vmem:[%s3327_s3 + $0xc0] sm:$0xff] }
 0x11e   : > { %v844_v55 = vpop.f32.mrf.mxu2  ;;  %2399 = vmatmul.msk.bf16.gmra.mxu1 %vm1145_vm0, %v3043_v36  ;;  %2421 = vmatmul.msk.bf16.gmra.mxu2 %vm1145_vm0, %v3040_v48 }
 0x11f   : > { %v845_v50 = vadd.f32 %v844_v55, %v791_v51  ;;  %2442 = vmatmul.msk.bf16.gmra.mxu3 %vm1145_vm0, %v3043_v36  ;;  %v1081_v58 = vor.u32 %v1080_v53, %v1077_v52  ;;  %v993_v11 = vunpack.c.l.b16 %v945_v63  ;;  %1737 = vmatpush.bf16.msrb.mxu2 %v2650_v46 }
 0x120   : > { %v792_v59 = vpop.f32.mrf.mxu1 }
 0x121   : > { %v899_v60 = vadd.f32 %v898_v24, %v845_v50  ;;  %v3052_v61 = vsel %vm1065_vm7, %v1073_v57, %v1081_v58  ;;  %v793_v3 = vadd.f32 %v792_v59, %v739_v62  ;;  %v2657_v57 = vld [vmem:[%s3327_s3 + $0xf8] sm:$0xff]  ;;  %v908_v63 = vpop.f32.mrf.mxu3 }
 0x122   : > { %1837 = vmatpush.bf16.msra.mxu3 %v2657_v57 }
 0x123   : > { %v928_v0 = vmax.f32 %v899_v60, 0.0  ;;  %2377 = vmatmul.msk.bf16.gmra.mxu0 %vm1145_vm0, %v3052_v61 }
 0x125   : > { %v946_v1 = vpack.c.bf16 %v928_v0, %v928_v0 }
 0x126   : > { %v846_v54 = vpop.f32.mrf.mxu2 }
 0x127   : > { %v994_v12 = vunpack.c.l.b16 %v946_v1  ;;  %v847_v7 = vadd.f32 %v846_v54, %v793_v3  ;;  %v2656_v1 = vld [vmem:[%s3327_s3 + $0xf0] sm:$0xff]  ;;  %v747_v3 = vadd.f32 %v2959_v32, %v2921_v6  ;;  %v749_v6 = vadd.f32 %v2959_v32, %v2929_v14 }
 0x128   : > { %v795_v13 = vpop.f32.mrf.mxu1  ;;  %1838 = vmatpush.bf16.msra.mxu3 %v2656_v1 }
 0x129   : > { %v3064_v15 = vpack.c.b16 %v994_v12, %v993_v11  ;;  %v901_v16 = vadd.f32 %v900_v49, %v847_v7  ;;  %v796_v30 = vadd.f32 %v795_v13, %v742_v21  ;;  %v2655_v12 = vld [vmem:[%s3327_s3 + $0xe8] sm:$0xff] }
 0x12b   : > { %v929_v24 = vmax.f32 %v901_v16, 0.0  ;;  %v1087_v26 = vshll.u32 %v3064_v15, 16  ;;  %v1085_v44 = vshrl.u32 %v3064_v15, 16  ;;  %v1292_v47 = vrot.slane %v3064_v15, 1 }
 0x12c   : > { %1839 = vmatpush.bf16.msra.mxu3 %v2655_v12  ;;  %v2660_v12 = vld [vmem:[%s3327_s3 + $0x110] sm:$0xff] }
 0x12d   : > { %v947_v28 = vpack.c.bf16 %v929_v24, %v929_v24  ;;  %v1089_v38 = vrot.slane %v1087_v26, 1 }
 0x12e   : > { %v849_v27 = vpop.f32.mrf.mxu2  ;;  %2400 = vmatmul.msk.bf16.gmra.mxu1 %vm1145_vm0, %v3064_v15 }
 0x12f   : > { %v999_v33 = vunpack.c.l.b16 %v947_v28  ;;  %v850_v29 = vadd.f32 %v849_v27, %v796_v30  ;;  %2443 = vmatmul.msk.bf16.gmra.mxu3 %vm1145_vm0, %v3064_v15  ;;  %v1090_v52 = vor.u32 %v1089_v38, %v1085_v44  ;;  %v910_v28 = vpop.f32.mrf.mxu3  ;;  %v2654_v30 = vld [vmem:[%s3327_s3 + $0xe0] sm:$0xff] }
 0x130   : > { %v797_v35 = vpop.f32.mrf.mxu1  ;;  %1840 = vmatpush.bf16.msra.mxu3 %v2654_v30 }
 0x131   : > { %v1083_v40 = vpack.c.b16 %v999_v33, %v999_v33  ;;  %v904_v41 = vadd.f32 %v903_v56, %v850_v29  ;;  %v798_v25 = vadd.f32 %v797_v35, %v744_v42  ;;  %v2661_v29 = vld [vmem:[%s3327_s3 + $0x118] sm:$0xff] }
 0x132   : > { %1924 = vmatpush.bf16.msrb.mxu0 %v2661_v29 }
 0x133   : > { %v930_v43 = vmax.f32 %v904_v41, 0.0  ;;  %v1293_v49 = vrot.slane %v1083_v40, 1  ;;  %v1092_v51 = vshll.u32 %v1083_v40, 16 }
 0x135   : > { %v948_v53 = vpack.c.bf16 %v930_v43, %v930_v43  ;;  %v3099_v55 = vsel %vm967_vm1, %v1292_v47, %v1293_v49  ;;  %v1094_v2 = vrot.slane %v1092_v51, 1 }
 0x136   : > { %v851_v50 = vpop.f32.mrf.mxu2  ;;  %2422 = vmatmul.msk.bf16.gmra.mxu2 %vm1145_vm0, %v3099_v55  ;;  %1925 = vmatpush.bf16.msrb.mxu0 %v2660_v12 }
 0x137   : > { %v852_v58 = vadd.f32 %v851_v50, %v798_v25  ;;  %v3107_v59 = vsel %vm1016_vm2, %v1090_v52, %v1094_v2  ;;  %v1000_v60 = vunpack.c.l.b16 %v948_v53  ;;  %v752_v2 = vadd.f32 %v2959_v32, %v2942_v22 }
 0x138   : > { %v800_v62 = vpop.f32.mrf.mxu1  ;;  %2378 = vmatmul.msk.bf16.gmra.mxu0 %vm1145_vm0, %v3107_v59 }
 0x139   : > { %v906_v0 = vadd.f32 %v905_v37, %v852_v58  ;;  %v1002_v56 = vpack.c.b16 %v1000_v60, %v999_v33  ;;  %v801_v9 = vadd.f32 %v800_v62, %v747_v3  ;;  %v913_v58 = vpop.f32.mrf.mxu3 }
 0x13b   : > { %v931_v54 = vmax.f32 %v906_v0, 0.0  ;;  %v1097_v17 = vshrl.u32 %v1002_v56, 16  ;;  %v1100_v18 = vshll.u32 %v1002_v56, 16  ;;  %v1004_v24 = vrot.slane %v1002_v56, 1 }
 0x13c   : > { %v1295_v26 = vrot.slane %v1002_v56, 2 }
 0x13d   : > { %v949_v8 = vpack.c.bf16 %v931_v54, %v931_v54  ;;  %v1099_v37 = vrot.slane %v1097_v17, 1  ;;  %v1102_v38 = vrot.slane %v1100_v18, 2 }
 0x13e   : > { %v854_v11 = vpop.f32.mrf.mxu2 }
 0x13f   : > { %v1001_v7 = vunpack.c.l.b16 %v949_v8  ;;  %v855_v13 = vadd.f32 %v854_v11, %v801_v9  ;;  %v1103_v51 = vor.u32 %v1102_v38, %v1099_v37  ;;  %v754_v11 = vadd.f32 %v2959_v32, %v2964_v34 }
 0x140   : > { %v802_v16 = vpop.f32.mrf.mxu1 }
 0x141   : > { %v1003_v20 = vpack.c.b16 %v1001_v7, %v1001_v7  ;;  %v909_v21 = vadd.f32 %v908_v63, %v855_v13  ;;  %v803_v35 = vadd.f32 %v802_v16, %v749_v6 }
 0x143   : > { %v932_v27 = vmax.f32 %v909_v21, 0.0  ;;  %v1005_v31 = vrot.slane %v1003_v20, 1  ;;  %v1296_v19 = vrot.slane %v1003_v20, 2  ;;  %v1105_v33 = vshrl.u32 %v1003_v20, 16 }
 0x144   : > { %v1108_v40 = vshll.u32 %v1003_v20, 16 }
 0x145   : > { %v950_v14 = vpack.c.bf16 %v932_v27, %v932_v27  ;;  %v3128_v41 = vsel %vm967_vm1, %v1004_v24, %v1005_v31  ;;  %v3131_v42 = vsel %vm977_vm3, %v1295_v26, %v1296_v19  ;;  %v1107_v44 = vrot.slane %v1105_v33, 1  ;;  %v915_v27 = vpop.f32.mrf.mxu3 }
 0x146   : > { %v856_v45 = vpop.f32.mrf.mxu2  ;;  %2401 = vmatmul.msk.bf16.gmra.mxu1 %vm1145_vm0, %v3128_v41  ;;  %2423 = vmatmul.msk.bf16.gmra.mxu2 %vm1145_vm0, %v3131_v42  ;;  %v1110_v46 = vrot.slane %v1108_v40, 2 }
 0x147   : > { %v857_v43 = vadd.f32 %v856_v45, %v803_v35  ;;  %2444 = vmatmul.msk.bf16.gmra.mxu3 %vm1145_vm0, %v3128_v41  ;;  %v1401_v47 = vunpack.c.l.b16 %v950_v14 }
 0x148   : > { %v805_v49 = vpop.f32.mrf.mxu1  ;;  %v1111_v52 = vor.u32 %v1110_v46, %v1107_v44 }
 0x149   : > { %v911_v53 = vadd.f32 %v910_v28, %v857_v43  ;;  %v1403_v57 = vpack.c.b16 %v1401_v47, %v1001_v7  ;;  %v806_v60 = vadd.f32 %v805_v49, %v752_v2 }
 0x14a   : > { %v3140_v25 = vsel %vm1029_vm4, %v1103_v51, %v1111_v52 }
 0x14b   : > { %v933_v50 = vmax.f32 %v911_v53, 0.0  ;;  %2379 = vmatmul.msk.bf16.gmra.mxu0 %vm1145_vm0, %v3140_v25  ;;  %v1495_v3 = vshrl.u32 %v1403_v57, 16  ;;  %v1498_v54 = vshll.u32 %v1403_v57, 16  ;;  %v1405_v22 = vrot.slane %v1403_v57, 2 }
 0x14c   : > { %v1597_v7 = vrot.slane %v1403_v57, 3 }
 0x14d   : > { %v951_v62 = vpack.c.bf16 %v933_v50, %v933_v50  ;;  %v1497_v21 = vrot.slane %v1495_v3, 2  ;;  %v1500_v6 = vrot.slane %v1498_v54, 3 }
 0x14e   : > { %v859_v63 = vpop.f32.mrf.mxu2 }
 0x14f   : > { %v1402_v0 = vunpack.c.l.b16 %v951_v62  ;;  %v860_v1 = vadd.f32 %v859_v63, %v806_v60  ;;  %v1501_v29 = vor.u32 %v1500_v6, %v1497_v21 }
 0x150   : > { %v807_v8 = vpop.f32.mrf.mxu1 }
 0x151   : > { %v1404_v56 = vpack.c.b16 %v1402_v0, %v1402_v0  ;;  %v914_v9 = vadd.f32 %v913_v58, %v860_v1  ;;  %v808_v20 = vadd.f32 %v807_v8, %v754_v11 }
 0x153   : > { %v934_v13 = vmax.f32 %v914_v9, 0.0  ;;  %v1406_v16 = vrot.slane %v1404_v56, 2  ;;  %v1598_v17 = vrot.slane %v1404_v56, 3  ;;  %v1503_v18 = vshrl.u32 %v1404_v56, 16 }
 0x154   : > { %v1506_v24 = vshll.u32 %v1404_v56, 16 }
 0x155   : > { %v952_v26 = vpack.c.bf16 %v934_v13, %v934_v13  ;;  %v3152_v28 = vsel %vm977_vm3, %v1405_v22, %v1406_v16  ;;  %v3155_v32 = vsel %vm987_vm5, %v1597_v7, %v1598_v17  ;;  %v1505_v34 = vrot.slane %v1503_v18, 2 }
 0x156   : > { %v861_v30 = vpop.f32.mrf.mxu2  ;;  %2484 = vmatmul.msk.bf16.vlgmr.msrb.gmra.mxu1 %vm1145_vm0, %v3003_v23  ;;  %2506 = vmatmul.msk.bf16.vlgmr.msrb.gmra.mxu2 %vm1145_vm0, %v3018_v4  ;;  %v1508_v31 = vrot.slane %v1506_v24, 3 }
 0x157   : > { %v1688_v19 = vunpack.c.l.b16 %v952_v26  ;;  %v862_v33 = vadd.f32 %v861_v30, %v808_v20  ;;  %2445 = vmatmul.msk.bf16.gmra.mxu3 %vm1145_vm0, %v3152_v28 }
 0x158   : > { %v1509_v35 = vor.u32 %v1508_v31, %v1505_v34 }
 0x159   : > { %v3163_v37 = vpack.c.b16 %v1688_v19, %v1402_v0  ;;  %v916_v38 = vadd.f32 %v915_v27, %v862_v33 }
 0x15a   : > { %v3166_v40 = vsel %vm1047_vm6, %v1501_v29, %v1509_v35 }
 0x15b   : > { %v935_v14 = vmax.f32 %v916_v38, 0.0  ;;  %2462 = vmatmul.msk.bf16.vlgmr.msra.gmra.mxu0 %vm1145_vm0, %v3012_v39  ;;  %v2659_v39 = vld [vmem:[%s3327_s3 + $0x108] sm:$0xff]  ;;  %v1692_v29 = vrot.slane %v3163_v37, 3 }
 0x15c   : > { %1926 = vmatpush.bf16.msrb.mxu0 %v2659_v39 }
 0x15d   : > { %v953_v23 = vpack.c.bf16 %v935_v14, %v935_v14 }
 0x15f   : > { %v1689_v4 = vunpack.c.l.b16 %v953_v23 }
 0x160   : > { %v1252_v45 = vpop.f32.mrf.mxu1 }
 0x161   : > { %v3170_v44 = vpack.c.b16 %v1689_v4, %v1688_v19  ;;  %v1691_v24 = vpack.c.b16 %v1689_v4, %v1689_v4 }
 0x163   : > { %v1693_v31 = vrot.slane %v1691_v24, 3  ;;  %v1790_v4 = vshrl.u32 %v1691_v24, 16 }
 0x165   : > { %v1694_v35 = vsel %vm987_vm5, %v1692_v29, %v1693_v31 }
 0x166   : > { %2485 = vmatmul.msk.bf16.gmra.mxu1 %vm1145_vm0, %v3021_v5  ;;  %2507 = vmatmul.msk.bf16.gmra.mxu2 %vm1145_vm0, %v3043_v36 }
 0x167   : > { %2528 = vmatmul.msk.bf16.vlgmr.msra.gmra.mxu3 %vm1145_vm0, %v3034_v10 }
 0x168   : > { %v1254_v51 = vpop.f32.mrf.mxu1 }
 0x16b   : > { %2463 = vmatmul.msk.bf16.gmra.mxu0 %vm1145_vm0, %v3034_v10 }
 0x16d   : > { %v1173_v46 = vpop.f32.mrf.mxu0 }
 0x16e   : > { %v1253_v43 = vadd.f32 %v1252_v45, %v1173_v46  ;;  %v1793_v45 = vshll.u32 %v1691_v24, 16 }
 0x171   : > { %v1357_v47 = vpop.f32.mrf.mxu2 }
 0x172   : > { %v1387_v49 = vadd.f32 %v1357_v47, %v1253_v43  ;;  %v1782_v47 = vshrl.u32 %v3163_v37, 16 }
 0x175   : > { %v1175_v52 = vpop.f32.mrf.mxu0 }
 0x176   : > { %2486 = vmatmul.msk.bf16.gmra.mxu1 %vm1145_vm0, %v3040_v48  ;;  %2508 = vmatmul.msk.bf16.gmra.mxu2 %vm1145_vm0, %v3064_v15  ;;  %v1255_v10 = vadd.f32 %v1254_v51, %v1175_v52  ;;  %v2658_v15 = vld [vmem:[%s3327_s3 + $0x100] sm:$0xff]  ;;  %v1792_v51 = vrot.slane %v1790_v4, 3  ;;  %v1795_v52 = vrot.slane %v1793_v45, 4 }
 0x177   : > { %2529 = vmatmul.msk.bf16.gmra.mxu3 %vm1145_vm0, %v3052_v61  ;;  %1927 = vmatpush.bf16.msrb.mxu0 %v2658_v15 }
 0x179   : > { %v1359_v36 = vpop.f32.mrf.mxu2 }
 0x17a   : > { %v1388_v53 = vadd.f32 %v1359_v36, %v1255_v10  ;;  %v1784_v10 = vrot.slane %v1782_v47, 3 }
 0x17b   : > { %2464 = vmatmul.msk.bf16.gmra.mxu0 %vm1145_vm0, %v3052_v61  ;;  %v1257_v2 = vpop.f32.mrf.mxu1 }
 0x180   : > { %v1178_v50 = vpop.f32.mrf.mxu0 }
 0x181   : > { %v1258_v57 = vadd.f32 %v1257_v2, %v1178_v50  ;;  %v1362_v58 = vpop.f32.mrf.mxu2  ;;  %v1796_v2 = vor.u32 %v1795_v52, %v1792_v51 }
 0x182   : > { %v1452_v60 = vpop.f32.mrf.mxu3 }
 0x183   : > { %v1389_v62 = vadd.f32 %v1362_v58, %v1258_v57  ;;  %v3191_v63 = vadd.f32 %v1452_v60, %v1387_v49  ;;  %v1259_v0 = vpop.f32.mrf.mxu1  ;;  %v1785_v49 = vshll.u32 %v3163_v37, 16 }
 0x185   : > { %v1787_v36 = vrot.slane %v1785_v49, 4 }
 0x186   : > { %2487 = vmatmul.msk.bf16.gmra.mxu1 %vm1145_vm0, %v3099_v55  ;;  %2509 = vmatmul.msk.bf16.gmra.mxu2 %vm1145_vm0, %v3128_v41 }
 0x187   : > { %2530 = vmatmul.msk.bf16.gmra.mxu3 %vm1145_vm0, %v3107_v59  ;;  %v1788_v58 = vor.u32 %v1787_v36, %v1784_v10 }
 0x188   : > { %v1180_v61 = vpop.f32.mrf.mxu0 }
 0x189   : > { %v1260_v1 = vadd.f32 %v1259_v0, %v1180_v61  ;;  %v1364_v3 = vpop.f32.mrf.mxu2  ;;  %v1797_v0 = vsel %vm1065_vm7, %v1788_v58, %v1796_v2 }
 0x18a   : > { %v1454_v54 = vpop.f32.mrf.mxu3 }
 0x18b   : > { %v1390_v56 = vadd.f32 %v1364_v3, %v1260_v1  ;;  %v3202_v8 = vadd.f32 %v1454_v54, %v1388_v53  ;;  %2465 = vmatmul.msk.bf16.gmra.mxu0 %vm1145_vm0, %v3107_v59  ;;  %v1262_v9 = vpop.f32.mrf.mxu1 }
 0x190   : > { %v1183_v11 = vpop.f32.mrf.mxu0 }
 0x191   : > { %v1263_v22 = vadd.f32 %v1262_v9, %v1183_v11  ;;  %v1367_v12 = vpop.f32.mrf.mxu2 }
 0x192   : > { %v1457_v7 = vpop.f32.mrf.mxu3 }
 0x193   : > { %v1391_v13 = vadd.f32 %v1367_v12, %v1263_v22  ;;  %v3206_v41 = vadd.f32 %v1457_v7, %v1389_v62  ;;  %v1264_v16 = vpop.f32.mrf.mxu1 }
 0x196   : > { %2488 = vmatmul.msk.bf16.gmra.mxu1 %vm1145_vm0, %v3131_v42  ;;  %2510 = vmatmul.msk.bf16.gmra.mxu2 %vm1145_vm0, %v3152_v28 }
 0x197   : > { %2531 = vmatmul.msk.bf16.gmra.mxu3 %vm1145_vm0, %v3140_v25 }
 0x198   : > { %v1185_v17 = vpop.f32.mrf.mxu0 }
 0x199   : > { %v1265_v59 = vadd.f32 %v1264_v16, %v1185_v17  ;;  %v1369_v18 = vpop.f32.mrf.mxu2 }
 0x19a   : > { %v1459_v20 = vpop.f32.mrf.mxu3 }
 0x19b   : > { %v1392_v21 = vadd.f32 %v1369_v18, %v1265_v59  ;;  %v3214_v6 = vadd.f32 %v1459_v20, %v1390_v56  ;;  %2466 = vmatmul.msk.bf16.gmra.mxu0 %vm1145_vm0, %v3140_v25  ;;  %v1267_v26 = vpop.f32.mrf.mxu1 }
 0x1a0   : > { %v1188_v34 = vpop.f32.mrf.mxu0 }
 0x1a1   : > { %v1268_v30 = vadd.f32 %v1267_v26, %v1188_v34  ;;  %v1372_v27 = vpop.f32.mrf.mxu2 }
 0x1a2   : > { %v1462_v28 = vpop.f32.mrf.mxu3 }
 0x1a3   : > { %v1393_v19 = vadd.f32 %v1372_v27, %v1268_v30  ;;  %v3218_v33 = vadd.f32 %v1462_v28, %v1391_v13  ;;  %v1269_v25 = vpop.f32.mrf.mxu1 }
 0x1a6   : > { %2489 = vmatmul.msk.bf16.gmra.mxu1 %vm1145_vm0, %v3155_v32  ;;  %2511 = vmatmul.msk.bf16.gmra.mxu2 %vm1145_vm0, %v1694_v35 }
 0x1a7   : > { %2532 = vmatmul.msk.bf16.gmra.mxu3 %vm1145_vm0, %v3166_v40 }
 0x1a8   : > { %v1190_v38 = vpop.f32.mrf.mxu0 }
 0x1a9   : > { %v1270_v14 = vadd.f32 %v1269_v25, %v1190_v38  ;;  %v1374_v23 = vpop.f32.mrf.mxu2 }
 0x1aa   : > { %v1464_v39 = vpop.f32.mrf.mxu3 }
 0x1ab   : > { %v1394_v46 = vadd.f32 %v1374_v23, %v1270_v14  ;;  %v1487_v43 = vadd.f32 %v1464_v39, %v1392_v21  ;;  %2467 = vmatmul.msk.bf16.gmra.mxu0 %vm1145_vm0, %v3166_v40  ;;  %v1272_v50 = vpop.f32.mrf.mxu1 }
 0x1b2   : > { %v1467_v53 = vpop.f32.mrf.mxu3 }
 0x1b3   : > { %v1488_v57 = vadd.f32 %v1467_v53, %v1393_v19  ;;  %v1274_v37 = vpop.f32.mrf.mxu1 }
 0x1b5   : > { %v1193_v60 = vpop.f32.mrf.mxu0 }
 0x1b6   : > { %v1273_v62 = vadd.f32 %v1272_v50, %v1193_v60 }
 0x1b7   : > { %2533 = vmatmul.msk.bf16.gmra.mxu3 %vm1145_vm0, %v1797_v0  ;;  %v3269_v0 = vld [vmem:[%s3328_s4] ss:$0 sm:$0xff] }
 0x1b9   : > { %v1377_v40 = vpop.f32.mrf.mxu2 }
 0x1ba   : > { %v1395_v15 = vadd.f32 %v1377_v40, %v1273_v62  ;;  %v1469_v61 = vpop.f32.mrf.mxu3 }
 0x1bb   : > { %v1489_v1 = vadd.f32 %v1469_v61, %v1394_v46  ;;  %2550 = vmatmul.msk.bf16.vlgmr.msrb.gmra.mxu0 %vm1145_vm0, %v3021_v5 }
 0x1bd   : > { %v1195_v3 = vpop.f32.mrf.mxu0 }
 0x1be   : > { %v1275_v54 = vadd.f32 %v1274_v37, %v1195_v3 }
 0x1c1   : > { %v1379_v56 = vpop.f32.mrf.mxu2 }
 0x1c2   : > { %v1396_v9 = vadd.f32 %v1379_v56, %v1275_v54 }
 0x1c3   : > { %v1277_v11 = vpop.f32.mrf.mxu1 }
 0x1c8   : > { %v1198_v22 = vpop.f32.mrf.mxu0 }
 0x1c9   : > { %v1278_v12 = vadd.f32 %v1277_v11, %v1198_v22  ;;  %v1382_v7 = vpop.f32.mrf.mxu2 }
 0x1ca   : > { %v1472_v13 = vpop.f32.mrf.mxu3 }
 0x1cb   : > { %v1397_v16 = vadd.f32 %v1382_v7, %v1278_v12  ;;  %v1490_v17 = vadd.f32 %v1472_v13, %v1395_v15  ;;  %2551 = vmatmul.msk.bf16.gmra.mxu0 %vm1145_vm0, %v3040_v48  ;;  %v1279_v59 = vpop.f32.mrf.mxu1 }
 0x1d0   : > { %v1200_v18 = vpop.f32.mrf.mxu0 }
 0x1d1   : > { %v1280_v20 = vadd.f32 %v1279_v59, %v1200_v18  ;;  %v1384_v21 = vpop.f32.mrf.mxu2 }
 0x1d2   : > { %v1474_v5 = vpop.f32.mrf.mxu3 }
 0x1d3   : > { %v1398_v24 = vadd.f32 %v1384_v21, %v1280_v20  ;;  %v1491_v26 = vadd.f32 %v1474_v5, %v1396_v9 }
 0x1d8   : > { %v1555_v34 = vpop.f32.mrf.mxu0 }
 0x1d9   : > { %v1585_v30 = vadd.f32 %v1555_v34, %v3191_v63  ;;  %v1739_v46 = vpop.f32.mrf.mxu2 }
 0x1da   : > { %v1477_v27 = vpop.f32.mrf.mxu3 }
 0x1db   : > { %v1492_v31 = vadd.f32 %v1477_v27, %v1397_v16  ;;  %2552 = vmatmul.msk.bf16.gmra.mxu0 %vm1145_vm0, %v3099_v55 }
 0x1e0   : > { %v1557_v28 = vpop.f32.mrf.mxu0 }
 0x1e1   : > { %v1586_v19 = vadd.f32 %v1557_v28, %v3202_v8  ;;  %v1741_v51 = vpop.f32.mrf.mxu2 }
 0x1e2   : > { %v1479_v29 = vpop.f32.mrf.mxu3 }
 0x1e3   : > { %v1493_v48 = vadd.f32 %v1479_v29, %v1398_v24 }
 0x1e8   : > { %v1560_v35 = vpop.f32.mrf.mxu0 }
 0x1e9   : > { %v1587_v25 = vadd.f32 %v1560_v35, %v3206_v41  ;;  %v1744_v50 = vpop.f32.mrf.mxu2 }
 0x1ea   : > { %v1842_v47 = vpop.f32.mrf.mxu3 }
 0x1eb   : > { %2553 = vmatmul.msk.bf16.gmra.mxu0 %vm1145_vm0, %v3131_v42 }
 0x1f0   : > { %v1562_v38 = vpop.f32.mrf.mxu0 }
 0x1f1   : > { %v1588_v14 = vadd.f32 %v1562_v38, %v3214_v6  ;;  %v1746_v37 = vpop.f32.mrf.mxu2 }
 0x1f2   : > { %v1844_v52 = vpop.f32.mrf.mxu3 }
 0x1f8   : > { %v1565_v63 = vpop.f32.mrf.mxu0 }
 0x1f9   : > { %v3246_v23 = vadd.f32 %v1565_v63, %v3218_v33  ;;  %v1644_v33 = vpop.f32.mrf.mxu1  ;;  %v1749_v18 = vpop.f32.mrf.mxu2 }
 0x1fa   : > { %v1674_v2 = vadd.f32 %v1644_v33, %v1585_v30  ;;  %v1847_v58 = vpop.f32.mrf.mxu3 }
 0x1fb   : > { %2554 = vmatmul.msk.bf16.gmra.mxu0 %vm1145_vm0, %v3155_v32 }
 0x1fc   : > { %v1769_v60 = vadd.f32 %v1739_v46, %v1674_v2 }
 0x1fe   : > { %v1872_v62 = vadd.f32 %v1842_v47, %v1769_v60 }
 0x200   : > { %v1567_v55 = vpop.f32.mrf.mxu0 }
 0x201   : > { %v3250_v8 = vadd.f32 %v1567_v55, %v1487_v43  ;;  %v1646_v43 = vpop.f32.mrf.mxu1  ;;  %v1751_v29 = vpop.f32.mrf.mxu2 }
 0x202   : > { %v1675_v61 = vadd.f32 %v1646_v43, %v1586_v19  ;;  %v1849_v54 = vpop.f32.mrf.mxu3 }
 0x204   : > { %v1770_v56 = vadd.f32 %v1741_v51, %v1675_v61 }
 0x206   : > { %v1873_v11 = vadd.f32 %v1844_v52, %v1770_v56 }
 0x208   : > { %v1570_v4 = vpop.f32.mrf.mxu0 }
 0x209   : > { %v3252_v45 = vadd.f32 %v1570_v4, %v1488_v57  ;;  %v1754_v43 = vpop.f32.mrf.mxu2 }
 0x20a   : > { %v1852_v21 = vpop.f32.mrf.mxu3 }
 0x20b   : > { %2555 = vmatmul.msk.bf16.gmra.mxu0 %vm1145_vm0, %v3170_v44  ;;  %v1649_v44 = vpop.f32.mrf.mxu1 }
 0x20c   : > { %v1676_v7 = vadd.f32 %v1649_v44, %v1587_v25 }
 0x20e   : > { %v1771_v59 = vadd.f32 %v1744_v50, %v1676_v7 }
 0x210   : > { %v1572_v42 = vpop.f32.mrf.mxu0  ;;  %v1874_v5 = vadd.f32 %v1847_v58, %v1771_v59 }
 0x211   : > { %v3256_v41 = vadd.f32 %v1572_v42, %v1489_v1 }
 0x212   : > { %v1854_v25 = vpop.f32.mrf.mxu3 }
 0x213   : > { %v1651_v40 = vpop.f32.mrf.mxu1 }
 0x214   : > { %v1677_v34 = vadd.f32 %v1651_v40, %v1588_v14 }
 0x216   : > { %v1772_v28 = vadd.f32 %v1746_v37, %v1677_v34 }
 0x218   : > { %v1575_v6 = vpop.f32.mrf.mxu0 }
 0x219   : > { %v3258_v39 = vadd.f32 %v1575_v6, %v1490_v17 }
 0x21a   : > { %v1857_v52 = vpop.f32.mrf.mxu3 }
 0x21b   : > { %v1654_v16 = vpop.f32.mrf.mxu1 }
 0x21c   : > { %v1678_v63 = vadd.f32 %v1654_v16, %v3246_v23 }
 0x21e   : > { %v1773_v4 = vadd.f32 %v1749_v18, %v1678_v63 }
 0x220   : > { %v1577_v49 = vpop.f32.mrf.mxu0  ;;  %v1876_v33 = vadd.f32 %v1852_v21, %v1773_v4 }
 0x221   : > { %v3260_v32 = vadd.f32 %v1577_v49, %v1491_v26 }
 0x228   : > { %v1580_v10 = vpop.f32.mrf.mxu0 }
 0x229   : > { %v3262_v36 = vadd.f32 %v1580_v10, %v1492_v31  ;;  %v1656_v31 = vpop.f32.mrf.mxu1 }
 0x22a   : > { %v1679_v49 = vadd.f32 %v1656_v31, %v3250_v8  ;;  %v1756_v8 = vpop.f32.mrf.mxu2 }
 0x22c   : > { %v1774_v10 = vadd.f32 %v1751_v29, %v1679_v49 }
 0x230   : > { %v1582_v53 = vpop.f32.mrf.mxu0 }
 0x231   : > { %v3264_v57 = vadd.f32 %v1582_v53, %v1493_v48  ;;  %v1875_v48 = vadd.f32 %v1849_v54, %v1772_v28  ;;  %v1659_v6 = vpop.f32.mrf.mxu1  ;;  %v1877_v53 = vadd.f32 %v1854_v25, %v1774_v10 }
 0x232   : > { %v1680_v60 = vadd.f32 %v1659_v6, %v3252_v45 }
 0x234   : > { %v1775_v61 = vadd.f32 %v1754_v43, %v1680_v60 }
 0x236   : > { %v1878_v37 = vadd.f32 %v1857_v52, %v1775_v61 }
 0x238   : > { %v1929_v15 = vpop.f32.mrf.mxu0 }
 0x239   : > { %v1959_v1 = vadd.f32 %v1929_v15, %v1872_v62  ;;  %v1661_v50 = vpop.f32.mrf.mxu1  ;;  %v1859_v15 = vpop.f32.mrf.mxu3 }
 0x23a   : > { %v1681_v56 = vadd.f32 %v1661_v50, %v3256_v41 }
 0x23b   : > { %v1975_v3 = vadd.f32 %v3269_v0, %v1959_v1 }
 0x23d   : > { %v1987_v9 = vmax.f32 %v1975_v3, 0.0 }
 0x23f   : > { %v1999_v22 = vpack.c.bf16 %v1987_v9, %v1987_v9 }
 0x240   : > { %v1931_v12 = vpop.f32.mrf.mxu0 }
 0x241   : > { %2012 = vst.msk [vmem:[%s3276_s6] sm:$0xf] %vm2011_vm8, %v1999_v22  ;;  %v1960_v13 = vadd.f32 %v1931_v12, %v1873_v11  ;;  %v1664_v11 = vpop.f32.mrf.mxu1  ;;  %v1776_v22 = vadd.f32 %v1756_v8, %v1681_v56  ;;  %v1759_v12 = vpop.f32.mrf.mxu2 }
 0x242   : > { %v1682_v18 = vadd.f32 %v1664_v11, %v3258_v39 }
 0x243   : > { %v1976_v17 = vadd.f32 %v3269_v0, %v1960_v13  ;;  %v1862_v13 = vpop.f32.mrf.mxu3  ;;  %v1879_v16 = vadd.f32 %v1859_v15, %v1776_v22 }
 0x245   : > { %v1988_v20 = vmax.f32 %v1976_v17, 0.0 }
 0x247   : > { %v2000_v24 = vpack.c.bf16 %v1988_v20, %v1988_v20 }
 0x248   : > { %v1934_v26 = vpop.f32.mrf.mxu0 }
 0x249   : > { %2013 = vst.msk [vmem:[%s3276_s6 + $0x4] sm:$0xf] %vm2011_vm8, %v2000_v24  ;;  %v1961_v30 = vadd.f32 %v1934_v26, %v1874_v5  ;;  %v1666_v21 = vpop.f32.mrf.mxu1  ;;  %v1777_v5 = vadd.f32 %v1759_v12, %v1682_v18  ;;  %v1761_v26 = vpop.f32.mrf.mxu2 }
 0x24a   : > { %v1683_v28 = vadd.f32 %v1666_v21, %v3260_v32 }
 0x24b   : > { %v1977_v27 = vadd.f32 %v3269_v0, %v1961_v30  ;;  %v1880_v34 = vadd.f32 %v1862_v13, %v1777_v5 }
 0x24c   : > { %v1778_v29 = vadd.f32 %v1761_v26, %v1683_v28 }
 0x24d   : > { %v1989_v19 = vmax.f32 %v1977_v27, 0.0  ;;  %v1864_v27 = vpop.f32.mrf.mxu3 }
 0x24e   : > { %v1881_v25 = vadd.f32 %v1864_v27, %v1778_v29 }
 0x24f   : > { %v2001_v35 = vpack.c.bf16 %v1989_v19, %v1989_v19 }
 0x250   : > { %v1936_v38 = vpop.f32.mrf.mxu0 }
 0x251   : > { %2014 = vst.msk [vmem:[%s3276_s6 + $0x8] sm:$0xf] %vm2011_vm8, %v2001_v35  ;;  %v1962_v55 = vadd.f32 %v1936_v38, %v1875_v48  ;;  %v1669_v35 = vpop.f32.mrf.mxu1  ;;  %v1764_v4 = vpop.f32.mrf.mxu2 }
 0x253   : > { %v1978_v14 = vadd.f32 %v3269_v0, %v1962_v55  ;;  %v1684_v55 = vadd.f32 %v1669_v35, %v3262_v36 }
 0x255   : > { %v1990_v42 = vmax.f32 %v1978_v14, 0.0  ;;  %v1779_v6 = vadd.f32 %v1764_v4, %v1684_v55 }
 0x257   : > { %v2002_v46 = vpack.c.bf16 %v1990_v42, %v1990_v42  ;;  %v1867_v42 = vpop.f32.mrf.mxu3 }
 0x258   : > { %v1939_v47 = vpop.f32.mrf.mxu0 }
 0x259   : > { %2015 = vst.msk [vmem:[%s3276_s6 + $0xc] sm:$0xf] %vm2011_vm8, %v2002_v46  ;;  %v1963_v51 = vadd.f32 %v1939_v47, %v1876_v33  ;;  %v1882_v46 = vadd.f32 %v1867_v42, %v1779_v6  ;;  %v1671_v49 = vpop.f32.mrf.mxu1 }
 0x25b   : > { %v1979_v23 = vadd.f32 %v3269_v0, %v1963_v51  ;;  %v1685_v51 = vadd.f32 %v1671_v49, %v3264_v57 }
 0x25d   : > { %v1991_v44 = vmax.f32 %v1979_v23, 0.0  ;;  %v1766_v23 = vpop.f32.mrf.mxu2 }
 0x25f   : > { %v2003_v2 = vpack.c.bf16 %v1991_v44, %v1991_v44  ;;  %v1869_v10 = vpop.f32.mrf.mxu3  ;;  %v1780_v44 = vadd.f32 %v1766_v23, %v1685_v51 }
 0x260   : > { %v1941_v58 = vpop.f32.mrf.mxu0 }
 0x261   : > { %2016 = vst.msk [vmem:[%s3276_s6 + $0x10] sm:$0xf] %vm2011_vm8, %v2003_v2  ;;  %v1964_v62 = vadd.f32 %v1941_v58, %v1877_v53  ;;  %v1883_v2 = vadd.f32 %v1869_v10, %v1780_v44 }
 0x263   : > { %v1980_v40 = vadd.f32 %v3269_v0, %v1964_v62 }
 0x265   : > { %v1992_v1 = vmax.f32 %v1980_v40, 0.0 }
 0x267   : > { %v2004_v3 = vpack.c.bf16 %v1992_v1, %v1992_v1 }
 0x268   : > { %v1944_v54 = vpop.f32.mrf.mxu0 }
 0x269   : > { %2017 = vst.msk [vmem:[%s3276_s6 + $0x14] sm:$0xf] %vm2011_vm8, %v2004_v3  ;;  %v1965_v9 = vadd.f32 %v1944_v54, %v1878_v37 }
 0x26b   : > { %v1981_v45 = vadd.f32 %v3269_v0, %v1965_v9 }
 0x26d   : > { %v1993_v7 = vmax.f32 %v1981_v45, 0.0 }
 0x26f   : > { %v2005_v17 = vpack.c.bf16 %v1993_v7, %v1993_v7 }
 0x270   : > { %v1946_v59 = vpop.f32.mrf.mxu0 }
 0x271   : > { %2018 = vst.msk [vmem:[%s3276_s6 + $0x18] sm:$0xf] %vm2011_vm8, %v2005_v17  ;;  %v1966_v20 = vadd.f32 %v1946_v59, %v1879_v16 }
 0x273   : > { %v1982_v41 = vadd.f32 %v3269_v0, %v1966_v20 }
 0x275   : > { %v1994_v24 = vmax.f32 %v1982_v41, 0.0 }
 0x277   : > { %v2006_v30 = vpack.c.bf16 %v1994_v24, %v1994_v24 }
 0x278   : > { %v1949_v31 = vpop.f32.mrf.mxu0 }
 0x279   : > { %2019 = vst.msk [vmem:[%s3276_s6 + $0x1c] sm:$0xf] %vm2011_vm8, %v2006_v30  ;;  %v1967_v19 = vadd.f32 %v1949_v31, %v1880_v34 }
 0x27b   : > { %v1983_v39 = vadd.f32 %v3269_v0, %v1967_v19 }
 0x27d   : > { %v1995_v48 = vmax.f32 %v1983_v39, 0.0 }
 0x27f   : > { %v2007_v38 = vpack.c.bf16 %v1995_v48, %v1995_v48 }
 0x280   : > { %v1951_v63 = vpop.f32.mrf.mxu0 }
 0x281   : > { %2020 = vst.msk [vmem:[%s3276_s6 + $0x20] sm:$0xf] %vm2011_vm8, %v2007_v38  ;;  %v1968_v14 = vadd.f32 %v1951_v63, %v1881_v25 }
 0x283   : > { %v1984_v32 = vadd.f32 %v3269_v0, %v1968_v14 }
 0x285   : > { %v1996_v33 = vmax.f32 %v1984_v32, 0.0 }
 0x287   : > { %v2008_v47 = vpack.c.bf16 %v1996_v33, %v1996_v33 }
 0x288   : > { %v1954_v43 = vpop.f32.mrf.mxu0 }
 0x289   : > { %2021 = vst.msk [vmem:[%s3276_s6 + $0x24] sm:$0xf] %vm2011_vm8, %v2008_v47  ;;  %v1969_v36 = vadd.f32 %v1954_v43, %v1882_v46 }
 0x28b   : > { %v1985_v52 = vadd.f32 %v3269_v0, %v1969_v36 }
 0x28d   : > { %v1997_v53 = vmax.f32 %v1985_v52, 0.0 }
 0x28f   : > { %v2009_v50 = vpack.c.bf16 %v1997_v53, %v1997_v53 }
 0x290   : > { %v1956_v58 = vpop.f32.mrf.mxu0 }
 0x291   : > { %2022 = vst.msk [vmem:[%s3276_s6 + $0x28] sm:$0xf] %vm2011_vm8, %v2009_v50  ;;  %v1970_v60 = vadd.f32 %v1956_v58, %v1883_v2 }
 0x293   : > { %v1986_v62 = vadd.f32 %v3269_v0, %v1970_v60 }
 0x295   : > { %v1998_v8 = vmax.f32 %v1986_v62, 0.0 }
 0x297   : > { %v2010_v57 = vpack.c.bf16 %v1998_v8, %v1998_v8 }
 0x299   : > { %2023 = vst.msk [vmem:[%s3276_s6 + $0x2c] sm:$0xf] %vm2011_vm8, %v2010_v57 }
 0x29a PF: > { %s15_s18 = sadd.s32 1, %s2696_s18  }
 0x29b   : > { %p12_p4 = scmp.ge.s32.totalorder %s15_s18, 4  }
 0x29d   :  { %14 = sbr.rel (!%p12_p4) target bundleno = 1 (0x1), region = 70 }

// kernel: dueling_dqn_forward.5
= control target key start
LH: loop header
LB: loop body
LE: loop exit
PB: predicated region body
PF: predicated region fallthrough
CT: control target
= control target key end

     0   :  { %vm58_vm0 = vcmask 1044480   ;;  %vm54_vm1 = vcmask 39936   ;;  %vm1032_vm2 = vcmask 523264   ;;  %vm4131_vm3 = vcmask 58368   ;;  %s7632_s2 = inlined_call_operand.vmem [shape: f32[5,256], index: 2, kind: input, shape index: {}]   ;;  %s7633_s1 = inlined_call_operand.vmem [shape: f32[2,5], index: 1, kind: input, shape index: {}]   ;;  %s7634_s4 = inlined_call_operand.vmem [shape: f32[256,128], index: 4, kind: input, shape index: {}]   ;;  %s7635_s5 = inlined_call_operand.vmem [shape: f32[1,128], index: 5, kind: input, shape index: {}]   ;;  %s7636_s6 = inlined_call_operand.vmem [shape: f32[128,64], index: 6, kind: input, shape index: {}]   ;;  %s7637_s3 = inlined_call_operand.vmem [shape: f32[1,256], index: 3, kind: input, shape index: {}]   ;;  %s7638_s7 = inlined_call_operand.vmem [shape: f32[1,64], index: 7, kind: input, shape index: {}]   ;;  %s7639_s9 = inlined_call_operand.vmem [shape: bf16[64,128], index: 9, kind: input, shape index: {}]   ;;  %s7640_s8 = inlined_call_operand.vmem [shape: bf16[6144,128], index: 8, kind: input, shape index: {}]   ;;  %s7641_s0 = inlined_call_operand.vmem [shape: bf16[2,6144], index: 0, kind: input, shape index: {}]   ;;  %s7642_s10 = inlined_call_operand.vmem [shape: f32[1,128], index: 10, kind: input, shape index: {}]   ;;  %s7643_s12 = inlined_call_operand.vmem [shape: f32[1,8], index: 12, kind: input, shape index: {}]   ;;  %s7644_s11 = inlined_call_operand.vmem [shape: f32[128,8], index: 11, kind: input, shape index: {}]   ;;  %s7645_s13 = inlined_call_operand.vmem [shape: f32[2,8], index: 13, kind: output, shape index: {}]  }
   0x1   :  { %v47_v0 = vld [vmem:[%s7632_s2 + $0x8] sm:$0x1f]  ;;  %v45_v1 = vld [vmem:[%s7633_s1] sm:$0x3]  ;;  %v122_v3 = vld [vmem:[%s7634_s4 + $0x78] sm:$0xff] }
   0x2   :  { %v46_v2 = vld [vmem:[%s7632_s2] sm:$0x1f]  ;;  %4139 = vmatpush.msk.msra.mxu2 %vm58_vm0, %v47_v0  ;;  %v138_v4 = vld [vmem:[%s7634_s4 + $0xf8] sm:$0xff]  ;;  %v121_v5 = vld [vmem:[%s7634_s4 + $0x70] sm:$0xff] }
   0x3   :  { %4137 = vmatpush.msk.msra.mxu0 %vm58_vm0, %v46_v2  ;;  %4140 = vmatmul.msk.f32.vlgmr.msra.gmra.mxu2 %vm54_vm1, %v45_v1  ;;  %v137_v6 = vld [vmem:[%s7634_s4 + $0xf0] sm:$0xff]  ;;  %v120_v7 = vld [vmem:[%s7634_s4 + $0x68] sm:$0xff]  ;;  %v119_v9 = vld [vmem:[%s7634_s4 + $0x60] sm:$0xff] }
   0x4   :  { %4138 = vmatmul.msk.f32.vlgmr.msra.gmra.mxu0 %vm54_vm1, %v45_v1  ;;  %143 = vmatpush.msrb.mxu2 %v122_v3  ;;  %v136_v8 = vld [vmem:[%s7634_s4 + $0xe8] sm:$0xff]  ;;  %v135_v10 = vld [vmem:[%s7634_s4 + $0xe0] sm:$0xff]  ;;  %v118_v11 = vld [vmem:[%s7634_s4 + $0x58] sm:$0xff] }
   0x5   :  { %163 = vmatpush.msra.mxu3 %v138_v4  ;;  %v134_v12 = vld [vmem:[%s7634_s4 + $0xd8] sm:$0xff]  ;;  %v117_v13 = vld [vmem:[%s7634_s4 + $0x50] sm:$0xff]  ;;  %v116_v15 = vld [vmem:[%s7634_s4 + $0x48] sm:$0xff] }
   0x6   :  { %144 = vmatpush.msrb.mxu2 %v121_v5  ;;  %v133_v14 = vld [vmem:[%s7634_s4 + $0xd0] sm:$0xff]  ;;  %v132_v16 = vld [vmem:[%s7634_s4 + $0xc8] sm:$0xff]  ;;  %v115_v17 = vld [vmem:[%s7634_s4 + $0x40] sm:$0xff] }
   0x7   :  { %164 = vmatpush.msra.mxu3 %v137_v6  ;;  %v131_v18 = vld [vmem:[%s7634_s4 + $0xc0] sm:$0xff]  ;;  %v114_v19 = vld [vmem:[%s7634_s4 + $0x38] sm:$0xff]  ;;  %v113_v21 = vld [vmem:[%s7634_s4 + $0x30] sm:$0xff] }
   0x8   :  { %145 = vmatpush.msrb.mxu2 %v120_v7  ;;  %v130_v20 = vld [vmem:[%s7634_s4 + $0xb8] sm:$0xff]  ;;  %v129_v22 = vld [vmem:[%s7634_s4 + $0xb0] sm:$0xff]  ;;  %v112_v23 = vld [vmem:[%s7634_s4 + $0x28] sm:$0xff] }
   0x9   :  { %165 = vmatpush.msra.mxu3 %v136_v8  ;;  %v128_v24 = vld [vmem:[%s7634_s4 + $0xa8] sm:$0xff]  ;;  %v111_v25 = vld [vmem:[%s7634_s4 + $0x20] sm:$0xff]  ;;  %v110_v27 = vld [vmem:[%s7634_s4 + $0x18] sm:$0xff] }
   0xa   :  { %146 = vmatpush.msrb.mxu2 %v119_v9  ;;  %v127_v26 = vld [vmem:[%s7634_s4 + $0xa0] sm:$0xff]  ;;  %v109_v28 = vld [vmem:[%s7634_s4 + $0x10] sm:$0xff]  ;;  %v126_v29 = vld [vmem:[%s7634_s4 + $0x98] sm:$0xff] }
   0xb   :  { %166 = vmatpush.msra.mxu3 %v135_v10  ;;  %v108_v30 = vld [vmem:[%s7634_s4 + $0x8] sm:$0xff]  ;;  %v125_v31 = vld [vmem:[%s7634_s4 + $0x90] sm:$0xff]  ;;  %v107_v32 = vld [vmem:[%s7634_s4] sm:$0xff] }
   0xc   :  { %147 = vmatpush.msrb.mxu2 %v118_v11  ;;  %v124_v33 = vld [vmem:[%s7634_s4 + $0x88] sm:$0xff]  ;;  %v123_v34 = vld [vmem:[%s7634_s4 + $0x80] sm:$0xff]  ;;  %v199_v35 = vld [vmem:[%s7636_s6 + $0x78] sm:$0xff] }
   0xd   :  { %167 = vmatpush.msra.mxu3 %v134_v12  ;;  %v198_v36 = vld [vmem:[%s7636_s6 + $0x70] sm:$0xff]  ;;  %204 = vmatpush.msrb.mxu0 %v199_v35  ;;  %v197_v37 = vld [vmem:[%s7636_s6 + $0x68] sm:$0xff]  ;;  %v196_v38 = vld [vmem:[%s7636_s6 + $0x60] sm:$0xff] }
   0xe   :  { %148 = vmatpush.msrb.mxu2 %v117_v13  ;;  %v195_v39 = vld [vmem:[%s7636_s6 + $0x58] sm:$0xff]  ;;  %v194_v40 = vld [vmem:[%s7636_s6 + $0x50] sm:$0xff]  ;;  %v193_v41 = vld [vmem:[%s7636_s6 + $0x48] sm:$0xff] }
   0xf   :  { %168 = vmatpush.msra.mxu3 %v133_v14  ;;  %205 = vmatpush.msrb.mxu0 %v198_v36  ;;  %v192_v42 = vld [vmem:[%s7636_s6 + $0x40] sm:$0xff]  ;;  %v191_v43 = vld [vmem:[%s7636_s6 + $0x38] sm:$0xff]  ;;  %v190_v45 = vld [vmem:[%s7636_s6 + $0x30] sm:$0xff] }
  0x10   :  { %149 = vmatpush.msrb.mxu2 %v116_v15  ;;  %v48_v44 = vld [vmem:[%s7637_s3] sm:$0x3]  ;;  %v189_v47 = vld [vmem:[%s7636_s6 + $0x28] sm:$0xff]  ;;  %v187_v56 = vld [vmem:[%s7636_s6 + $0x18] sm:$0xff] }
  0x11   :  { %169 = vmatpush.msra.mxu3 %v132_v16  ;;  %206 = vmatpush.msrb.mxu0 %v197_v37  ;;  %v50_v46 = vperm.slane %v48_v44, 0  ;;  %v188_v48 = vld [vmem:[%s7636_s6 + $0x20] sm:$0xff]  ;;  %v51_v52 = vperm.slane %v48_v44, 1  ;;  %v186_v57 = vld [vmem:[%s7636_s6 + $0x10] sm:$0xff]  ;;  %v185_v58 = vld [vmem:[%s7636_s6 + $0x8] sm:$0xff] }
  0x12   :  { %150 = vmatpush.msrb.mxu2 %v115_v17  ;;  %v184_v59 = vld [vmem:[%s7636_s6] sm:$0xff]  ;;  %v6081_v60 = vld [vmem:[%s7639_s9 + $0x18] sm:$0xff]  ;;  %v6080_v63 = vld [vmem:[%s7639_s9 + $0x10] sm:$0xff] }
  0x13   :  { %170 = vmatpush.msra.mxu3 %v131_v18  ;;  %207 = vmatpush.msrb.mxu0 %v196_v38  ;;  %v5709_v61 = vld [vmem:[%s7640_s8 + $0x78] sm:$0xff]  ;;  %v5708_v0 = vld [vmem:[%s7640_s8 + $0x70] sm:$0xff]  ;;  %v6079_v4 = vld [vmem:[%s7639_s9 + $0x8] sm:$0xff] }
  0x14   :  { %151 = vmatpush.msrb.mxu2 %v114_v19  ;;  %v5717_v62 = vld [vmem:[%s7640_s8 + $0xb8] sm:$0xff]  ;;  %1040 = vmatpush.bf16.msra.mxu1 %v6081_v60  ;;  %v5716_v1 = vld [vmem:[%s7640_s8 + $0xb0] sm:$0xff]  ;;  %v5707_v5 = vld [vmem:[%s7640_s8 + $0x68] sm:$0xff] }
  0x15   :  { %171 = vmatpush.msra.mxu3 %v130_v20  ;;  %208 = vmatpush.msrb.mxu0 %v195_v39  ;;  %v5725_v2 = vld [vmem:[%s7640_s8 + $0xf8] sm:$0xff]  ;;  %v5724_v3 = vld [vmem:[%s7640_s8 + $0xf0] sm:$0xff]  ;;  %v5715_v6 = vld [vmem:[%s7640_s8 + $0xa8] sm:$0xff] }
  0x16   :  { %152 = vmatpush.msrb.mxu2 %v113_v21  ;;  %v5723_v7 = vld [vmem:[%s7640_s8 + $0xe8] sm:$0xff]  ;;  %v6078_v8 = vld [vmem:[%s7639_s9] sm:$0xff]  ;;  %v5701_v10 = vld [vmem:[%s7640_s8 + $0x38] sm:$0xff] }
  0x17   :  { %172 = vmatpush.msra.mxu3 %v129_v22  ;;  %209 = vmatpush.msrb.mxu0 %v194_v40  ;;  %v5706_v9 = vld [vmem:[%s7640_s8 + $0x60] sm:$0xff]  ;;  %v5705_v13 = vld [vmem:[%s7640_s8 + $0x58] sm:$0xff]  ;;  %v5700_v14 = vld [vmem:[%s7640_s8 + $0x30] sm:$0xff] }
  0x18   :  { %153 = vmatpush.msrb.mxu2 %v112_v23  ;;  %1041 = vmatpush.bf16.msra.mxu1 %v6080_v63  ;;  %v5714_v11 = vld [vmem:[%s7640_s8 + $0xa0] sm:$0xff]  ;;  %v5713_v15 = vld [vmem:[%s7640_s8 + $0x98] sm:$0xff]  ;;  %v5704_v17 = vld [vmem:[%s7640_s8 + $0x50] sm:$0xff] }
  0x19   :  { %173 = vmatpush.msra.mxu3 %v128_v24  ;;  %210 = vmatpush.msrb.mxu0 %v193_v41  ;;  %v5722_v12 = vld [vmem:[%s7640_s8 + $0xe0] sm:$0xff]  ;;  %v5721_v16 = vld [vmem:[%s7640_s8 + $0xd8] sm:$0xff]  ;;  %v5699_v18 = vld [vmem:[%s7640_s8 + $0x28] sm:$0xff] }
  0x1a   :  { %154 = vmatpush.msrb.mxu2 %v111_v25  ;;  %v5712_v19 = vld [vmem:[%s7640_s8 + $0x90] sm:$0xff]  ;;  %v6082_v20 = vld [vmem:[%s7635_s5] ss:$0 sm:$0xff]  ;;  %v5703_v23 = vld [vmem:[%s7640_s8 + $0x48] sm:$0xff] }
  0x1b   :  { %174 = vmatpush.msra.mxu3 %v127_v26  ;;  %211 = vmatpush.msrb.mxu0 %v192_v42  ;;  %v5720_v22 = vld [vmem:[%s7640_s8 + $0xd0] sm:$0xff]  ;;  %v5698_v24 = vld [vmem:[%s7640_s8 + $0x20] sm:$0xff]  ;;  %v5711_v25 = vld [vmem:[%s7640_s8 + $0x88] sm:$0xff] }
  0x1c   :  { %155 = vmatpush.msrb.mxu2 %v110_v27  ;;  %1042 = vmatpush.bf16.msra.mxu1 %v6079_v4  ;;  %v5702_v27 = vld [vmem:[%s7640_s8 + $0x40] sm:$0xff]  ;;  %v5696_v35 = vld [vmem:[%s7640_s8 + $0x10] sm:$0xff]  ;;  %v5719_v37 = vld [vmem:[%s7640_s8 + $0xc8] sm:$0xff] }
  0x1d   :  { %175 = vmatpush.msra.mxu3 %v126_v29  ;;  %212 = vmatpush.msrb.mxu0 %v191_v43  ;;  %v5697_v29 = vld [vmem:[%s7640_s8 + $0x18] sm:$0xff]  ;;  %v5740_v36 = vld [vmem:[%s7640_s8 + $0x170] sm:$0xff]  ;;  %v5695_v39 = vld [vmem:[%s7640_s8 + $0x8] sm:$0xff] }
  0x1e   :  { %156 = vmatpush.msrb.mxu2 %v109_v28  ;;  %v5748_v38 = vld [vmem:[%s7640_s8 + $0x1b0] sm:$0xff]  ;;  %v5739_v40 = vld [vmem:[%s7640_s8 + $0x168] sm:$0xff]  ;;  %v5718_v41 = vld [vmem:[%s7640_s8 + $0xc0] sm:$0xff] }
  0x1f   :  { %176 = vmatpush.msra.mxu3 %v125_v31  ;;  %213 = vmatpush.msrb.mxu0 %v190_v45  ;;  %v5747_v42 = vld [vmem:[%s7640_s8 + $0x1a8] sm:$0xff]  ;;  %v5757_v43 = vld [vmem:[%s7640_s8 + $0x1f8] sm:$0xff]  ;;  %v5694_v44 = vld [vmem:[%s7640_s8] sm:$0xff] }
  0x20   :  { %157 = vmatpush.msrb.mxu2 %v108_v30  ;;  %1043 = vmatpush.bf16.msra.mxu1 %v6078_v8  ;;  %v5741_v30 = vld [vmem:[%s7640_s8 + $0x178] sm:$0xff]  ;;  %v5738_v45 = vld [vmem:[%s7640_s8 + $0x160] sm:$0xff]  ;;  %v5752_v63 = vld [vmem:[%s7640_s8 + $0x1d0] sm:$0xff] }
  0x21   :  { %177 = vmatpush.msra.mxu3 %v124_v33  ;;  %214 = vmatpush.msrb.mxu0 %v189_v47  ;;  %v5749_v33 = vld [vmem:[%s7640_s8 + $0x1b8] sm:$0xff]  ;;  %v5756_v47 = vld [vmem:[%s7640_s8 + $0x1f0] sm:$0xff]  ;;  %v5734_v60 = vld [vmem:[%s7640_s8 + $0x140] sm:$0xff] }
  0x22   :  { %158 = vmatpush.msrb.mxu2 %v107_v32  ;;  %v5710_v32 = vld [vmem:[%s7640_s8 + $0x80] sm:$0xff]  ;;  %v5780_v4 = vld [vmem:[%s7640_s8 + $0x2b0] sm:$0xff] }
  0x23   :  { %178 = vmatpush.msra.mxu3 %v123_v34  ;;  %215 = vmatpush.msrb.mxu0 %v188_v48  ;;  %v5737_v48 = vld [vmem:[%s7640_s8 + $0x158] sm:$0xff]  ;;  %v5750_v8 = vld [vmem:[%s7640_s8 + $0x1c0] sm:$0xff] }
  0x24   :  { %3474 = vmatpush.bf16.msra.mxu2 %v5709_v61  ;;  %3461 = vmatpush.bf16.msrb.mxu1 %v5701_v10  ;;  %v5773_v61 = vld [vmem:[%s7640_s8 + $0x278] sm:$0xff] }
  0x25   :  { %216 = vmatpush.msrb.mxu0 %v187_v56  ;;  %3487 = vmatpush.bf16.msrb.mxu3 %v5717_v62  ;;  %v5742_v62 = vld [vmem:[%s7640_s8 + $0x180] sm:$0xff]  ;;  %v5789_v10 = vld [vmem:[%s7640_s8 + $0x2f8] sm:$0xff] }
  0x27   :  { %217 = vmatpush.msrb.mxu0 %v186_v57 }
  0x28   :  { %3475 = vmatpush.bf16.msra.mxu2 %v5708_v0  ;;  %3462 = vmatpush.bf16.msrb.mxu1 %v5700_v14  ;;  %v5781_v0 = vld [vmem:[%s7640_s8 + $0x2b8] sm:$0xff]  ;;  %v5770_v14 = vld [vmem:[%s7640_s8 + $0x260] sm:$0xff] }
  0x29   :  { %218 = vmatpush.msrb.mxu0 %v185_v58  ;;  %3488 = vmatpush.bf16.msrb.mxu3 %v5716_v1  ;;  %v5743_v58 = vld [vmem:[%s7640_s8 + $0x188] sm:$0xff]  ;;  %v5772_v1 = vld [vmem:[%s7640_s8 + $0x270] sm:$0xff] }
  0x2b   :  { %219 = vmatpush.msrb.mxu0 %v184_v59  ;;  %v5753_v59 = vld [vmem:[%s7640_s8 + $0x1d8] sm:$0xff] }
  0x2c   :  { %3476 = vmatpush.bf16.msra.mxu2 %v5707_v5  ;;  %3463 = vmatpush.bf16.msrb.mxu1 %v5699_v18  ;;  %v6083_v5 = vld [vmem:[%s7638_s7] ss:$0 sm:$0xff] }
  0x2d   :  { %3500 = vmatpush.bf16.msra.mxu0 %v5725_v2  ;;  %3489 = vmatpush.bf16.msrb.mxu3 %v5715_v6  ;;  %v5771_v6 = vld [vmem:[%s7640_s8 + $0x268] sm:$0xff]  ;;  %v5778_v18 = vld [vmem:[%s7640_s8 + $0x2a0] sm:$0xff] }
  0x30   :  { %3477 = vmatpush.bf16.msra.mxu2 %v5706_v9  ;;  %3464 = vmatpush.bf16.msrb.mxu1 %v5698_v24  ;;  %v5779_v9 = vld [vmem:[%s7640_s8 + $0x2a8] sm:$0xff]  ;;  %v5768_v24 = vld [vmem:[%s7640_s8 + $0x250] sm:$0xff] }
  0x31   :  { %3501 = vmatpush.bf16.msra.mxu0 %v5724_v3  ;;  %3490 = vmatpush.bf16.msrb.mxu3 %v5714_v11  ;;  %v5751_v3 = vld [vmem:[%s7640_s8 + $0x1c8] sm:$0xff] }
  0x34   :  { %3478 = vmatpush.bf16.msra.mxu2 %v5705_v13  ;;  %3465 = vmatpush.bf16.msrb.mxu1 %v5697_v29 }
  0x35   :  { %3502 = vmatpush.bf16.msra.mxu0 %v5723_v7  ;;  %3491 = vmatpush.bf16.msrb.mxu3 %v5713_v15  ;;  %v5733_v15 = vld [vmem:[%s7640_s8 + $0x138] sm:$0xff] }
  0x38   :  { %3479 = vmatpush.bf16.msra.mxu2 %v5704_v17  ;;  %3466 = vmatpush.bf16.msrb.mxu1 %v5696_v35  ;;  %v5785_v35 = vld [vmem:[%s7640_s8 + $0x2d8] sm:$0xff] }
  0x39   :  { %3503 = vmatpush.bf16.msra.mxu0 %v5722_v12  ;;  %3492 = vmatpush.bf16.msrb.mxu3 %v5712_v19  ;;  %v5788_v19 = vld [vmem:[%s7640_s8 + $0x2f0] sm:$0xff] }
  0x3c   :  { %3480 = vmatpush.bf16.msra.mxu2 %v5703_v23  ;;  %3467 = vmatpush.bf16.msrb.mxu1 %v5695_v39  ;;  %v5787_v23 = vld [vmem:[%s7640_s8 + $0x2e8] sm:$0xff]  ;;  %v5774_v39 = vld [vmem:[%s7640_s8 + $0x280] sm:$0xff] }
  0x3d   :  { %3504 = vmatpush.bf16.msra.mxu0 %v5721_v16  ;;  %3493 = vmatpush.bf16.msrb.mxu3 %v5711_v25  ;;  %v5731_v25 = vld [vmem:[%s7640_s8 + $0x128] sm:$0xff] }
  0x40   :  { %3481 = vmatpush.bf16.msra.mxu2 %v5702_v27  ;;  %3468 = vmatpush.bf16.msrb.mxu1 %v5694_v44  ;;  %v5783_v44 = vld [vmem:[%s7640_s8 + $0x2c8] sm:$0xff] }
  0x41   :  { %3505 = vmatpush.bf16.msra.mxu0 %v5720_v22  ;;  %3494 = vmatpush.bf16.msrb.mxu3 %v5710_v32  ;;  %v5777_v22 = vld [vmem:[%s7640_s8 + $0x298] sm:$0xff]  ;;  %v5767_v32 = vld [vmem:[%s7640_s8 + $0x248] sm:$0xff] }
  0x45   :  { %3506 = vmatpush.bf16.msra.mxu0 %v5719_v37  ;;  %v5729_v37 = vld [vmem:[%s7640_s8 + $0x118] sm:$0xff] }
  0x49   :  { %3507 = vmatpush.bf16.msra.mxu0 %v5718_v41  ;;  %v5813_v41 = vld [vmem:[%s7640_s8 + $0x3b8] sm:$0xff] }
  0x81   :  { %v82_v49 = vpop.f32.mrf.mxu0 }
  0x82   :  { %v83_v50 = vadd.f32 %v82_v49, %v50_v46  ;;  %v5746_v46 = vld [vmem:[%s7640_s8 + $0x1a0] sm:$0xff] }
  0x83   :  { %v225_v49 = vld [vmem:[%s7641_s0] sm:$0xff] }
  0x84   :  { %v105_v51 = vmax.f32 %v83_v50, 0.0  ;;  %v5745_v50 = vld [vmem:[%s7640_s8 + $0x198] sm:$0xff]  ;;  %1050 = vst [vmem:[#allocation1] ss:$9 sm:$0xff] %v225_v49 }
  0x86   :  { %159 = vmatmul.f32.vlgmr.msrb.gmra.mxu2 %v105_v51  ;;  %v102_v53 = vpop.f32.mrf.mxu2  ;;  %v5755_v51 = vld [vmem:[%s7640_s8 + $0x1e8] sm:$0xff] }
  0x87   :  { %v103_v54 = vadd.f32 %v102_v53, %v51_v52  ;;  %3526 = vmatpush.bf16.msrb.mxu2 %v5741_v30  ;;  %v5736_v52 = vld [vmem:[%s7640_s8 + $0x150] sm:$0xff] }
  0x88   :  { %v5744_v53 = vld [vmem:[%s7640_s8 + $0x190] sm:$0xff] }
  0x89   :  { %v106_v55 = vmax.f32 %v103_v54, 0.0  ;;  %v5754_v54 = vld [vmem:[%s7640_s8 + $0x1e0] sm:$0xff]  ;;  %v5776_v30 = vld [vmem:[%s7640_s8 + $0x290] sm:$0xff] }
  0x8b   :  { %179 = vmatmul.f32.vlgmr.msra.gmra.mxu3 %v106_v55  ;;  %3527 = vmatpush.bf16.msrb.mxu2 %v5740_v36  ;;  %v5735_v55 = vld [vmem:[%s7640_s8 + $0x148] sm:$0xff]  ;;  %v1053_v57 = vld [vmem:[#allocation1 + $0x12] sm:$0xff]  ;;  %v1054_v2 = vld [vmem:[#allocation1 + $0x1b] sm:$0xff] }
  0x8c   :  { %3539 = vmatpush.bf16.msra.mxu3 %v5749_v33  ;;  %v1052_v56 = vld [vmem:[#allocation1 + $0x9] sm:$0xff]  ;;  %v1057_v17 = vld [vmem:[#allocation1 + $0x36] sm:$0xff]  ;;  %v1058_v29 = vld [vmem:[#allocation1 + $0x3f] sm:$0xff] }
  0x8d   :  { %v1056_v13 = vld [vmem:[#allocation1 + $0x2d] sm:$0xff]  ;;  %v6552_v27 = vld [vmem:[#allocation1 + $0x24] sm:$0xff] }
  0x8e   :  { %3482 = vmatmul.bf16.vlgmr.msra.gmra.mxu2 %v1052_v56  ;;  %v5730_v33 = vld [vmem:[%s7640_s8 + $0x120] sm:$0xff] }
  0x8f   :  { %3528 = vmatpush.bf16.msrb.mxu2 %v5739_v40  ;;  %v5766_v36 = vld [vmem:[%s7640_s8 + $0x240] sm:$0xff]  ;;  %v5784_v40 = vld [vmem:[%s7640_s8 + $0x2d0] sm:$0xff] }
  0x90   :  { %3540 = vmatpush.bf16.msra.mxu3 %v5748_v38  ;;  %v5805_v38 = vld [vmem:[%s7640_s8 + $0x378] sm:$0xff]  ;;  %v5810_v56 = vld [vmem:[%s7640_s8 + $0x3a0] sm:$0xff] }
  0x93   :  { %3529 = vmatpush.bf16.msrb.mxu2 %v5738_v45  ;;  %3495 = vmatmul.bf16.vlgmr.msrb.gmra.mxu3 %v1053_v57  ;;  %v5812_v45 = vld [vmem:[%s7640_s8 + $0x3b0] sm:$0xff] }
  0x94   :  { %3541 = vmatpush.bf16.msra.mxu3 %v5747_v42  ;;  %v5728_v42 = vld [vmem:[%s7640_s8 + $0x110] sm:$0xff] }
  0x95   :  { %v5820_v57 = vld [vmem:[%s7640_s8 + $0x3f0] sm:$0xff] }
  0x97   :  { %3530 = vmatpush.bf16.msrb.mxu2 %v5737_v48  ;;  %v5782_v48 = vld [vmem:[%s7640_s8 + $0x2c0] sm:$0xff] }
  0x98   :  { %3542 = vmatpush.bf16.msra.mxu3 %v5746_v46  ;;  %v5727_v46 = vld [vmem:[%s7640_s8 + $0x108] sm:$0xff] }
  0x9b   :  { %3531 = vmatpush.bf16.msrb.mxu2 %v5736_v52  ;;  %v5726_v52 = vld [vmem:[%s7640_s8 + $0x100] sm:$0xff] }
  0x9c   :  { %3543 = vmatpush.bf16.msra.mxu3 %v5745_v50  ;;  %v5811_v50 = vld [vmem:[%s7640_s8 + $0x3a8] sm:$0xff] }
  0x9f   :  { %3532 = vmatpush.bf16.msrb.mxu2 %v5735_v55 }
  0xa0   :  { %3544 = vmatpush.bf16.msra.mxu3 %v5744_v53  ;;  %v5802_v53 = vld [vmem:[%s7640_s8 + $0x360] sm:$0xff] }
  0xa3   :  { %3533 = vmatpush.bf16.msrb.mxu2 %v5734_v60  ;;  %v5809_v60 = vld [vmem:[%s7640_s8 + $0x398] sm:$0xff] }
  0xa4   :  { %3545 = vmatpush.bf16.msra.mxu3 %v5743_v58  ;;  %v5801_v58 = vld [vmem:[%s7640_s8 + $0x358] sm:$0xff] }
  0xa6   :  { %3534 = vmatmul.bf16.vlgmr.msrb.gmra.mxu2 %v1056_v13  ;;  %v5760_v13 = vld [vmem:[%s7640_s8 + $0x210] sm:$0xff] }
  0xa7   :  { %3578 = vmatpush.bf16.msra.mxu2 %v5773_v61  ;;  %v5819_v61 = vld [vmem:[%s7640_s8 + $0x3e8] sm:$0xff] }
  0xa8   :  { %3546 = vmatpush.bf16.msra.mxu3 %v5742_v62 }
  0xab   :  { %3579 = vmatpush.bf16.msra.mxu2 %v5772_v1  ;;  %3547 = vmatmul.bf16.vlgmr.msra.gmra.mxu3 %v1057_v17  ;;  %v5808_v1 = vld [vmem:[%s7640_s8 + $0x390] sm:$0xff]  ;;  %v5759_v17 = vld [vmem:[%s7640_s8 + $0x208] sm:$0xff] }
  0xac   :  { %3591 = vmatpush.bf16.msrb.mxu3 %v5781_v0  ;;  %v5763_v0 = vld [vmem:[%s7640_s8 + $0x228] sm:$0xff] }
  0xaf   :  { %3580 = vmatpush.bf16.msra.mxu2 %v5771_v6  ;;  %v5817_v6 = vld [vmem:[%s7640_s8 + $0x3d8] sm:$0xff] }
  0xb0   :  { %3592 = vmatpush.bf16.msrb.mxu3 %v5780_v4  ;;  %v5762_v4 = vld [vmem:[%s7640_s8 + $0x220] sm:$0xff] }
  0xb3   :  { %3581 = vmatpush.bf16.msra.mxu2 %v5770_v14  ;;  %v5836_v14 = vld [vmem:[%s7640_s8 + $0x470] sm:$0xff] }
  0xb4   :  { %3593 = vmatpush.bf16.msrb.mxu3 %v5779_v9  ;;  %v5837_v9 = vld [vmem:[%s7640_s8 + $0x478] sm:$0xff] }
  0xb8   :  { %3594 = vmatpush.bf16.msrb.mxu3 %v5778_v18  ;;  %v5835_v18 = vld [vmem:[%s7640_s8 + $0x468] sm:$0xff] }
  0xbc   :  { %3595 = vmatpush.bf16.msrb.mxu3 %v5777_v22  ;;  %v5853_v22 = vld [vmem:[%s7640_s8 + $0x4f8] sm:$0xff] }
  0xc0   :  { %3596 = vmatpush.bf16.msrb.mxu3 %v5776_v30 }
 0x109   :  { %v160_v21 = vpop.f32.mrf.mxu2 }
 0x10a   :  { %v161_v26 = vadd.f32 %v6082_v20, %v160_v21  ;;  %v5769_v20 = vld [vmem:[%s7640_s8 + $0x258] sm:$0xff]  ;;  %v5732_v21 = vld [vmem:[%s7640_s8 + $0x130] sm:$0xff] }
 0x10b   :  { %3582 = vmatpush.bf16.msra.mxu2 %v5769_v20 }
 0x10e   :  { %v180_v28 = vpop.f32.mrf.mxu3 }
 0x10f   :  { %v181_v31 = vadd.f32 %v180_v28, %v161_v26  ;;  %v1051_v26 = vld [vmem:[#allocation1] sm:$0xff]  ;;  %v226_v28 = vld [vmem:[%s7641_s0 + $0x8] sm:$0xff]  ;;  %3583 = vmatpush.bf16.msra.mxu2 %v5768_v24 }
 0x110   :  { %1060 = vst [vmem:[#allocation1] ss:$9 sm:$0xff] %v226_v28  ;;  %v5834_v24 = vld [vmem:[%s7640_s8 + $0x460] sm:$0xff]  ;;  %v5852_v28 = vld [vmem:[%s7640_s8 + $0x4f0] sm:$0xff] }
 0x111   :  { %v183_v34 = vmax.f32 %v181_v31, 0.0  ;;  %v5786_v31 = vld [vmem:[%s7640_s8 + $0x2e0] sm:$0xff] }
 0x113   :  { %220 = vmatmul.f32.vlgmr.msrb.gmra.mxu0 %v183_v34  ;;  %v5775_v34 = vld [vmem:[%s7640_s8 + $0x288] sm:$0xff]  ;;  %3584 = vmatpush.bf16.msra.mxu2 %v5767_v32  ;;  %v5796_v32 = vld [vmem:[%s7640_s8 + $0x330] sm:$0xff] }
 0x114   :  { %3552 = vmatpush.bf16.msrb.mxu0 %v5757_v43  ;;  %3597 = vmatpush.bf16.msrb.mxu3 %v5775_v34  ;;  %v5804_v43 = vld [vmem:[%s7640_s8 + $0x370] sm:$0xff]  ;;  %v5841_v34 = vld [vmem:[%s7640_s8 + $0x498] sm:$0xff] }
 0x117   :  { %3585 = vmatpush.bf16.msra.mxu2 %v5766_v36  ;;  %v1062_v49 = vld [vmem:[#allocation1 + $0x9] sm:$0xff]  ;;  %v1063_v55 = vld [vmem:[#allocation1 + $0x12] sm:$0xff]  ;;  %v1064_v62 = vld [vmem:[#allocation1 + $0x1b] sm:$0xff] }
 0x118   :  { %3553 = vmatpush.bf16.msrb.mxu0 %v5756_v47  ;;  %3598 = vmatpush.bf16.msrb.mxu3 %v5774_v39  ;;  %v5803_v47 = vld [vmem:[%s7640_s8 + $0x368] sm:$0xff]  ;;  %v1061_v30 = vld [vmem:[#allocation1] sm:$0xff]  ;;  %v5840_v39 = vld [vmem:[%s7640_s8 + $0x490] sm:$0xff] }
 0x119   :  { %v1066_v20 = vld [vmem:[#allocation1 + $0x2d] sm:$0xff]  ;;  %v1068_v36 = vld [vmem:[#allocation1 + $0x3f] sm:$0xff] }
 0x11a   :  { %3586 = vmatmul.bf16.vlgmr.msra.gmra.mxu2 %v1062_v49  ;;  %v5848_v49 = vld [vmem:[%s7640_s8 + $0x4d0] sm:$0xff] }
 0x11b   :  { %3508 = vmatmul.bf16.vlgmr.msra.gmra.mxu0 %v1054_v2  ;;  %3630 = vmatpush.bf16.msrb.mxu2 %v5805_v38  ;;  %v5818_v2 = vld [vmem:[%s7640_s8 + $0x3e0] sm:$0xff]  ;;  %v5795_v38 = vld [vmem:[%s7640_s8 + $0x328] sm:$0xff] }
 0x11c   :  { %3554 = vmatpush.bf16.msrb.mxu0 %v5755_v51  ;;  %3643 = vmatpush.bf16.msra.mxu3 %v5813_v41  ;;  %v5821_v51 = vld [vmem:[%s7640_s8 + $0x3f8] sm:$0xff]  ;;  %v5831_v41 = vld [vmem:[%s7640_s8 + $0x448] sm:$0xff] }
 0x11d   :  { %3599 = vmatmul.bf16.vlgmr.msrb.gmra.mxu3 %v1063_v55  ;;  %v5791_v55 = vld [vmem:[%s7640_s8 + $0x308] sm:$0xff] }
 0x11f   :  { %3631 = vmatpush.bf16.msrb.mxu2 %v5804_v43  ;;  %v5839_v43 = vld [vmem:[%s7640_s8 + $0x488] sm:$0xff] }
 0x120   :  { %3555 = vmatpush.bf16.msrb.mxu0 %v5754_v54  ;;  %3644 = vmatpush.bf16.msra.mxu3 %v5812_v45  ;;  %v5765_v54 = vld [vmem:[%s7640_s8 + $0x238] sm:$0xff]  ;;  %v5830_v45 = vld [vmem:[%s7640_s8 + $0x440] sm:$0xff] }
 0x123   :  { %3632 = vmatpush.bf16.msrb.mxu2 %v5803_v47  ;;  %v5869_v47 = vld [vmem:[%s7640_s8 + $0x578] sm:$0xff] }
 0x124   :  { %3556 = vmatpush.bf16.msrb.mxu0 %v5753_v59  ;;  %3645 = vmatpush.bf16.msra.mxu3 %v5811_v50  ;;  %v5764_v59 = vld [vmem:[%s7640_s8 + $0x230] sm:$0xff]  ;;  %v5877_v50 = vld [vmem:[%s7640_s8 + $0x5b8] sm:$0xff] }
 0x127   :  { %3633 = vmatpush.bf16.msrb.mxu2 %v5802_v53  ;;  %v5847_v53 = vld [vmem:[%s7640_s8 + $0x4c8] sm:$0xff] }
 0x128   :  { %3557 = vmatpush.bf16.msrb.mxu0 %v5752_v63  ;;  %3646 = vmatpush.bf16.msra.mxu3 %v5810_v56  ;;  %v5800_v63 = vld [vmem:[%s7640_s8 + $0x350] sm:$0xff]  ;;  %v5867_v56 = vld [vmem:[%s7640_s8 + $0x568] sm:$0xff] }
 0x12b   :  { %3634 = vmatpush.bf16.msrb.mxu2 %v5801_v58 }
 0x12c   :  { %3558 = vmatpush.bf16.msrb.mxu0 %v5751_v3  ;;  %3647 = vmatpush.bf16.msra.mxu3 %v5809_v60  ;;  %v5799_v3 = vld [vmem:[%s7640_s8 + $0x348] sm:$0xff]  ;;  %v5885_v60 = vld [vmem:[%s7640_s8 + $0x5f8] sm:$0xff] }
 0x12f   :  { %3635 = vmatpush.bf16.msrb.mxu2 %v5800_v63  ;;  %v5829_v63 = vld [vmem:[%s7640_s8 + $0x438] sm:$0xff] }
 0x130   :  { %3559 = vmatpush.bf16.msrb.mxu0 %v5750_v8  ;;  %3648 = vmatpush.bf16.msra.mxu3 %v5808_v1  ;;  %v5761_v8 = vld [vmem:[%s7640_s8 + $0x218] sm:$0xff]  ;;  %v5874_v1 = vld [vmem:[%s7640_s8 + $0x5a0] sm:$0xff] }
 0x133   :  { %3560 = vmatmul.bf16.vlgmr.msrb.gmra.mxu0 %v1058_v29  ;;  %3636 = vmatpush.bf16.msrb.mxu2 %v5799_v3  ;;  %v227_v29 = vld [vmem:[%s7641_s0 + $0x10] sm:$0xff]  ;;  %v5865_v3 = vld [vmem:[%s7640_s8 + $0x558] sm:$0xff] }
 0x134   :  { %3604 = vmatpush.bf16.msra.mxu0 %v5789_v10  ;;  %v5806_v10 = vld [vmem:[%s7640_s8 + $0x380] sm:$0xff] }
 0x138   :  { %3605 = vmatpush.bf16.msra.mxu0 %v5788_v19  ;;  %v5814_v19 = vld [vmem:[%s7640_s8 + $0x3c0] sm:$0xff] }
 0x13c   :  { %3606 = vmatpush.bf16.msra.mxu0 %v5787_v23  ;;  %v5758_v23 = vld [vmem:[%s7640_s8 + $0x200] sm:$0xff] }
 0x140   :  { %3607 = vmatpush.bf16.msra.mxu0 %v5786_v31  ;;  %v5833_v31 = vld [vmem:[%s7640_s8 + $0x458] sm:$0xff] }
 0x144   :  { %3608 = vmatpush.bf16.msra.mxu0 %v5785_v35  ;;  %v5851_v35 = vld [vmem:[%s7640_s8 + $0x4e8] sm:$0xff] }
 0x148   :  { %3609 = vmatpush.bf16.msra.mxu0 %v5784_v40  ;;  %v5850_v40 = vld [vmem:[%s7640_s8 + $0x4e0] sm:$0xff] }
 0x14c   :  { %3610 = vmatpush.bf16.msra.mxu0 %v5783_v44  ;;  %v5849_v44 = vld [vmem:[%s7640_s8 + $0x4d8] sm:$0xff] }
 0x150   :  { %3611 = vmatpush.bf16.msra.mxu0 %v5782_v48  ;;  %v5838_v48 = vld [vmem:[%s7640_s8 + $0x480] sm:$0xff] }
 0x153   :  { %3612 = vmatmul.bf16.vlgmr.msra.gmra.mxu0 %v1064_v62  ;;  %v5866_v62 = vld [vmem:[%s7640_s8 + $0x560] sm:$0xff] }
 0x154   :  { %3656 = vmatpush.bf16.msrb.mxu0 %v5821_v51  ;;  %v5792_v51 = vld [vmem:[%s7640_s8 + $0x310] sm:$0xff] }
 0x158   :  { %3657 = vmatpush.bf16.msrb.mxu0 %v5820_v57  ;;  %v5846_v57 = vld [vmem:[%s7640_s8 + $0x4c0] sm:$0xff] }
 0x15c   :  { %3658 = vmatpush.bf16.msrb.mxu0 %v5819_v61  ;;  %v5790_v61 = vld [vmem:[%s7640_s8 + $0x300] sm:$0xff] }
 0x160   :  { %3659 = vmatpush.bf16.msrb.mxu0 %v5818_v2  ;;  %v5884_v2 = vld [vmem:[%s7640_s8 + $0x5f0] sm:$0xff] }
 0x164   :  { %3660 = vmatpush.bf16.msrb.mxu0 %v5817_v6  ;;  %v5883_v6 = vld [vmem:[%s7640_s8 + $0x5e8] sm:$0xff] }
 0x190   :  { %v221_v7 = vpop.f32.mrf.mxu0 }
 0x191   :  { %v222_v11 = vadd.f32 %v6083_v5, %v221_v7  ;;  %v5807_v5 = vld [vmem:[%s7640_s8 + $0x388] sm:$0xff]  ;;  %v5798_v7 = vld [vmem:[%s7640_s8 + $0x340] sm:$0xff] }
 0x192   :  { %3649 = vmatpush.bf16.msra.mxu3 %v5807_v5  ;;  %3637 = vmatpush.bf16.msrb.mxu2 %v5798_v7  ;;  %v5873_v5 = vld [vmem:[%s7640_s8 + $0x598] sm:$0xff] }
 0x193   :  { %v224_v12 = vmax.f32 %v222_v11, 0.0  ;;  %v5816_v11 = vld [vmem:[%s7640_s8 + $0x3d0] sm:$0xff] }
 0x194   :  { %3661 = vmatpush.bf16.msrb.mxu0 %v5816_v11  ;;  %v5882_v11 = vld [vmem:[%s7640_s8 + $0x5e0] sm:$0xff] }
 0x195   :  { %v999_v16 = vpack.c.bf16 %v224_v12, %v224_v12  ;;  %v5845_v12 = vld [vmem:[%s7640_s8 + $0x4b8] sm:$0xff]  ;;  %3638 = vmatmul.bf16.vlgmr.msrb.gmra.mxu2 %v1066_v20  ;;  %v5880_v20 = vld [vmem:[%s7640_s8 + $0x5d0] sm:$0xff] }
 0x196   :  { %3682 = vmatpush.bf16.msra.mxu2 %v5837_v9  ;;  %3650 = vmatpush.bf16.msra.mxu3 %v5806_v10  ;;  %v5827_v9 = vld [vmem:[%s7640_s8 + $0x428] sm:$0xff]  ;;  %v5872_v10 = vld [vmem:[%s7640_s8 + $0x590] sm:$0xff] }
 0x197   :  { %4157 = vmatmul.msk.bf16.vlgmr.msra.gmra.mxu1 %vm1032_vm2, %v999_v16  ;;  %v5844_v16 = vld [vmem:[%s7640_s8 + $0x4b0] sm:$0xff] }
 0x198   :  { %3513 = vmatpush.bf16.msra.mxu1 %v5733_v15  ;;  %v5815_v15 = vld [vmem:[%s7640_s8 + $0x3c8] sm:$0xff] }
 0x199   :  { %3662 = vmatpush.bf16.msrb.mxu0 %v5815_v15  ;;  %v5881_v15 = vld [vmem:[%s7640_s8 + $0x5d8] sm:$0xff] }
 0x19a   :  { %3695 = vmatpush.bf16.msrb.mxu3 %v5845_v12  ;;  %3683 = vmatpush.bf16.msra.mxu2 %v5836_v14  ;;  %v5863_v12 = vld [vmem:[%s7640_s8 + $0x548] sm:$0xff] }
 0x19b   :  { %v5871_v14 = vld [vmem:[%s7640_s8 + $0x588] sm:$0xff] }
 0x19c   :  { %3514 = vmatpush.bf16.msra.mxu1 %v5732_v21  ;;  %v5843_v21 = vld [vmem:[%s7640_s8 + $0x4a8] sm:$0xff] }
 0x19d   :  { %3663 = vmatpush.bf16.msrb.mxu0 %v5814_v19  ;;  %v5870_v19 = vld [vmem:[%s7640_s8 + $0x580] sm:$0xff] }
 0x19e   :  { %3696 = vmatpush.bf16.msrb.mxu3 %v5844_v16  ;;  %3684 = vmatpush.bf16.msra.mxu2 %v5835_v18  ;;  %v5862_v16 = vld [vmem:[%s7640_s8 + $0x540] sm:$0xff]  ;;  %v5901_v18 = vld [vmem:[%s7640_s8 + $0x678] sm:$0xff] }
 0x1a0   :  { %3515 = vmatpush.bf16.msra.mxu1 %v5731_v25  ;;  %v5797_v25 = vld [vmem:[%s7640_s8 + $0x338] sm:$0xff]  ;;  %3664 = vmatmul.bf16.vlgmr.msrb.gmra.mxu0 %v1068_v36  ;;  %v6926_v36 = vpop.f32.mrf.mxu3 }
 0x1a1   :  { %3708 = vmatpush.bf16.msra.mxu0 %v5853_v22  ;;  %v5824_v22 = vld [vmem:[%s7640_s8 + $0x410] sm:$0xff] }
 0x1a2   :  { %3697 = vmatpush.bf16.msrb.mxu3 %v5843_v21  ;;  %3685 = vmatpush.bf16.msra.mxu2 %v5834_v24  ;;  %v5909_v21 = vld [vmem:[%s7640_s8 + $0x6b8] sm:$0xff]  ;;  %v5879_v24 = vld [vmem:[%s7640_s8 + $0x5c8] sm:$0xff] }
 0x1a4   :  { %3516 = vmatpush.bf16.msra.mxu1 %v5730_v33  ;;  %v6741_v33 = vld [vmem:[#allocation1 + $0x24] sm:$0xff] }
 0x1a5   :  { %3709 = vmatpush.bf16.msra.mxu0 %v5852_v28  ;;  %v5878_v28 = vld [vmem:[%s7640_s8 + $0x5c0] sm:$0xff] }
 0x1a6   :  { %3686 = vmatpush.bf16.msra.mxu2 %v5833_v31 }
 0x1a7   :  { %3469 = vmatmul.bf16.vlgmr.msrb.gmra.mxu1 %v1051_v26  ;;  %v1067_v26 = vld [vmem:[#allocation1 + $0x36] sm:$0xff] }
 0x1a8   :  { %3517 = vmatpush.bf16.msra.mxu1 %v5729_v37  ;;  %3651 = vmatmul.bf16.vlgmr.msra.gmra.mxu3 %v1067_v26  ;;  %1070 = vst [vmem:[#allocation1] ss:$9 sm:$0xff] %v227_v29  ;;  %v5832_v37 = vld [vmem:[%s7640_s8 + $0x450] sm:$0xff]  ;;  %v5823_v26 = vld [vmem:[%s7640_s8 + $0x408] sm:$0xff] }
 0x1a9   :  { %3710 = vmatpush.bf16.msra.mxu0 %v5851_v35  ;;  %v5907_v29 = vld [vmem:[%s7640_s8 + $0x6a8] sm:$0xff]  ;;  %v5861_v35 = vld [vmem:[%s7640_s8 + $0x538] sm:$0xff] }
 0x1aa   :  { %3687 = vmatpush.bf16.msra.mxu2 %v5832_v37 }
 0x1ac   :  { %3518 = vmatpush.bf16.msra.mxu1 %v5728_v42  ;;  %v5794_v42 = vld [vmem:[%s7640_s8 + $0x320] sm:$0xff] }
 0x1ad   :  { %3711 = vmatpush.bf16.msra.mxu0 %v5850_v40  ;;  %v6934_v40 = vpop.f32.mrf.mxu0 }
 0x1ae   :  { %3688 = vmatpush.bf16.msra.mxu2 %v5831_v41  ;;  %v228_v41 = vld [vmem:[%s7641_s0 + $0x18] sm:$0xff] }
 0x1af   :  { %v1072_v58 = vld [vmem:[#allocation1 + $0x9] sm:$0xff]  ;;  %v1074_v7 = vld [vmem:[#allocation1 + $0x1b] sm:$0xff] }
 0x1b0   :  { %3519 = vmatpush.bf16.msra.mxu1 %v5727_v46  ;;  %v5793_v46 = vld [vmem:[%s7640_s8 + $0x318] sm:$0xff]  ;;  %v1076_v31 = vld [vmem:[#allocation1 + $0x2d] sm:$0xff] }
 0x1b1   :  { %3712 = vmatpush.bf16.msra.mxu0 %v5849_v44  ;;  %v1077_v37 = vld [vmem:[#allocation1 + $0x36] sm:$0xff] }
 0x1b2   :  { %3689 = vmatpush.bf16.msra.mxu2 %v5830_v45  ;;  %v5860_v44 = vld [vmem:[%s7640_s8 + $0x530] sm:$0xff]  ;;  %v6945_v45 = vld [vmem:[#allocation1 + $0x24] sm:$0xff] }
 0x1b4   :  { %3520 = vmatpush.bf16.msra.mxu1 %v5726_v52  ;;  %v5868_v52 = vld [vmem:[%s7640_s8 + $0x570] sm:$0xff] }
 0x1b5   :  { %3713 = vmatpush.bf16.msra.mxu0 %v5848_v49  ;;  %3690 = vmatmul.bf16.vlgmr.msra.gmra.mxu2 %v1072_v58  ;;  %v5858_v58 = vld [vmem:[%s7640_s8 + $0x520] sm:$0xff] }
 0x1b6   :  { %3734 = vmatpush.bf16.msrb.mxu2 %v5869_v47  ;;  %v5915_v47 = vld [vmem:[%s7640_s8 + $0x6e8] sm:$0xff] }
 0x1b7   :  { %3521 = vmatmul.bf16.vlgmr.msra.gmra.mxu1 %v6552_v27  ;;  %v5842_v27 = vld [vmem:[%s7640_s8 + $0x4a0] sm:$0xff] }
 0x1b8   :  { %3565 = vmatpush.bf16.msrb.mxu1 %v5765_v54  ;;  %3698 = vmatpush.bf16.msrb.mxu3 %v5842_v27  ;;  %v5876_v54 = vld [vmem:[%s7640_s8 + $0x5b0] sm:$0xff]  ;;  %v5899_v27 = vld [vmem:[%s7640_s8 + $0x668] sm:$0xff] }
 0x1b9   :  { %3714 = vmatpush.bf16.msra.mxu0 %v5847_v53  ;;  %v5904_v53 = vld [vmem:[%s7640_s8 + $0x690] sm:$0xff] }
 0x1ba   :  { %3735 = vmatpush.bf16.msrb.mxu2 %v5868_v52  ;;  %v3498_v52 = vpop.f32.mrf.mxu3 }
 0x1bc   :  { %3566 = vmatpush.bf16.msrb.mxu1 %v5764_v59  ;;  %3699 = vmatpush.bf16.msrb.mxu3 %v5841_v34  ;;  %v5875_v59 = vld [vmem:[%s7640_s8 + $0x5a8] sm:$0xff]  ;;  %v5898_v34 = vld [vmem:[%s7640_s8 + $0x660] sm:$0xff] }
 0x1bd   :  { %3715 = vmatpush.bf16.msra.mxu0 %v5846_v57 }
 0x1be   :  { %3736 = vmatpush.bf16.msrb.mxu2 %v5867_v56  ;;  %v5895_v56 = vld [vmem:[%s7640_s8 + $0x648] sm:$0xff] }
 0x1c0   :  { %3567 = vmatpush.bf16.msrb.mxu1 %v5763_v0  ;;  %3700 = vmatpush.bf16.msrb.mxu3 %v5840_v39  ;;  %v1073_v0 = vld [vmem:[#allocation1 + $0x12] sm:$0xff] }
 0x1c1   :  { %3760 = vmatpush.bf16.msrb.mxu0 %v5885_v60  ;;  %v5916_v39 = vld [vmem:[%s7640_s8 + $0x6f0] sm:$0xff]  ;;  %v5913_v60 = vld [vmem:[%s7640_s8 + $0x6d8] sm:$0xff] }
 0x1c2   :  { %3737 = vmatpush.bf16.msrb.mxu2 %v5866_v62  ;;  %3716 = vmatmul.bf16.vlgmr.msra.gmra.mxu0 %v1074_v7  ;;  %v5894_v62 = vld [vmem:[%s7640_s8 + $0x640] sm:$0xff]  ;;  %v5856_v7 = vld [vmem:[%s7640_s8 + $0x510] sm:$0xff] }
 0x1c4   :  { %3568 = vmatpush.bf16.msrb.mxu1 %v5762_v4  ;;  %3701 = vmatpush.bf16.msrb.mxu3 %v5839_v43  ;;  %v5828_v4 = vld [vmem:[%s7640_s8 + $0x430] sm:$0xff]  ;;  %v5897_v43 = vld [vmem:[%s7640_s8 + $0x658] sm:$0xff] }
 0x1c5   :  { %3761 = vmatpush.bf16.msrb.mxu0 %v5884_v2  ;;  %v5902_v2 = vld [vmem:[%s7640_s8 + $0x680] sm:$0xff] }
 0x1c6   :  { %3738 = vmatpush.bf16.msrb.mxu2 %v5865_v3  ;;  %v5912_v3 = vld [vmem:[%s7640_s8 + $0x6d0] sm:$0xff] }
 0x1c8   :  { %3569 = vmatpush.bf16.msrb.mxu1 %v5761_v8  ;;  %3702 = vmatpush.bf16.msrb.mxu3 %v5838_v48  ;;  %v5864_v8 = vld [vmem:[%s7640_s8 + $0x550] sm:$0xff]  ;;  %v1078_v48 = vld [vmem:[#allocation1 + $0x3f] sm:$0xff] }
 0x1c9   :  { %3762 = vmatpush.bf16.msrb.mxu0 %v5883_v6 }
 0x1ca   :  { %3739 = vmatpush.bf16.msrb.mxu2 %v5864_v8  ;;  %v5932_v8 = vld [vmem:[%s7640_s8 + $0x770] sm:$0xff] }
 0x1cb   :  { %3703 = vmatmul.bf16.vlgmr.msrb.gmra.mxu3 %v1073_v0  ;;  %v5933_v0 = vld [vmem:[%s7640_s8 + $0x778] sm:$0xff] }
 0x1cc   :  { %3570 = vmatpush.bf16.msrb.mxu1 %v5760_v13  ;;  %3747 = vmatpush.bf16.msra.mxu3 %v5877_v50  ;;  %v5826_v13 = vld [vmem:[%s7640_s8 + $0x420] sm:$0xff]  ;;  %v5896_v50 = vld [vmem:[%s7640_s8 + $0x650] sm:$0xff] }
 0x1cd   :  { %3763 = vmatpush.bf16.msrb.mxu0 %v5882_v11 }
 0x1ce   :  { %3740 = vmatpush.bf16.msrb.mxu2 %v5863_v12  ;;  %v5855_v12 = vld [vmem:[%s7640_s8 + $0x508] sm:$0xff] }
 0x1d0   :  { %3571 = vmatpush.bf16.msrb.mxu1 %v5759_v17  ;;  %3748 = vmatpush.bf16.msra.mxu3 %v5876_v54  ;;  %v5825_v17 = vld [vmem:[%s7640_s8 + $0x418] sm:$0xff]  ;;  %v5914_v54 = vld [vmem:[%s7640_s8 + $0x6e0] sm:$0xff] }
 0x1d1   :  { %3764 = vmatpush.bf16.msrb.mxu0 %v5881_v15 }
 0x1d2   :  { %3741 = vmatpush.bf16.msrb.mxu2 %v5862_v16  ;;  %v5939_v16 = vld [vmem:[%s7640_s8 + $0x7a8] sm:$0xff] }
 0x1d4   :  { %3572 = vmatpush.bf16.msrb.mxu1 %v5758_v23  ;;  %3749 = vmatpush.bf16.msra.mxu3 %v5875_v59  ;;  %v5900_v23 = vld [vmem:[%s7640_s8 + $0x670] sm:$0xff]  ;;  %v5903_v59 = vld [vmem:[%s7640_s8 + $0x688] sm:$0xff] }
 0x1d5   :  { %3765 = vmatpush.bf16.msrb.mxu0 %v5880_v20  ;;  %3742 = vmatmul.bf16.vlgmr.msrb.gmra.mxu2 %v1076_v31  ;;  %v5892_v31 = vld [vmem:[%s7640_s8 + $0x630] sm:$0xff] }
 0x1d6   :  { %3786 = vmatpush.bf16.msra.mxu2 %v5901_v18  ;;  %v5949_v18 = vld [vmem:[%s7640_s8 + $0x7f8] sm:$0xff] }
 0x1d7   :  { %3573 = vmatmul.bf16.vlgmr.msrb.gmra.mxu1 %v1061_v30  ;;  %v5917_v30 = vld [vmem:[%s7640_s8 + $0x6f8] sm:$0xff] }
 0x1d8   :  { %3617 = vmatpush.bf16.msra.mxu1 %v5797_v25  ;;  %3750 = vmatpush.bf16.msra.mxu3 %v5874_v1  ;;  %v5908_v25 = vld [vmem:[%s7640_s8 + $0x6b0] sm:$0xff]  ;;  %v6988_v1 = vpop.f32.mrf.mxu3 }
 0x1d9   :  { %3766 = vmatpush.bf16.msrb.mxu0 %v5879_v24  ;;  %v5893_v24 = vld [vmem:[%s7640_s8 + $0x638] sm:$0xff] }
 0x1da   :  { %3787 = vmatpush.bf16.msra.mxu2 %v5900_v23 }
 0x1dc   :  { %3618 = vmatpush.bf16.msra.mxu1 %v5796_v32  ;;  %3751 = vmatpush.bf16.msra.mxu3 %v5873_v5  ;;  %v5822_v32 = vld [vmem:[%s7640_s8 + $0x400] sm:$0xff] }
 0x1dd   :  { %3767 = vmatpush.bf16.msrb.mxu0 %v5878_v28 }
 0x1de   :  { %3788 = vmatpush.bf16.msra.mxu2 %v5899_v27  ;;  %v5948_v27 = vld [vmem:[%s7640_s8 + $0x7f0] sm:$0xff] }
 0x1e0   :  { %3619 = vmatpush.bf16.msra.mxu1 %v5795_v38  ;;  %3752 = vmatpush.bf16.msra.mxu3 %v5872_v10  ;;  %v5906_v38 = vld [vmem:[%s7640_s8 + $0x6a0] sm:$0xff]  ;;  %v5940_v10 = vld [vmem:[%s7640_s8 + $0x7b0] sm:$0xff] }
 0x1e1   :  { %3812 = vmatpush.bf16.msra.mxu0 %v5917_v30 }
 0x1e2   :  { %3789 = vmatpush.bf16.msra.mxu2 %v5898_v34  ;;  %3768 = vmatmul.bf16.vlgmr.msrb.gmra.mxu0 %v1078_v48 }
 0x1e4   :  { %3620 = vmatpush.bf16.msra.mxu1 %v5794_v42  ;;  %3753 = vmatpush.bf16.msra.mxu3 %v5871_v14  ;;  %v1071_v42 = vld [vmem:[#allocation1] sm:$0xff] }
 0x1e5   :  { %3813 = vmatpush.bf16.msra.mxu0 %v5916_v39  ;;  %1080 = vst [vmem:[#allocation1] ss:$9 sm:$0xff] %v228_v41  ;;  %v5910_v14 = vld [vmem:[%s7640_s8 + $0x6c0] sm:$0xff]  ;;  %v5936_v39 = vld [vmem:[%s7640_s8 + $0x790] sm:$0xff]  ;;  %v5927_v41 = vld [vmem:[%s7640_s8 + $0x748] sm:$0xff] }
 0x1e6   :  { %3790 = vmatpush.bf16.msra.mxu2 %v5897_v43 }
 0x1e8   :  { %3621 = vmatpush.bf16.msra.mxu1 %v5793_v46  ;;  %3754 = vmatpush.bf16.msra.mxu3 %v5870_v19  ;;  %v5905_v46 = vld [vmem:[%s7640_s8 + $0x698] sm:$0xff] }
 0x1e9   :  { %3814 = vmatpush.bf16.msra.mxu0 %v5915_v47  ;;  %v5926_v47 = vld [vmem:[%s7640_s8 + $0x740] sm:$0xff] }
 0x1ea   :  { %3791 = vmatpush.bf16.msra.mxu2 %v5896_v50 }
 0x1eb   :  { %3755 = vmatmul.bf16.vlgmr.msra.gmra.mxu3 %v1077_v37  ;;  %v5928_v37 = vld [vmem:[%s7640_s8 + $0x750] sm:$0xff] }
 0x1ec   :  { %3622 = vmatpush.bf16.msra.mxu1 %v5792_v51  ;;  %3799 = vmatpush.bf16.msrb.mxu3 %v5909_v21  ;;  %v5859_v51 = vld [vmem:[%s7640_s8 + $0x528] sm:$0xff]  ;;  %v5854_v21 = vld [vmem:[%s7640_s8 + $0x500] sm:$0xff] }
 0x1ed   :  { %3815 = vmatpush.bf16.msra.mxu0 %v5914_v54  ;;  %v1082_v15 = vld [vmem:[#allocation1 + $0x9] sm:$0xff]  ;;  %v1084_v34 = vld [vmem:[#allocation1 + $0x1b] sm:$0xff] }
 0x1ee   :  { %3792 = vmatpush.bf16.msra.mxu2 %v5895_v56  ;;  %v5944_v54 = vld [vmem:[%s7640_s8 + $0x7d0] sm:$0xff]  ;;  %v5973_v56 = vld [vmem:[%s7640_s8 + $0x8b8] sm:$0xff] }
 0x1f0   :  { %3623 = vmatpush.bf16.msra.mxu1 %v5791_v55  ;;  %3800 = vmatpush.bf16.msrb.mxu3 %v5908_v25  ;;  %v3511_v55 = vpop.f32.mrf.mxu0  ;;  %v1083_v25 = vld [vmem:[#allocation1 + $0x12] sm:$0xff] }
 0x1f1   :  { %3816 = vmatpush.bf16.msra.mxu0 %v5913_v60  ;;  %v5943_v60 = vld [vmem:[%s7640_s8 + $0x7c8] sm:$0xff] }
 0x1f2   :  { %3793 = vmatpush.bf16.msra.mxu2 %v5894_v62 }
 0x1f4   :  { %3624 = vmatpush.bf16.msra.mxu1 %v5790_v61  ;;  %3801 = vmatpush.bf16.msrb.mxu3 %v5907_v29  ;;  %v5929_v29 = vld [vmem:[%s7640_s8 + $0x758] sm:$0xff] }
 0x1f5   :  { %3817 = vmatpush.bf16.msra.mxu0 %v5912_v3  ;;  %3794 = vmatmul.bf16.vlgmr.msra.gmra.mxu2 %v1082_v15  ;;  %v229_v15 = vld [vmem:[%s7641_s0 + $0x20] sm:$0xff] }
 0x1f6   :  { %3838 = vmatpush.bf16.msrb.mxu2 %v5933_v0 }
 0x1f7   :  { %3625 = vmatmul.bf16.vlgmr.msra.gmra.mxu1 %v6741_v33  ;;  %v6918_v33 = vpop.f32.mrf.mxu2 }
 0x1f8   :  { %3669 = vmatpush.bf16.msrb.mxu1 %v5829_v63  ;;  %3802 = vmatpush.bf16.msrb.mxu3 %v5906_v38  ;;  %v5857_v63 = vld [vmem:[%s7640_s8 + $0x518] sm:$0xff]  ;;  %v6999_v5 = vpop.f32.mrf.mxu0  ;;  %v5891_v38 = vld [vmem:[%s7640_s8 + $0x628] sm:$0xff] }
 0x1fa   :  { %3839 = vmatpush.bf16.msrb.mxu2 %v5932_v8  ;;  %v5981_v8 = vld [vmem:[%s7640_s8 + $0x8f8] sm:$0xff] }
 0x1fc   :  { %3670 = vmatpush.bf16.msrb.mxu1 %v5828_v4  ;;  %3803 = vmatpush.bf16.msrb.mxu3 %v5905_v46  ;;  %v5941_v4 = vld [vmem:[%s7640_s8 + $0x7b8] sm:$0xff] }
 0x1ff   :  { %v3485_v49 = vpop.f32.mrf.mxu2 }
 0x200   :  { %3671 = vmatpush.bf16.msrb.mxu1 %v5827_v9  ;;  %3804 = vmatpush.bf16.msrb.mxu3 %v5904_v53  ;;  %v5911_v9 = vld [vmem:[%s7640_s8 + $0x6c8] sm:$0xff]  ;;  %v3563_v19 = vpop.f32.mrf.mxu0  ;;  %v5889_v49 = vld [vmem:[%s7640_s8 + $0x618] sm:$0xff]  ;;  %v5934_v53 = vld [vmem:[%s7640_s8 + $0x780] sm:$0xff] }
 0x201   :  { %3818 = vmatpush.bf16.msra.mxu0 %v5911_v9  ;;  %v5886_v9 = vld [vmem:[%s7640_s8 + $0x600] sm:$0xff] }
 0x202   :  { %v7163_v19 = vld [vmem:[#allocation1 + $0x24] sm:$0xff] }
 0x204   :  { %3672 = vmatpush.bf16.msrb.mxu1 %v5826_v13  ;;  %3805 = vmatpush.bf16.msrb.mxu3 %v5903_v59  ;;  %v5931_v13 = vld [vmem:[%s7640_s8 + $0x768] sm:$0xff]  ;;  %v5964_v59 = vld [vmem:[%s7640_s8 + $0x870] sm:$0xff] }
 0x205   :  { %3840 = vmatpush.bf16.msrb.mxu2 %v5931_v13  ;;  %3819 = vmatpush.bf16.msra.mxu0 %v5910_v14  ;;  %v5970_v13 = vld [vmem:[%s7640_s8 + $0x8a0] sm:$0xff]  ;;  %v5980_v14 = vld [vmem:[%s7640_s8 + $0x8f0] sm:$0xff] }
 0x207   :  { %v6977_v61 = vpop.f32.mrf.mxu2 }
 0x208   :  { %3673 = vmatpush.bf16.msrb.mxu1 %v5825_v17  ;;  %3806 = vmatpush.bf16.msrb.mxu3 %v5902_v2  ;;  %v3550_v17 = vpop.f32.mrf.mxu3  ;;  %v7096_v52 = vpop.f32.mrf.mxu0  ;;  %v5963_v2 = vld [vmem:[%s7640_s8 + $0x868] sm:$0xff] }
 0x209   :  { %3864 = vmatpush.bf16.msrb.mxu0 %v5949_v18  ;;  %v5961_v17 = vld [vmem:[%s7640_s8 + $0x858] sm:$0xff]  ;;  %v5924_v18 = vld [vmem:[%s7640_s8 + $0x730] sm:$0xff] }
 0x20a   :  { %3820 = vmatmul.bf16.vlgmr.msra.gmra.mxu0 %v1084_v34 }
 0x20b   :  { %3807 = vmatmul.bf16.vlgmr.msrb.gmra.mxu3 %v1083_v25  ;;  %v5968_v25 = vld [vmem:[%s7640_s8 + $0x890] sm:$0xff] }
 0x20c   :  { %3674 = vmatpush.bf16.msrb.mxu1 %v5824_v22  ;;  %3851 = vmatpush.bf16.msra.mxu3 %v5941_v4  ;;  %v5930_v22 = vld [vmem:[%s7640_s8 + $0x760] sm:$0xff] }
 0x20d   :  { %3841 = vmatpush.bf16.msrb.mxu2 %v5930_v22  ;;  %3865 = vmatpush.bf16.msrb.mxu0 %v5948_v27  ;;  %v5942_v4 = vld [vmem:[%s7640_s8 + $0x7c0] sm:$0xff]  ;;  %v5959_v27 = vld [vmem:[%s7640_s8 + $0x848] sm:$0xff] }
 0x20e   :  { %v1088_v22 = vld [vmem:[#allocation1 + $0x3f] sm:$0xff] }
 0x20f   :  { %v3537_v11 = vpop.f32.mrf.mxu2 }
 0x210   :  { %3675 = vmatpush.bf16.msrb.mxu1 %v5823_v26  ;;  %3852 = vmatpush.bf16.msra.mxu3 %v5940_v10  ;;  %v5938_v26 = vld [vmem:[%s7640_s8 + $0x7a0] sm:$0xff]  ;;  %v7091_v50 = vpop.f32.mrf.mxu3  ;;  %v5925_v11 = vld [vmem:[%s7640_s8 + $0x738] sm:$0xff] }
 0x211   :  { %3842 = vmatpush.bf16.msrb.mxu2 %v5929_v29  ;;  %v5962_v10 = vld [vmem:[%s7640_s8 + $0x860] sm:$0xff] }
 0x214   :  { %3676 = vmatpush.bf16.msrb.mxu1 %v5822_v32  ;;  %v1045_v57 = vpop.f32.mrf.mxu1  ;;  %3853 = vmatpush.bf16.msra.mxu3 %v5939_v16  ;;  %v5937_v32 = vld [vmem:[%s7640_s8 + $0x798] sm:$0xff]  ;;  %v1081_v16 = vld [vmem:[#allocation1] sm:$0xff] }
 0x215   :  { %3843 = vmatpush.bf16.msrb.mxu2 %v5928_v37  ;;  %v5997_v37 = vld [vmem:[%s7640_s8 + $0x978] sm:$0xff] }
 0x217   :  { %3677 = vmatmul.bf16.vlgmr.msrb.gmra.mxu1 %v1071_v42  ;;  %v5890_v42 = vld [vmem:[%s7640_s8 + $0x620] sm:$0xff]  ;;  %v7077_v43 = vpop.f32.mrf.mxu2 }
 0x218   :  { %3721 = vmatpush.bf16.msra.mxu1 %v5861_v35  ;;  %3854 = vmatpush.bf16.msra.mxu3 %v5938_v26  ;;  %v3602_v3 = vpop.f32.mrf.mxu3  ;;  %v5978_v26 = vld [vmem:[%s7640_s8 + $0x8e0] sm:$0xff] }
 0x219   :  { %3844 = vmatpush.bf16.msrb.mxu2 %v5927_v41  ;;  %v6001_v3 = vld [vmem:[%s7640_s8 + $0x998] sm:$0xff] }
 0x21c   :  { %3722 = vmatpush.bf16.msra.mxu1 %v5860_v44  ;;  %v1047_v6 = vpop.f32.mrf.mxu1  ;;  %3855 = vmatpush.bf16.msra.mxu3 %v5937_v32  ;;  %v5935_v44 = vld [vmem:[%s7640_s8 + $0x788] sm:$0xff] }
 0x21d   :  { %3845 = vmatpush.bf16.msrb.mxu2 %v5926_v47  ;;  %v5971_v6 = vld [vmem:[%s7640_s8 + $0x8a8] sm:$0xff]  ;;  %v6004_v47 = vld [vmem:[%s7640_s8 + $0x9b0] sm:$0xff] }
 0x21f   :  { %v3589_v62 = vpop.f32.mrf.mxu2 }
 0x220   :  { %3723 = vmatpush.bf16.msra.mxu1 %v5859_v51  ;;  %3856 = vmatpush.bf16.msra.mxu3 %v5936_v39  ;;  %v5965_v51 = vld [vmem:[%s7640_s8 + $0x878] sm:$0xff]  ;;  %v5966_v39 = vld [vmem:[%s7640_s8 + $0x880] sm:$0xff] }
 0x221   :  { %3890 = vmatpush.bf16.msra.mxu2 %v5965_v51  ;;  %v5919_v51 = vld [vmem:[%s7640_s8 + $0x708] sm:$0xff] }
 0x224   :  { %3724 = vmatpush.bf16.msra.mxu1 %v5858_v58  ;;  %v3470_v20 = vpop.f32.mrf.mxu1  ;;  %3857 = vmatpush.bf16.msra.mxu3 %v5935_v44  ;;  %v5888_v58 = vld [vmem:[%s7640_s8 + $0x610] sm:$0xff] }
 0x225   :  { %v3471_v23 = vadd.f32 %v3470_v20, %v1045_v57  ;;  %3891 = vmatpush.bf16.msra.mxu2 %v5964_v59  ;;  %v5969_v20 = vld [vmem:[%s7640_s8 + $0x898] sm:$0xff]  ;;  %v5918_v59 = vld [vmem:[%s7640_s8 + $0x700] sm:$0xff] }
 0x227   :  { %v3484_v28 = vadd.f32 %v6918_v33, %v3471_v23  ;;  %v5947_v33 = vld [vmem:[%s7640_s8 + $0x7e8] sm:$0xff]  ;;  %v5960_v23 = vld [vmem:[%s7640_s8 + $0x850] sm:$0xff]  ;;  %v7189_v29 = vpop.f32.mrf.mxu2 }
 0x228   :  { %3725 = vmatpush.bf16.msra.mxu1 %v5857_v63  ;;  %3866 = vmatpush.bf16.msrb.mxu0 %v5947_v33  ;;  %v5958_v33 = vld [vmem:[%s7640_s8 + $0x840] sm:$0xff] }
 0x229   :  { %v3497_v30 = vadd.f32 %v6926_v36, %v3484_v28  ;;  %3858 = vmatpush.bf16.msra.mxu3 %v5934_v53  ;;  %3892 = vmatpush.bf16.msra.mxu2 %v5963_v2  ;;  %v5922_v28 = vld [vmem:[%s7640_s8 + $0x720] sm:$0xff]  ;;  %v5995_v53 = vld [vmem:[%s7640_s8 + $0x968] sm:$0xff]  ;;  %v5956_v2 = vld [vmem:[%s7640_s8 + $0x830] sm:$0xff] }
 0x22b   :  { %v3510_v35 = vadd.f32 %v6934_v40, %v3497_v30  ;;  %v5946_v40 = vld [vmem:[%s7640_s8 + $0x7e0] sm:$0xff]  ;;  %v5967_v30 = vld [vmem:[%s7640_s8 + $0x888] sm:$0xff] }
 0x22c   :  { %3726 = vmatpush.bf16.msra.mxu1 %v5856_v7  ;;  %v3472_v36 = vpop.f32.mrf.mxu1  ;;  %3867 = vmatpush.bf16.msrb.mxu0 %v5946_v40  ;;  %v3615_v7 = vpop.f32.mrf.mxu0  ;;  %v5976_v40 = vld [vmem:[%s7640_s8 + $0x8d0] sm:$0xff] }
 0x22d   :  { %3903 = vmatpush.bf16.msrb.mxu3 %v5973_v56  ;;  %3893 = vmatpush.bf16.msra.mxu2 %v5962_v10  ;;  %v7204_v36 = vpop.f32.mrf.mxu3  ;;  %v5955_v7 = vld [vmem:[%s7640_s8 + $0x828] sm:$0xff] }
 0x22e   :  { %v5991_v10 = vld [vmem:[%s7640_s8 + $0x948] sm:$0xff] }
 0x230   :  { %3727 = vmatpush.bf16.msra.mxu1 %v5855_v12  ;;  %v1087_v12 = vld [vmem:[#allocation1 + $0x36] sm:$0xff] }
 0x231   :  { %3859 = vmatmul.bf16.vlgmr.msra.gmra.mxu3 %v1087_v12  ;;  %3894 = vmatpush.bf16.msra.mxu2 %v5961_v17 }
 0x234   :  { %3728 = vmatpush.bf16.msra.mxu1 %v5854_v21  ;;  %v3522_v46 = vpop.f32.mrf.mxu1  ;;  %v5979_v21 = vld [vmem:[%s7640_s8 + $0x8e8] sm:$0xff] }
 0x235   :  { %v3523_v48 = vadd.f32 %v3522_v46, %v3510_v35  ;;  %3895 = vmatpush.bf16.msra.mxu2 %v5960_v23  ;;  %v5921_v35 = vld [vmem:[%s7640_s8 + $0x718] sm:$0xff]  ;;  %v5996_v46 = vld [vmem:[%s7640_s8 + $0x970] sm:$0xff] }
 0x236   :  { %v6008_v23 = vld [vmem:[%s7640_s8 + $0x9d0] sm:$0xff] }
 0x237   :  { %3729 = vmatmul.bf16.vlgmr.msra.gmra.mxu1 %v6945_v45  ;;  %v5945_v45 = vld [vmem:[%s7640_s8 + $0x7d8] sm:$0xff]  ;;  %v3536_v55 = vadd.f32 %v6977_v61, %v3523_v48  ;;  %v5972_v61 = vld [vmem:[%s7640_s8 + $0x8b0] sm:$0xff]  ;;  %v3641_v48 = vpop.f32.mrf.mxu2 }
 0x238   :  { %3773 = vmatpush.bf16.msrb.mxu1 %v5893_v24  ;;  %3868 = vmatpush.bf16.msrb.mxu0 %v5945_v45  ;;  %v5923_v24 = vld [vmem:[%s7640_s8 + $0x728] sm:$0xff]  ;;  %v5920_v45 = vld [vmem:[%s7640_s8 + $0x710] sm:$0xff] }
 0x239   :  { %v3549_v57 = vadd.f32 %v6988_v1, %v3536_v55  ;;  %v5887_v1 = vld [vmem:[%s7640_s8 + $0x608] sm:$0xff]  ;;  %3904 = vmatpush.bf16.msrb.mxu3 %v5972_v61  ;;  %3896 = vmatpush.bf16.msra.mxu2 %v5959_v27  ;;  %v5974_v55 = vld [vmem:[%s7640_s8 + $0x8c0] sm:$0xff]  ;;  %v5957_v61 = vld [vmem:[%s7640_s8 + $0x838] sm:$0xff] }
 0x23a   :  { %v5952_v27 = vld [vmem:[%s7640_s8 + $0x810] sm:$0xff]  ;;  %v230_v48 = vld [vmem:[%s7641_s0 + $0x28] sm:$0xff] }
 0x23b   :  { %v7122_v63 = vadd.f32 %v6999_v5, %v3549_v57  ;;  %v1086_v5 = vld [vmem:[#allocation1 + $0x2d] sm:$0xff] }
 0x23c   :  { %3774 = vmatpush.bf16.msrb.mxu1 %v5892_v31  ;;  %3869 = vmatpush.bf16.msrb.mxu0 %v5944_v54  ;;  %v3524_v0 = vpop.f32.mrf.mxu1  ;;  %1090 = vst [vmem:[#allocation1] ss:$9 sm:$0xff] %v229_v15  ;;  %v5977_v31 = vld [vmem:[%s7640_s8 + $0x8d8] sm:$0xff]  ;;  %v3654_v54 = vpop.f32.mrf.mxu3 }
 0x23d   :  { %3846 = vmatmul.bf16.vlgmr.msrb.gmra.mxu2 %v1086_v5  ;;  %3905 = vmatpush.bf16.msrb.mxu3 %v5971_v6  ;;  %v6012_v0 = vld [vmem:[%s7640_s8 + $0x9f0] sm:$0xff]  ;;  %v6033_v54 = vld [vmem:[%s7640_s8 + $0xa98] sm:$0xff] }
 0x23e   :  { %3897 = vmatpush.bf16.msra.mxu2 %v5958_v33  ;;  %v5992_v6 = vld [vmem:[%s7640_s8 + $0x950] sm:$0xff] }
 0x23f   :  { %v7296_v12 = vpop.f32.mrf.mxu2 }
 0x240   :  { %3775 = vmatpush.bf16.msrb.mxu1 %v5891_v38  ;;  %3870 = vmatpush.bf16.msrb.mxu0 %v5943_v60  ;;  %v7209_v38 = vpop.f32.mrf.mxu0  ;;  %v5994_v60 = vld [vmem:[%s7640_s8 + $0x960] sm:$0xff] }
 0x241   :  { %3906 = vmatpush.bf16.msrb.mxu3 %v5970_v13  ;;  %v5999_v13 = vld [vmem:[%s7640_s8 + $0x988] sm:$0xff] }
 0x242   :  { %3942 = vmatpush.bf16.msrb.mxu2 %v5997_v37  ;;  %v6006_v37 = vld [vmem:[%s7640_s8 + $0x9c0] sm:$0xff] }
 0x243   :  { %v1092_v56 = vld [vmem:[#allocation1 + $0x9] sm:$0xff]  ;;  %v1093_v62 = vld [vmem:[#allocation1 + $0x12] sm:$0xff]  ;;  %v1094_v5 = vld [vmem:[#allocation1 + $0x1b] sm:$0xff] }
 0x244   :  { %3776 = vmatpush.bf16.msrb.mxu1 %v5890_v42  ;;  %3871 = vmatpush.bf16.msrb.mxu0 %v5942_v4  ;;  %v6005_v42 = vld [vmem:[%s7640_s8 + $0x9b8] sm:$0xff]  ;;  %v6011_v4 = vld [vmem:[%s7640_s8 + $0x9e8] sm:$0xff] }
 0x245   :  { %3907 = vmatpush.bf16.msrb.mxu3 %v5969_v20  ;;  %v6029_v20 = vld [vmem:[%s7640_s8 + $0xa78] sm:$0xff] }
 0x246   :  { %3943 = vmatpush.bf16.msrb.mxu2 %v5996_v46  ;;  %v1097_v46 = vld [vmem:[#allocation1 + $0x36] sm:$0xff] }
 0x247   :  { %3872 = vmatmul.bf16.vlgmr.msrb.gmra.mxu0 %v1088_v22  ;;  %v5998_v22 = vld [vmem:[%s7640_s8 + $0x980] sm:$0xff] }
 0x248   :  { %3777 = vmatpush.bf16.msrb.mxu1 %v5889_v49  ;;  %3916 = vmatpush.bf16.msra.mxu0 %v5981_v8  ;;  %v3667_v57 = vpop.f32.mrf.mxu0  ;;  %v6000_v8 = vld [vmem:[%s7640_s8 + $0x990] sm:$0xff] }
 0x249   :  { %3908 = vmatpush.bf16.msrb.mxu3 %v5968_v25  ;;  %v6037_v25 = vld [vmem:[%s7640_s8 + $0xab8] sm:$0xff]  ;;  %v5987_v57 = vld [vmem:[%s7640_s8 + $0x928] sm:$0xff] }
 0x24a   :  { %3944 = vmatpush.bf16.msrb.mxu2 %v5995_v53  ;;  %v7382_v53 = vld [vmem:[#allocation1 + $0x24] sm:$0xff] }
 0x24c   :  { %3778 = vmatpush.bf16.msrb.mxu1 %v5888_v58  ;;  %3917 = vmatpush.bf16.msra.mxu0 %v5980_v14  ;;  %v6013_v58 = vld [vmem:[%s7640_s8 + $0x9f8] sm:$0xff] }
 0x24d   :  { %3909 = vmatpush.bf16.msrb.mxu3 %v5967_v30  ;;  %3898 = vmatmul.bf16.vlgmr.msra.gmra.mxu2 %v1092_v56  ;;  %v6009_v14 = vld [vmem:[%s7640_s8 + $0x9d8] sm:$0xff]  ;;  %v6036_v30 = vld [vmem:[%s7640_s8 + $0xab0] sm:$0xff] }
 0x24e   :  { %3945 = vmatpush.bf16.msrb.mxu2 %v5994_v60  ;;  %v1098_v56 = vld [vmem:[#allocation1 + $0x3f] sm:$0xff]  ;;  %v6023_v60 = vld [vmem:[%s7640_s8 + $0xa48] sm:$0xff] }
 0x250   :  { %3779 = vmatpush.bf16.msrb.mxu1 %v5887_v1  ;;  %3918 = vmatpush.bf16.msra.mxu0 %v5979_v21  ;;  %v5993_v1 = vld [vmem:[%s7640_s8 + $0x958] sm:$0xff]  ;;  %v7315_v21 = vpop.f32.mrf.mxu0 }
 0x251   :  { %3910 = vmatpush.bf16.msrb.mxu3 %v5966_v39  ;;  %v6035_v39 = vld [vmem:[%s7640_s8 + $0xaa8] sm:$0xff] }
 0x252   :  { %3946 = vmatpush.bf16.msrb.mxu2 %v5993_v1 }
 0x254   :  { %3780 = vmatpush.bf16.msrb.mxu1 %v5886_v9  ;;  %3919 = vmatpush.bf16.msra.mxu0 %v5978_v26  ;;  %v3574_v32 = vpop.f32.mrf.mxu1  ;;  %v6010_v9 = vld [vmem:[%s7640_s8 + $0x9e0] sm:$0xff] }
 0x255   :  { %v3575_v34 = vadd.f32 %v3574_v32, %v7122_v63  ;;  %3955 = vmatpush.bf16.msra.mxu3 %v6005_v42  ;;  %v6002_v63 = vld [vmem:[%s7640_s8 + $0x9a0] sm:$0xff] }
 0x256   :  { %3911 = vmatmul.bf16.vlgmr.msrb.gmra.mxu3 %v1093_v62  ;;  %3947 = vmatpush.bf16.msrb.mxu2 %v5992_v6  ;;  %v5950_v42 = vld [vmem:[%s7640_s8 + $0x800] sm:$0xff]  ;;  %v6031_v62 = vld [vmem:[%s7640_s8 + $0xa88] sm:$0xff]  ;;  %v6061_v6 = vld [vmem:[%s7640_s8 + $0xb78] sm:$0xff] }
 0x257   :  { %3781 = vmatmul.bf16.vlgmr.msrb.gmra.mxu1 %v1081_v16  ;;  %v3588_v41 = vadd.f32 %v7077_v43, %v3575_v34  ;;  %v5975_v43 = vld [vmem:[%s7640_s8 + $0x8c8] sm:$0xff]  ;;  %v5990_v16 = vld [vmem:[%s7640_s8 + $0x940] sm:$0xff] }
 0x258   :  { %3825 = vmatpush.bf16.msra.mxu1 %v5925_v11  ;;  %3920 = vmatpush.bf16.msra.mxu0 %v5977_v31  ;;  %v5954_v11 = vld [vmem:[%s7640_s8 + $0x820] sm:$0xff]  ;;  %v3693_v31 = vpop.f32.mrf.mxu2  ;;  %v5951_v34 = vld [vmem:[%s7640_s8 + $0x808] sm:$0xff] }
 0x259   :  { %v3601_v44 = vadd.f32 %v7091_v50, %v3588_v41  ;;  %3956 = vmatpush.bf16.msra.mxu3 %v6004_v47  ;;  %v6045_v41 = vld [vmem:[%s7640_s8 + $0xaf8] sm:$0xff]  ;;  %v6044_v47 = vld [vmem:[%s7640_s8 + $0xaf0] sm:$0xff] }
 0x25a   :  { %3948 = vmatpush.bf16.msrb.mxu2 %v5991_v10 }
 0x25b   :  { %v3614_v49 = vadd.f32 %v7096_v52, %v3601_v44  ;;  %v6003_v52 = vld [vmem:[%s7640_s8 + $0x9a8] sm:$0xff]  ;;  %v6026_v44 = vld [vmem:[%s7640_s8 + $0xa60] sm:$0xff] }
 0x25c   :  { %3826 = vmatpush.bf16.msra.mxu1 %v5924_v18  ;;  %3921 = vmatpush.bf16.msra.mxu0 %v5976_v40  ;;  %v3576_v50 = vpop.f32.mrf.mxu1  ;;  %v5953_v18 = vld [vmem:[%s7640_s8 + $0x818] sm:$0xff]  ;;  %v3719_v40 = vpop.f32.mrf.mxu0 }
 0x25d   :  { %3957 = vmatpush.bf16.msra.mxu3 %v6003_v52  ;;  %v6025_v50 = vld [vmem:[%s7640_s8 + $0xa58] sm:$0xff]  ;;  %v6024_v52 = vld [vmem:[%s7640_s8 + $0xa50] sm:$0xff]  ;;  %v6019_v40 = vld [vmem:[%s7640_s8 + $0xa28] sm:$0xff] }
 0x25e   :  { %3949 = vmatpush.bf16.msrb.mxu2 %v5990_v16  ;;  %v6068_v16 = vld [vmem:[%s7640_s8 + $0xbb0] sm:$0xff] }
 0x260   :  { %3827 = vmatpush.bf16.msra.mxu1 %v5923_v24  ;;  %3922 = vmatpush.bf16.msra.mxu0 %v5975_v43  ;;  %v6034_v43 = vld [vmem:[%s7640_s8 + $0xaa0] sm:$0xff] }
 0x261   :  { %3958 = vmatpush.bf16.msra.mxu3 %v6002_v63  ;;  %v6041_v63 = vld [vmem:[%s7640_s8 + $0xad8] sm:$0xff] }
 0x262   :  { %3994 = vmatpush.bf16.msra.mxu2 %v6029_v20  ;;  %v5983_v20 = vld [vmem:[%s7640_s8 + $0x908] sm:$0xff] }
 0x264   :  { %3828 = vmatpush.bf16.msra.mxu1 %v5922_v28  ;;  %3923 = vmatpush.bf16.msra.mxu0 %v5974_v55  ;;  %v6028_v28 = vld [vmem:[%s7640_s8 + $0xa70] sm:$0xff]  ;;  %v6043_v55 = vld [vmem:[%s7640_s8 + $0xae8] sm:$0xff] }
 0x265   :  { %3959 = vmatpush.bf16.msra.mxu3 %v6001_v3 }
 0x266   :  { %3995 = vmatpush.bf16.msra.mxu2 %v6028_v28  ;;  %v5982_v28 = vld [vmem:[%s7640_s8 + $0x900] sm:$0xff] }
 0x267   :  { %3924 = vmatmul.bf16.vlgmr.msra.gmra.mxu0 %v1094_v5 }
 0x268   :  { %3829 = vmatpush.bf16.msra.mxu1 %v5921_v35  ;;  %3968 = vmatpush.bf16.msrb.mxu0 %v6013_v58  ;;  %v6027_v35 = vld [vmem:[%s7640_s8 + $0xa68] sm:$0xff]  ;;  %v6032_v58 = vld [vmem:[%s7640_s8 + $0xa90] sm:$0xff] }
 0x269   :  { %3960 = vmatpush.bf16.msra.mxu3 %v6000_v8  ;;  %v6030_v8 = vld [vmem:[%s7640_s8 + $0xa80] sm:$0xff] }
 0x26a   :  { %3996 = vmatpush.bf16.msra.mxu2 %v6027_v35  ;;  %v6020_v35 = vld [vmem:[%s7640_s8 + $0xa30] sm:$0xff] }
 0x26c   :  { %3830 = vmatpush.bf16.msra.mxu1 %v5920_v45  ;;  %3969 = vmatpush.bf16.msrb.mxu0 %v6012_v0  ;;  %v5989_v45 = vld [vmem:[%s7640_s8 + $0x938] sm:$0xff]  ;;  %v7414_v0 = vpop.f32.mrf.mxu2 }
 0x26d   :  { %3961 = vmatpush.bf16.msra.mxu3 %v5999_v13 }
 0x26e   :  { %3997 = vmatpush.bf16.msra.mxu2 %v6026_v44  ;;  %v6055_v44 = vld [vmem:[%s7640_s8 + $0xb48] sm:$0xff] }
 0x270   :  { %3831 = vmatpush.bf16.msra.mxu1 %v5919_v51  ;;  %3970 = vmatpush.bf16.msrb.mxu0 %v6011_v4  ;;  %v5988_v51 = vld [vmem:[%s7640_s8 + $0x930] sm:$0xff]  ;;  %v5985_v4 = vld [vmem:[%s7640_s8 + $0x918] sm:$0xff] }
 0x271   :  { %3962 = vmatpush.bf16.msra.mxu3 %v5998_v22  ;;  %v6059_v22 = vld [vmem:[%s7640_s8 + $0xb68] sm:$0xff] }
 0x272   :  { %3998 = vmatpush.bf16.msra.mxu2 %v6025_v50 }
 0x274   :  { %3832 = vmatpush.bf16.msra.mxu1 %v5918_v59  ;;  %3971 = vmatpush.bf16.msrb.mxu0 %v6010_v9  ;;  %v3626_v15 = vpop.f32.mrf.mxu1  ;;  %v6042_v59 = vld [vmem:[%s7640_s8 + $0xae0] sm:$0xff]  ;;  %v6040_v9 = vld [vmem:[%s7640_s8 + $0xad0] sm:$0xff] }
 0x275   :  { %v3627_v17 = vadd.f32 %v3626_v15, %v3614_v49  ;;  %4007 = vmatpush.bf16.msrb.mxu3 %v6037_v25  ;;  %v1091_v49 = vld [vmem:[#allocation1] sm:$0xff]  ;;  %v6060_v15 = vld [vmem:[%s7640_s8 + $0xb70] sm:$0xff]  ;;  %v6067_v25 = vld [vmem:[%s7640_s8 + $0xba8] sm:$0xff] }
 0x276   :  { %3963 = vmatmul.bf16.vlgmr.msra.gmra.mxu3 %v1097_v46  ;;  %3999 = vmatpush.bf16.msra.mxu2 %v6024_v52 }
 0x277   :  { %3833 = vmatmul.bf16.vlgmr.msra.gmra.mxu1 %v7163_v19  ;;  %v7310_v19 = vpop.f32.mrf.mxu3  ;;  %v3640_v24 = vadd.f32 %v7189_v29, %v3627_v17  ;;  %v6007_v29 = vld [vmem:[%s7640_s8 + $0x9c8] sm:$0xff] }
 0x278   :  { %3877 = vmatpush.bf16.msrb.mxu1 %v5957_v61  ;;  %3972 = vmatpush.bf16.msrb.mxu0 %v6009_v14  ;;  %v5986_v61 = vld [vmem:[%s7640_s8 + $0x920] sm:$0xff]  ;;  %v5984_v14 = vld [vmem:[%s7640_s8 + $0x910] sm:$0xff] }
 0x279   :  { %v3653_v26 = vadd.f32 %v7204_v36, %v3640_v24  ;;  %4008 = vmatpush.bf16.msrb.mxu3 %v6036_v30  ;;  %v6038_v24 = vld [vmem:[%s7640_s8 + $0xac0] sm:$0xff]  ;;  %v6021_v30 = vld [vmem:[%s7640_s8 + $0xa38] sm:$0xff] }
 0x27a   :  { %4000 = vmatpush.bf16.msra.mxu2 %v6023_v60 }
 0x27b   :  { %v7341_v32 = vadd.f32 %v7209_v38, %v3653_v26  ;;  %v1096_v38 = vld [vmem:[#allocation1 + $0x2d] sm:$0xff] }
 0x27c   :  { %3878 = vmatpush.bf16.msrb.mxu1 %v5956_v2  ;;  %3973 = vmatpush.bf16.msrb.mxu0 %v6008_v23  ;;  %v3628_v33 = vpop.f32.mrf.mxu1  ;;  %1100 = vst [vmem:[#allocation1] ss:$9 sm:$0xff] %v230_v48  ;;  %v6022_v2 = vld [vmem:[%s7640_s8 + $0xa40] sm:$0xff] }
 0x27d   :  { %3950 = vmatmul.bf16.vlgmr.msrb.gmra.mxu2 %v1096_v38  ;;  %4009 = vmatpush.bf16.msrb.mxu3 %v6035_v39  ;;  %v6076_v33 = vld [vmem:[%s7640_s8 + $0xbf0] sm:$0xff] }
 0x27e   :  { %4001 = vmatpush.bf16.msra.mxu2 %v6022_v2  ;;  %v6056_v39 = vld [vmem:[%s7640_s8 + $0xb50] sm:$0xff] }
 0x27f   :  { %v3706_v36 = vpop.f32.mrf.mxu3 }
 0x280   :  { %3879 = vmatpush.bf16.msrb.mxu1 %v5955_v7  ;;  %3974 = vmatpush.bf16.msrb.mxu0 %v6007_v29  ;;  %v7428_v7 = vpop.f32.mrf.mxu0  ;;  %v6058_v29 = vld [vmem:[%s7640_s8 + $0xb60] sm:$0xff]  ;;  %v6065_v36 = vld [vmem:[%s7640_s8 + $0xb98] sm:$0xff] }
 0x281   :  { %4010 = vmatpush.bf16.msrb.mxu3 %v6034_v43  ;;  %v6063_v43 = vld [vmem:[%s7640_s8 + $0xb88] sm:$0xff] }
 0x282   :  { %4046 = vmatpush.bf16.msrb.mxu2 %v6061_v6  ;;  %v6053_v6 = vld [vmem:[%s7640_s8 + $0xb38] sm:$0xff] }
 0x283   :  { %v1103_v31 = vld [vmem:[#allocation1 + $0x12] sm:$0xff]  ;;  %v1104_v38 = vld [vmem:[#allocation1 + $0x1b] sm:$0xff] }
 0x284   :  { %3880 = vmatpush.bf16.msrb.mxu1 %v5954_v11  ;;  %3975 = vmatpush.bf16.msrb.mxu0 %v6006_v37  ;;  %v6069_v11 = vld [vmem:[%s7640_s8 + $0xbb8] sm:$0xff]  ;;  %v6075_v37 = vld [vmem:[%s7640_s8 + $0xbe8] sm:$0xff] }
 0x285   :  { %4011 = vmatpush.bf16.msrb.mxu3 %v6033_v54  ;;  %v1107_v60 = vld [vmem:[#allocation1 + $0x36] sm:$0xff] }
 0x286   :  { %4047 = vmatpush.bf16.msrb.mxu2 %v6060_v15 }
 0x287   :  { %3976 = vmatmul.bf16.vlgmr.msrb.gmra.mxu0 %v1098_v56  ;;  %v7423_v5 = vpop.f32.mrf.mxu3  ;;  %v6072_v56 = vld [vmem:[%s7640_s8 + $0xbd0] sm:$0xff] }
 0x288   :  { %3881 = vmatpush.bf16.msrb.mxu1 %v5953_v18  ;;  %4020 = vmatpush.bf16.msra.mxu0 %v6045_v41  ;;  %v3745_v18 = vpop.f32.mrf.mxu2  ;;  %v3771_v26 = vpop.f32.mrf.mxu0  ;;  %v6064_v41 = vld [vmem:[%s7640_s8 + $0xb90] sm:$0xff] }
 0x289   :  { %4012 = vmatpush.bf16.msrb.mxu3 %v6032_v58 }
 0x28a   :  { %4048 = vmatpush.bf16.msrb.mxu2 %v6059_v22 }
 0x28c   :  { %3882 = vmatpush.bf16.msrb.mxu1 %v5952_v27  ;;  %4021 = vmatpush.bf16.msra.mxu0 %v6044_v47  ;;  %v6077_v27 = vld [vmem:[%s7640_s8 + $0xbf8] sm:$0xff] }
 0x28d   :  { %4013 = vmatpush.bf16.msrb.mxu3 %v6031_v62  ;;  %v6073_v47 = vld [vmem:[%s7640_s8 + $0xbd8] sm:$0xff] }
 0x28e   :  { %4049 = vmatpush.bf16.msrb.mxu2 %v6058_v29 }
 0x28f   :  { %v3758_v23 = vpop.f32.mrf.mxu3 }
 0x290   :  { %3883 = vmatpush.bf16.msrb.mxu1 %v5951_v34  ;;  %4022 = vmatpush.bf16.msra.mxu0 %v6043_v55  ;;  %v6057_v34 = vld [vmem:[%s7640_s8 + $0xb58] sm:$0xff]  ;;  %v3795_v46 = vpop.f32.mrf.mxu2  ;;  %v3821_v54 = vpop.f32.mrf.mxu0  ;;  %v6062_v55 = vld [vmem:[%s7640_s8 + $0xb80] sm:$0xff] }
 0x291   :  { %4014 = vmatpush.bf16.msrb.mxu3 %v6030_v8  ;;  %v1101_v8 = vld [vmem:[#allocation1] sm:$0xff] }
 0x292   :  { %4050 = vmatpush.bf16.msrb.mxu2 %v6057_v34 }
 0x294   :  { %3884 = vmatpush.bf16.msrb.mxu1 %v5950_v42  ;;  %4023 = vmatpush.bf16.msra.mxu0 %v6042_v59  ;;  %v3678_v1 = vpop.f32.mrf.mxu1  ;;  %v6074_v42 = vld [vmem:[%s7640_s8 + $0xbe0] sm:$0xff]  ;;  %v6016_v59 = vld [vmem:[%s7640_s8 + $0xa10] sm:$0xff] }
 0x295   :  { %v3679_v3 = vadd.f32 %v3678_v1, %v7341_v32  ;;  %4059 = vmatpush.bf16.msra.mxu3 %v6069_v11  ;;  %v6066_v32 = vld [vmem:[%s7640_s8 + $0xba0] sm:$0xff]  ;;  %v6015_v1 = vld [vmem:[%s7640_s8 + $0xa08] sm:$0xff] }
 0x296   :  { %4015 = vmatmul.bf16.vlgmr.msrb.gmra.mxu3 %v1103_v31  ;;  %4051 = vmatpush.bf16.msrb.mxu2 %v6056_v39  ;;  %v6050_v11 = vld [vmem:[%s7640_s8 + $0xb20] sm:$0xff] }
 0x297   :  { %3885 = vmatmul.bf16.vlgmr.msrb.gmra.mxu1 %v1091_v49  ;;  %v3692_v10 = vadd.f32 %v7296_v12, %v3679_v3  ;;  %v6039_v12 = vld [vmem:[%s7640_s8 + $0xac8] sm:$0xff]  ;;  %v6054_v49 = vld [vmem:[%s7640_s8 + $0xb40] sm:$0xff] }
 0x298   :  { %3929 = vmatpush.bf16.msra.mxu1 %v5989_v45  ;;  %4024 = vmatpush.bf16.msra.mxu0 %v6041_v63  ;;  %v6018_v45 = vld [vmem:[%s7640_s8 + $0xa20] sm:$0xff]  ;;  %v3797_v62 = vpop.f32.mrf.mxu2 }
 0x299   :  { %v3705_v13 = vadd.f32 %v7310_v19, %v3692_v10  ;;  %4060 = vmatpush.bf16.msra.mxu3 %v6068_v16  ;;  %v6070_v3 = vld [vmem:[%s7640_s8 + $0xbc0] sm:$0xff]  ;;  %v6051_v10 = vld [vmem:[%s7640_s8 + $0xb28] sm:$0xff] }
 0x29a   :  { %4052 = vmatpush.bf16.msrb.mxu2 %v6055_v44 }
 0x29b   :  { %v3718_v17 = vadd.f32 %v7315_v21, %v3705_v13  ;;  %v1102_v21 = vld [vmem:[#allocation1 + $0x9] sm:$0xff] }
 0x29c   :  { %3930 = vmatpush.bf16.msra.mxu1 %v5988_v51  ;;  %4025 = vmatpush.bf16.msra.mxu0 %v6040_v9  ;;  %v3680_v19 = vpop.f32.mrf.mxu1  ;;  %v6017_v51 = vld [vmem:[%s7640_s8 + $0xa18] sm:$0xff]  ;;  %v6052_v9 = vld [vmem:[%s7640_s8 + $0xb30] sm:$0xff] }
 0x29d   :  { %4002 = vmatmul.bf16.vlgmr.msra.gmra.mxu2 %v1102_v21  ;;  %4061 = vmatpush.bf16.msra.mxu3 %v6067_v25  ;;  %v6047_v21 = vld [vmem:[%s7640_s8 + $0xb08] sm:$0xff] }
 0x29e   :  { %4053 = vmatpush.bf16.msrb.mxu2 %v6054_v49 }
 0x2a0   :  { %3931 = vmatpush.bf16.msra.mxu1 %v5987_v57  ;;  %4026 = vmatpush.bf16.msra.mxu0 %v6039_v12  ;;  %v1106_v57 = vld [vmem:[#allocation1 + $0x2d] sm:$0xff]  ;;  %v6049_v12 = vld [vmem:[%s7640_s8 + $0xb18] sm:$0xff] }
 0x2a1   :  { %4062 = vmatpush.bf16.msra.mxu3 %v6066_v32 }
 0x2a4   :  { %3932 = vmatpush.bf16.msra.mxu1 %v5986_v61  ;;  %4027 = vmatpush.bf16.msra.mxu0 %v6038_v24  ;;  %v6071_v61 = vld [vmem:[%s7640_s8 + $0xbc8] sm:$0xff] }
 0x2a5   :  { %4063 = vmatpush.bf16.msra.mxu3 %v6065_v36 }
 0x2a7   :  { %4028 = vmatmul.bf16.vlgmr.msra.gmra.mxu0 %v1104_v38 }
 0x2a8   :  { %3933 = vmatpush.bf16.msra.mxu1 %v5985_v4  ;;  %4072 = vmatpush.bf16.msrb.mxu0 %v6077_v27  ;;  %v3823_v4 = vpop.f32.mrf.mxu0  ;;  %v6046_v27 = vld [vmem:[%s7640_s8 + $0xb00] sm:$0xff] }
 0x2a9   :  { %4064 = vmatpush.bf16.msra.mxu3 %v6064_v41 }
 0x2ac   :  { %3934 = vmatpush.bf16.msra.mxu1 %v5984_v14  ;;  %4073 = vmatpush.bf16.msrb.mxu0 %v6076_v33 }
 0x2ad   :  { %4065 = vmatpush.bf16.msra.mxu3 %v6063_v43  ;;  %4054 = vmatmul.bf16.vlgmr.msrb.gmra.mxu2 %v1106_v57 }
 0x2b0   :  { %3935 = vmatpush.bf16.msra.mxu1 %v5983_v20  ;;  %4074 = vmatpush.bf16.msrb.mxu0 %v6075_v37  ;;  %v6048_v20 = vld [vmem:[%s7640_s8 + $0xb10] sm:$0xff] }
 0x2b1   :  { %4066 = vmatpush.bf16.msra.mxu3 %v6062_v55 }
 0x2b4   :  { %3936 = vmatpush.bf16.msra.mxu1 %v5982_v28  ;;  %4075 = vmatpush.bf16.msrb.mxu0 %v6074_v42  ;;  %v3730_v48 = vpop.f32.mrf.mxu1  ;;  %v1105_v28 = vld [vmem:[#allocation1 + $0x24] sm:$0xff] }
 0x2b5   :  { %v3731_v50 = vadd.f32 %v3730_v48, %v3718_v17  ;;  %4067 = vmatmul.bf16.vlgmr.msra.gmra.mxu3 %v1107_v60 }
 0x2b7   :  { %3937 = vmatmul.bf16.vlgmr.msra.gmra.mxu1 %v7382_v53  ;;  %v3808_v53 = vpop.f32.mrf.mxu3  ;;  %v3744_v52 = vadd.f32 %v7414_v0, %v3731_v50 }
 0x2b8   :  { %3981 = vmatpush.bf16.msrb.mxu1 %v6021_v30  ;;  %4076 = vmatpush.bf16.msrb.mxu0 %v6073_v47 }
 0x2b9   :  { %v3757_v58 = vadd.f32 %v7423_v5, %v3744_v52  ;;  %v6014_v5 = vld [vmem:[%s7640_s8 + $0xa00] sm:$0xff] }
 0x2bb   :  { %v3770_v63 = vadd.f32 %v7428_v7, %v3757_v58  ;;  %v1108_v7 = vld [vmem:[#allocation1 + $0x3f] sm:$0xff] }
 0x2bc   :  { %3982 = vmatpush.bf16.msrb.mxu1 %v6020_v35  ;;  %4077 = vmatpush.bf16.msrb.mxu0 %v6072_v56  ;;  %v3732_v0 = vpop.f32.mrf.mxu1 }
 0x2bf   :  { %v3810_v2 = vpop.f32.mrf.mxu3 }
 0x2c0   :  { %3983 = vmatpush.bf16.msrb.mxu1 %v6019_v40  ;;  %4078 = vmatpush.bf16.msrb.mxu0 %v6071_v61  ;;  %v3847_v13 = vpop.f32.mrf.mxu2  ;;  %v4105_v61 = vld [vmem:[%s7644_s11 + $0x70] sm:$0xff]  ;;  %v4103_v2 = vld [vmem:[%s7644_s11 + $0x60] sm:$0xff] }
 0x2c4   :  { %3984 = vmatpush.bf16.msrb.mxu1 %v6018_v45  ;;  %4079 = vmatpush.bf16.msrb.mxu0 %v6070_v3  ;;  %v3873_v17 = vpop.f32.mrf.mxu0 }
 0x2c7   :  { %4080 = vmatmul.bf16.vlgmr.msrb.gmra.mxu0 %v1108_v7  ;;  %v3860_v16 = vpop.f32.mrf.mxu3  ;;  %v4100_v7 = vld [vmem:[%s7644_s11 + $0x48] sm:$0xff] }
 0x2c8   :  { %3985 = vmatpush.bf16.msrb.mxu1 %v6017_v51  ;;  %v3849_v22 = vpop.f32.mrf.mxu2 }
 0x2cc   :  { %3986 = vmatpush.bf16.msrb.mxu1 %v6016_v59  ;;  %v3875_v26 = vpop.f32.mrf.mxu0  ;;  %v4106_v59 = vld [vmem:[%s7644_s11 + $0x78] sm:$0xff] }
 0x2cf   :  { %v3862_v25 = vpop.f32.mrf.mxu3 }
 0x2d0   :  { %3987 = vmatpush.bf16.msrb.mxu1 %v6015_v1  ;;  %v3899_v29 = vpop.f32.mrf.mxu2 }
 0x2d4   :  { %3988 = vmatpush.bf16.msrb.mxu1 %v6014_v5  ;;  %v3782_v14 = vpop.f32.mrf.mxu1  ;;  %v4102_v5 = vld [vmem:[%s7644_s11 + $0x58] sm:$0xff] }
 0x2d5   :  { %v3783_v15 = vadd.f32 %v3782_v14, %v3770_v63  ;;  %v4104_v63 = vld [vmem:[%s7644_s11 + $0x68] sm:$0xff] }
 0x2d7   :  { %3989 = vmatmul.bf16.vlgmr.msrb.gmra.mxu1 %v1101_v8  ;;  %v3796_v18 = vadd.f32 %v3795_v46, %v3783_v15  ;;  %v4099_v8 = vld [vmem:[%s7644_s11 + $0x40] sm:$0xff]  ;;  %v4096_v15 = vld [vmem:[%s7644_s11 + $0x28] sm:$0xff] }
 0x2d8   :  { %4033 = vmatpush.bf16.msra.mxu1 %v6053_v6  ;;  %v3901_v36 = vpop.f32.mrf.mxu2  ;;  %v4101_v6 = vld [vmem:[%s7644_s11 + $0x50] sm:$0xff] }
 0x2d9   :  { %v3809_v19 = vadd.f32 %v3808_v53, %v3796_v18  ;;  %v3912_v32 = vpop.f32.mrf.mxu3 }
 0x2db   :  { %v3822_v23 = vadd.f32 %v3821_v54, %v3809_v19  ;;  %v4094_v19 = vld [vmem:[%s7644_s11 + $0x18] sm:$0xff] }
 0x2dc   :  { %4034 = vmatpush.bf16.msra.mxu1 %v6052_v9  ;;  %v3784_v24 = vpop.f32.mrf.mxu1  ;;  %v4098_v9 = vld [vmem:[%s7644_s11 + $0x38] sm:$0xff] }
 0x2e0   :  { %4035 = vmatpush.bf16.msra.mxu1 %v6051_v10 }
 0x2e1   :  { %v3914_v39 = vpop.f32.mrf.mxu3 }
 0x2e4   :  { %4036 = vmatpush.bf16.msra.mxu1 %v6050_v11  ;;  %v3925_v33 = vpop.f32.mrf.mxu0 }
 0x2e8   :  { %4037 = vmatpush.bf16.msra.mxu1 %v6049_v12 }
 0x2ec   :  { %4038 = vmatpush.bf16.msra.mxu1 %v6048_v20  ;;  %v3927_v40 = vpop.f32.mrf.mxu0  ;;  %v4093_v20 = vld [vmem:[%s7644_s11 + $0x10] sm:$0xff] }
 0x2f0   :  { %4039 = vmatpush.bf16.msra.mxu1 %v6047_v21  ;;  %v4091_v21 = vld [vmem:[%s7644_s11] sm:$0xff] }
 0x2f4   :  { %4040 = vmatpush.bf16.msra.mxu1 %v6046_v27  ;;  %v3834_v30 = vpop.f32.mrf.mxu1 }
 0x2f5   :  { %v3835_v31 = vadd.f32 %v3834_v30, %v3822_v23  ;;  %v4092_v23 = vld [vmem:[%s7644_s11 + $0x8] sm:$0xff] }
 0x2f7   :  { %4041 = vmatmul.bf16.vlgmr.msra.gmra.mxu1 %v1105_v28  ;;  %v3848_v34 = vadd.f32 %v3847_v13, %v3835_v31  ;;  %v4097_v13 = vld [vmem:[%s7644_s11 + $0x30] sm:$0xff] }
 0x2f8   :  { %4111 = vmatpush.msrb.mxu1 %v4106_v59 }
 0x2f9   :  { %v3861_v35 = vadd.f32 %v3860_v16, %v3848_v34  ;;  %v3964_v45 = vpop.f32.mrf.mxu3 }
 0x2fa   :  { %4112 = vmatpush.msrb.mxu1 %v4105_v61 }
 0x2fb   :  { %v3874_v37 = vadd.f32 %v3873_v17, %v3861_v35  ;;  %v4095_v17 = vld [vmem:[%s7644_s11 + $0x20] sm:$0xff] }
 0x2fc   :  { %v3836_v38 = vpop.f32.mrf.mxu1  ;;  %4113 = vmatpush.msrb.mxu1 %v4104_v63 }
 0x2fd   :  { %v6085_v38 = vld [vmem:[%s7643_s12] ss:$0 sm:$0xff] }
 0x2fe   :  { %4114 = vmatpush.msrb.mxu1 %v4103_v2 }
 0x300   :  { %v3951_v41 = vpop.f32.mrf.mxu2  ;;  %4115 = vmatpush.msrb.mxu1 %v4102_v5 }
 0x301   :  { %v3966_v51 = vpop.f32.mrf.mxu3 }
 0x302   :  { %4116 = vmatpush.msrb.mxu1 %v4101_v6 }
 0x304   :  { %v3977_v46 = vpop.f32.mrf.mxu0  ;;  %4117 = vmatpush.msrb.mxu1 %v4100_v7 }
 0x306   :  { %4118 = vmatpush.msrb.mxu1 %v4099_v8 }
 0x308   :  { %v3953_v48 = vpop.f32.mrf.mxu2  ;;  %4119 = vmatpush.msrb.mxu1 %v4098_v9 }
 0x30a   :  { %4120 = vmatpush.msrb.mxu1 %v4097_v13 }
 0x30c   :  { %v3979_v53 = vpop.f32.mrf.mxu0  ;;  %4121 = vmatpush.msrb.mxu1 %v4096_v15 }
 0x30e   :  { %4122 = vmatpush.msrb.mxu1 %v4095_v17 }
 0x310   :  { %4123 = vmatpush.msrb.mxu1 %v4094_v19 }
 0x312   :  { %4124 = vmatpush.msrb.mxu1 %v4093_v20 }
 0x314   :  { %v3886_v42 = vpop.f32.mrf.mxu1  ;;  %4125 = vmatpush.msrb.mxu1 %v4092_v23 }
 0x315   :  { %v3887_v44 = vadd.f32 %v3886_v42, %v3874_v37 }
 0x316   :  { %4126 = vmatpush.msrb.mxu1 %v4091_v21 }
 0x317   :  { %v3900_v43 = vadd.f32 %v3899_v29, %v3887_v44 }
 0x319   :  { %v3913_v47 = vadd.f32 %v3912_v32, %v3900_v43  ;;  %v4016_v52 = vpop.f32.mrf.mxu3 }
 0x31b   :  { %v3926_v49 = vadd.f32 %v3925_v33, %v3913_v47  ;;  %v6084_v33 = vld [vmem:[%s7642_s10] ss:$0 sm:$0xff] }
 0x31c   :  { %v3888_v50 = vpop.f32.mrf.mxu1 }
 0x320   :  { %v4003_v54 = vpop.f32.mrf.mxu2 }
 0x321   :  { %v4018_v3 = vpop.f32.mrf.mxu3 }
 0x324   :  { %v4029_v57 = vpop.f32.mrf.mxu0 }
 0x328   :  { %v4005_v62 = vpop.f32.mrf.mxu2 }
 0x32c   :  { %v4031_v4 = vpop.f32.mrf.mxu0 }
 0x330   :  { %v4055_v10 = vpop.f32.mrf.mxu2 }
 0x334   :  { %v3938_v55 = vpop.f32.mrf.mxu1 }
 0x335   :  { %v3939_v56 = vadd.f32 %v3938_v55, %v3926_v49 }
 0x337   :  { %v3952_v58 = vadd.f32 %v3951_v41, %v3939_v56 }
 0x338   :  { %v4068_v11 = vpop.f32.mrf.mxu3  ;;  %v4057_v16 = vpop.f32.mrf.mxu2 }
 0x339   :  { %v3965_v60 = vadd.f32 %v3964_v45, %v3952_v58 }
 0x33b   :  { %v3978_v0 = vadd.f32 %v3977_v46, %v3965_v60 }
 0x33c   :  { %v3940_v1 = vpop.f32.mrf.mxu1 }
 0x340   :  { %v4070_v18 = vpop.f32.mrf.mxu3 }
 0x344   :  { %v4081_v14 = vpop.f32.mrf.mxu0 }
 0x34c   :  { %v4083_v22 = vpop.f32.mrf.mxu0 }
 0x354   :  { %v3990_v12 = vpop.f32.mrf.mxu1 }
 0x355   :  { %v3991_v25 = vadd.f32 %v3990_v12, %v3978_v0 }
 0x357   :  { %v4004_v26 = vadd.f32 %v4003_v54, %v3991_v25 }
 0x359   :  { %v4017_v27 = vadd.f32 %v4016_v52, %v4004_v26 }
 0x35b   :  { %v4030_v28 = vadd.f32 %v4029_v57, %v4017_v27 }
 0x35c   :  { %v3992_v24 = vpop.f32.mrf.mxu1 }
 0x374   :  { %v4042_v29 = vpop.f32.mrf.mxu1 }
 0x375   :  { %v4043_v30 = vadd.f32 %v4042_v29, %v4030_v28 }
 0x377   :  { %v4056_v31 = vadd.f32 %v4055_v10, %v4043_v30 }
 0x379   :  { %v4069_v32 = vadd.f32 %v4068_v11, %v4056_v31 }
 0x37b   :  { %v4082_v34 = vadd.f32 %v4081_v14, %v4069_v32 }
 0x37c   :  { %v4044_v35 = vpop.f32.mrf.mxu1 }
 0x37d   :  { %v4089_v36 = vadd.f32 %v6084_v33, %v4082_v34 }
 0x37f   :  { %v4090_v37 = vmax.f32 %v4089_v36, 0.0 }
 0x381   :  { %4127 = vmatmul.f32.vlgmr.msrb.gmra.mxu1 %v4090_v37 }
 0x3fe   :  { %v4128_v39 = vpop.f32.mrf.mxu1 }
 0x3ff   :  { %v4129_v40 = vadd.f32 %v6085_v38, %v4128_v39 }
 0x401   :  { %4132 = vst.msk [vmem:[%s7645_s13] sm:$0x3] %vm4131_vm3, %v4129_v40 }

</bundles_post_ra>
